<compile_context>
chip_gen: v6e
topology: v6e:2x2x1
jax: 0.10.0
libtpu: 0.0.40
codegen_flags: <defaults>
</compile_context>

<pallas_src>
import functools

import jax
import jax.numpy as jnp
from jax import lax
from jax.experimental import pallas as pl
from jax.experimental.pallas import tpu as pltpu


def _pick_tile_rows(H, target=8):
    """Largest divisor of H that is <= target (grid row-tile height)."""
    th = min(H, target)
    while H % th != 0:
        th -= 1
    return th


def _chunks(total, size):
    out, s = [], 0
    while s < total:
        n = min(size, total - s)
        out.append((s, n))
        s += n
    return out


def _conv_taps(src2d, w_ref, rows, Wp):
    """3x3 conv over a row chunk as 9 register-accumulated MXU matmuls.

    src2d : ((rows+2)*Wp, Cp) bf16 value; rows merged with the zero-padded
            width Wp (Wp % 8 == 0 keeps the merge layout-free).
    w_ref : (3, 3, Cp, Cp) bf16 ref (HWIO).
    Returns (rows*Wp, Cp) f32; position r*Wp + c holds the conv output for
    (row r, col c) of this chunk.  Columns >= W+1 are junk and are masked /
    discarded by the caller.
    """
    L = src2d.shape[0]
    Cp = src2d.shape[1]
    size = rows * Wp
    acc = None
    for dy in range(3):
        for dx in range(3):
            start = dy * Wp + dx
            end = start + size
            if end <= L:
                lhs = src2d[start:end]
            else:
                # The last row's dx-shifted read runs (<=2 elems) past the
                # chunk; those elements only feed discarded columns, so
                # zero-fill them.
                lhs = jnp.concatenate(
                    [src2d[start:L],
                     jnp.zeros((end - L, Cp), src2d.dtype)], axis=0)
            tap = jnp.dot(lhs, w_ref[dy, dx],
                          preferred_element_type=jnp.float32)
            acc = tap if acc is None else acc + tap
    return acc


def _resblock_kernel(x_ref, w1_ref, w2_ref, s1_ref, b1_ref, s2_ref, b2_ref,
                     ident_ref, out_ref, mid_ref, *, TH, W, Wp, C, Cp, CH):
    # x_ref    : (1, TH+4, Wp, Cp) bf16  row tile of x with 2-row / 2-col halo
    # w1/w2    : (3, 3, Cp, Cp)    bf16  conv weights, HWIO, channel-padded
    # s*/b*    : (1, Cp)           f32   BN scale / bias (applied post-matmul)
    # ident_ref: (1, TH, W, C)     f32   exact residual (unpadded NHWC)
    # out_ref  : (1, TH, W, C)     f32   unpadded NHWC output tile
    # mid_ref  : (TH+2, Wp, Cp)    bf16  conv1 output (+1-row halo), per step
    t = pl.program_id(1)
    last_t = pl.num_programs(1) - 1

    # ---------------- conv1 -> bn1 -> ReLU -> mid (TH+2 rows) ---------------
    for (m_lo, m_rows) in _chunks(TH + 2, CH):
        xch = x_ref[0, m_lo:m_lo + m_rows + 2, :, :]       # (m_rows+2, Wp, Cp)
        x2d = xch.reshape((m_rows + 2) * Wp, Cp)
        acc = _conv_taps(x2d, w1_ref, m_rows, Wp)          # (m_rows*Wp, Cp) f32
        val = jnp.maximum(acc * s1_ref[...] + b1_ref[...], 0.0)
        val = val.reshape(m_rows, Wp, Cp)
        # valid image columns live at padded cols 1..W; everything else must
        # be exactly zero (conv2's spatial zero padding + scratch hygiene).
        col = lax.broadcasted_iota(jnp.int32, (m_rows, Wp, Cp), 1)
        val = jnp.where((col >= 1) & (col <= W), val, 0.0)
        mid_ref[m_lo:m_lo + m_rows, :, :] = val.astype(jnp.bfloat16)

    # Halo rows that fall outside the image must be exact zeros (PyTorch pads
    # conv2's *input* with zeros, not with bn1(conv1(0))).
    @pl.when(t == 0)
    def _():
        mid_ref[0, :, :] = jnp.zeros((Wp, Cp), jnp.bfloat16)

    @pl.when(t == last_t)
    def _():
        mid_ref[TH + 1, :, :] = jnp.zeros((Wp, Cp), jnp.bfloat16)

    # ------------- conv2 -> bn2 -> + identity -> ReLU -> out ----------------
    for (y_lo, y_rows) in _chunks(TH, CH):
        mch = mid_ref[y_lo:y_lo + y_rows + 2, :, :]        # (y_rows+2, Wp, Cp)
        m2d = mch.reshape((y_rows + 2) * Wp, Cp)
        acc = _conv_taps(m2d, w2_ref, y_rows, Wp)          # (y_rows*Wp, Cp) f32
        val = acc * s2_ref[...] + b2_ref[...]
        val = val.reshape(y_rows, Wp, Cp)[:, 0:W, 0:C]     # drop pad cols/lanes
        ident = ident_ref[0, y_lo:y_lo + y_rows, :, :]     # (y_rows, W, C) f32
        out_ref[0, y_lo:y_lo + y_rows, :, :] = jnp.maximum(val + ident, 0.0)


def resblock_pallas(x_nchw, w1_oihw, w2_oihw, bn1, bn2, eps=1e-5):
    """x: (B, C, H, W) f32.  w*: (C, C, 3, 3).  bn* = (gamma, beta, mean, var)."""
    B, C, H, W = x_nchw.shape
    Cp = ((C + 127) // 128) * 128          # channels -> full 128-lane MXU K/N
    Wp = ((W + 4 + 7) // 8) * 8            # 2 halo cols each side, rounded to 8
    TH = _pick_tile_rows(H)                # grid row tile
    nT = H // TH
    CH = max(1, 128 // Wp)                 # ~128 pixels per register-accum matmul

    def fold(bn):
        gamma, beta, mean, var = bn
        scale = gamma / jnp.sqrt(var + eps)
        bias = beta - mean * scale
        return scale.astype(jnp.float32), bias.astype(jnp.float32)

    s1, b1 = fold(bn1)
    s2, b2 = fold(bn2)

    def prep_w(w_oihw):
        w = jnp.transpose(w_oihw, (2, 3, 1, 0)).astype(jnp.float32)   # HWIO
        w = jnp.pad(w, ((0, 0), (0, 0), (0, Cp - C), (0, Cp - C)))
        return w.astype(jnp.bfloat16)

    w1 = prep_w(w1_oihw)
    w2 = prep_w(w2_oihw)

    def prep_v(v):
        return jnp.pad(v, (0, Cp - C)).reshape(1, Cp).astype(jnp.float32)

    s1p, b1p, s2p, b2p = prep_v(s1), prep_v(b1), prep_v(s2), prep_v(b2)

    # NCHW -> NHWC.  bf16 copy with 2-px halo + lane padding, gathered into
    # overlapping row tiles for the matmul path; exact f32 copy kept for the
    # residual (and it is also the shape the unpadded output is compared to).
    x_nhwc = jnp.transpose(x_nchw, (0, 2, 3, 1))                       # f32
    x_pad = jnp.pad(x_nhwc.astype(jnp.bfloat16),
                    ((0, 0), (2, 2), (2, Wp - W - 2), (0, Cp - C)))
    x_tiles = jnp.concatenate(
        [x_pad[:, t * TH:t * TH + TH + 4][:, None] for t in range(nT)], axis=1)
    x_tiles = x_tiles.reshape(B * nT, TH + 4, Wp, Cp)

    kernel = functools.partial(_resblock_kernel,
                               TH=TH, W=W, Wp=Wp, C=C, Cp=Cp, CH=CH)

    # Per-step VMEM: 2x x-tile bf16 (~150 KiB) + 2x2 weight bufs (~1.2 MiB) +
    # mid scratch (~60 KiB) + small out/ident/bias blocks -> well under the
    # default scoped VMEM limit on every generation (incl. v7x's 64 MiB).
    out_nhwc = pl.pallas_call(
        kernel,
        out_shape=jax.ShapeDtypeStruct((B, H, W, C), jnp.float32),
        grid_spec=pltpu.PrefetchScalarGridSpec(
            num_scalar_prefetch=0,
            grid=(B, nT),
            in_specs=[
                pl.BlockSpec((1, TH + 4, Wp, Cp),
                             lambda b, t: (b * nT + t, 0, 0, 0)),
                pl.BlockSpec((3, 3, Cp, Cp), lambda b, t: (0, 0, 0, 0)),
                pl.BlockSpec((3, 3, Cp, Cp), lambda b, t: (0, 0, 0, 0)),
                pl.BlockSpec((1, Cp), lambda b, t: (0, 0)),
                pl.BlockSpec((1, Cp), lambda b, t: (0, 0)),
                pl.BlockSpec((1, Cp), lambda b, t: (0, 0)),
                pl.BlockSpec((1, Cp), lambda b, t: (0, 0)),
                pl.BlockSpec((1, TH, W, C), lambda b, t: (b, t, 0, 0)),
            ],
            out_specs=pl.BlockSpec((1, TH, W, C), lambda b, t: (b, t, 0, 0)),
            scratch_shapes=[
                pltpu.VMEM((TH + 2, Wp, Cp), jnp.bfloat16),   # conv1 out + halo
            ],
        ),
        compiler_params=pltpu.CompilerParams(
            dimension_semantics=("parallel", "parallel")),
    )(x_tiles, w1, w2, s1p, b1p, s2p, b2p, x_nhwc)

    return jnp.transpose(out_nhwc, (0, 3, 1, 2))              # back to NCHW


def resblock_reference(x_nchw, w1_oihw, w2_oihw, bn1, bn2, eps=1e-5):
    """Pure-JAX f32 reference (NCHW convs) for correctness checking."""
    def conv(x, w):
        return jax.lax.conv_general_dilated(
            x, w, window_strides=(1, 1), padding=((1, 1), (1, 1)),
            dimension_numbers=("NCHW", "OIHW", "NCHW"))

    def bn(x, params):
        gamma, beta, mean, var = params
        scale = (gamma / jnp.sqrt(var + eps)).reshape(1, -1, 1, 1)
        bias = (beta - mean * gamma / jnp.sqrt(var + eps)).reshape(1, -1, 1, 1)
        return x * scale + bias

    out = jax.nn.relu(bn(conv(x_nchw, w1_oihw), bn1))
    out = bn(conv(out, w2_oihw), bn2)
    return jax.nn.relu(out + x_nchw)


if __name__ == "__main__":
    B, C, H, W = 2, 4, 16, 16   # inplanes == planes (downsample=None residual)
    key = jax.random.PRNGKey(0)
    kx, kw1, kw2, kg1, kb1, km1, kv1, kg2, kb2, km2, kv2 = jax.random.split(key, 11)

    x = jax.random.normal(kx, (B, C, H, W), dtype=jnp.float32)
    w1 = jax.random.normal(kw1, (C, C, 3, 3), dtype=jnp.float32) * 0.1
    w2 = jax.random.normal(kw2, (C, C, 3, 3), dtype=jnp.float32) * 0.1
    bn1 = (jax.random.normal(kg1, (C,)) * 0.1 + 1.0,
           jax.random.normal(kb1, (C,)) * 0.1,
           jax.random.normal(km1, (C,)) * 0.1,
           jax.nn.softplus(jax.random.normal(kv1, (C,))) + 0.5)
    bn2 = (jax.random.normal(kg2, (C,)) * 0.1 + 1.0,
           jax.random.normal(kb2, (C,)) * 0.1,
           jax.random.normal(km2, (C,)) * 0.1,
           jax.nn.softplus(jax.random.normal(kv2, (C,))) + 0.5)

    out = jax.block_until_ready(resblock_pallas(x, w1, w2, bn1, bn2))
    ref = jax.block_until_ready(resblock_reference(x, w1, w2, bn1, bn2))

    assert out.shape == (B, C, H, W)
    max_err = float(jnp.max(jnp.abs(out - ref)))
    # bf16 matmul inputs (x, w, mid) -> relaxed tolerance vs. the f32 reference.
    assert jnp.allclose(out, ref, atol=5e-2, rtol=5e-2), \
        f"mismatch vs reference (max abs err {max_err})"
    print("KERNEL_OK")
</pallas_src>

<mosaic_0001>
module attributes {stable_mosaic.version = 11 : i64} {
  func.func @_resblock_kernel(%arg0: i32, %arg1: i32, %arg2: memref<1x12x24x128xbf16, #tpu.memory_space<vmem>>, %arg3: memref<3x3x128x128xbf16, #tpu.memory_space<vmem>>, %arg4: memref<3x3x128x128xbf16, #tpu.memory_space<vmem>>, %arg5: memref<1x128xf32, #tpu.memory_space<vmem>>, %arg6: memref<1x128xf32, #tpu.memory_space<vmem>>, %arg7: memref<1x128xf32, #tpu.memory_space<vmem>>, %arg8: memref<1x128xf32, #tpu.memory_space<vmem>>, %arg9: memref<1x8x16x4xf32, #tpu.memory_space<vmem>>, %arg10: memref<1x8x16x4xf32, #tpu.memory_space<vmem>>, %arg11: memref<10x24x128xbf16, #tpu.memory_space<vmem>>) attributes {dimension_semantics = [#tpu.dimension_semantics<parallel>, #tpu.dimension_semantics<parallel>], iteration_bounds = array<i64: 2, 2>, scalar_prefetch = 0 : i64, scratch_operands = 1 : i64, tpu.core_type = #tpu.core_type<tc>, window_params = [{transform_indices = @transform_0, window_bounds = array<i64: 1, 12, 24, 128>}, {pipeline_mode = #tpu.pipeline_mode<synchronous>, transform_indices = @transform_1, window_bounds = array<i64: 3, 3, 128, 128>}, {pipeline_mode = #tpu.pipeline_mode<synchronous>, transform_indices = @transform_2, window_bounds = array<i64: 3, 3, 128, 128>}, {pipeline_mode = #tpu.pipeline_mode<synchronous>, transform_indices = @transform_3, window_bounds = array<i64: 1, 128>}, {pipeline_mode = #tpu.pipeline_mode<synchronous>, transform_indices = @transform_4, window_bounds = array<i64: 1, 128>}, {pipeline_mode = #tpu.pipeline_mode<synchronous>, transform_indices = @transform_5, window_bounds = array<i64: 1, 128>}, {pipeline_mode = #tpu.pipeline_mode<synchronous>, transform_indices = @transform_6, window_bounds = array<i64: 1, 128>}, {transform_indices = @transform_7, window_bounds = array<i64: 1, 8, 16, 4>}, {transform_indices = @transform_8, window_bounds = array<i64: 1, 8, 16, 4>}]} {
    %c0 = arith.constant 0 : index
    %c0_0 = arith.constant 0 : index
    %c0_1 = arith.constant 0 : index
    %c0_2 = arith.constant 0 : index
    %0 = vector.load %arg2[%c0, %c0_0, %c0_1, %c0_2] : memref<1x12x24x128xbf16, #tpu.memory_space<vmem>>, vector<1x7x24x128xbf16>
    %1 = vector.shape_cast %0 : vector<1x7x24x128xbf16> to vector<7x24x128xbf16>
    %2 = vector.shape_cast %1 : vector<7x24x128xbf16> to vector<168x128xbf16>
    %3 = vector.extract_strided_slice %2 {offsets = [0, 0], sizes = [120, 128], strides = [1, 1]} : vector<168x128xbf16> to vector<120x128xbf16>
    %c0_3 = arith.constant 0 : index
    %c0_4 = arith.constant 0 : index
    %c0_5 = arith.constant 0 : index
    %c0_6 = arith.constant 0 : index
    %4 = vector.load %arg3[%c0_3, %c0_4, %c0_5, %c0_6] : memref<3x3x128x128xbf16, #tpu.memory_space<vmem>>, vector<1x1x128x128xbf16>
    %5 = vector.shape_cast %4 : vector<1x1x128x128xbf16> to vector<128x128xbf16>
    %cst = arith.constant dense<0.000000e+00> : vector<120x128xf32>
    %6 = tpu.matmul %3, %5, %cst {dimension_numbers = #tpu.dot_dimension_numbers<[1], [0], [0], [1], [0, 0, 1, 1], [], []>} : vector<120x128xbf16>, vector<128x128xbf16>, vector<120x128xf32> -> vector<120x128xf32>
    %7 = vector.extract_strided_slice %2 {offsets = [1, 0], sizes = [120, 128], strides = [1, 1]} : vector<168x128xbf16> to vector<120x128xbf16>
    %c0_7 = arith.constant 0 : index
    %c1 = arith.constant 1 : index
    %c0_8 = arith.constant 0 : index
    %c0_9 = arith.constant 0 : index
    %8 = vector.load %arg3[%c0_7, %c1, %c0_8, %c0_9] : memref<3x3x128x128xbf16, #tpu.memory_space<vmem>>, vector<1x1x128x128xbf16>
    %9 = vector.shape_cast %8 : vector<1x1x128x128xbf16> to vector<128x128xbf16>
    %cst_10 = arith.constant dense<0.000000e+00> : vector<120x128xf32>
    %10 = tpu.matmul %7, %9, %cst_10 {dimension_numbers = #tpu.dot_dimension_numbers<[1], [0], [0], [1], [0, 0, 1, 1], [], []>} : vector<120x128xbf16>, vector<128x128xbf16>, vector<120x128xf32> -> vector<120x128xf32>
    %11 = arith.addf %6, %10 : vector<120x128xf32>
    %12 = vector.extract_strided_slice %2 {offsets = [2, 0], sizes = [120, 128], strides = [1, 1]} : vector<168x128xbf16> to vector<120x128xbf16>
    %c0_11 = arith.constant 0 : index
    %c2 = arith.constant 2 : index
    %c0_12 = arith.constant 0 : index
    %c0_13 = arith.constant 0 : index
    %13 = vector.load %arg3[%c0_11, %c2, %c0_12, %c0_13] : memref<3x3x128x128xbf16, #tpu.memory_space<vmem>>, vector<1x1x128x128xbf16>
    %14 = vector.shape_cast %13 : vector<1x1x128x128xbf16> to vector<128x128xbf16>
    %cst_14 = arith.constant dense<0.000000e+00> : vector<120x128xf32>
    %15 = tpu.matmul %12, %14, %cst_14 {dimension_numbers = #tpu.dot_dimension_numbers<[1], [0], [0], [1], [0, 0, 1, 1], [], []>} : vector<120x128xbf16>, vector<128x128xbf16>, vector<120x128xf32> -> vector<120x128xf32>
    %16 = arith.addf %11, %15 : vector<120x128xf32>
    %17 = vector.extract_strided_slice %2 {offsets = [24, 0], sizes = [120, 128], strides = [1, 1]} : vector<168x128xbf16> to vector<120x128xbf16>
    %c1_15 = arith.constant 1 : index
    %c0_16 = arith.constant 0 : index
    %c0_17 = arith.constant 0 : index
    %c0_18 = arith.constant 0 : index
    %18 = vector.load %arg3[%c1_15, %c0_16, %c0_17, %c0_18] : memref<3x3x128x128xbf16, #tpu.memory_space<vmem>>, vector<1x1x128x128xbf16>
    %19 = vector.shape_cast %18 : vector<1x1x128x128xbf16> to vector<128x128xbf16>
    %cst_19 = arith.constant dense<0.000000e+00> : vector<120x128xf32>
    %20 = tpu.matmul %17, %19, %cst_19 {dimension_numbers = #tpu.dot_dimension_numbers<[1], [0], [0], [1], [0, 0, 1, 1], [], []>} : vector<120x128xbf16>, vector<128x128xbf16>, vector<120x128xf32> -> vector<120x128xf32>
    %21 = arith.addf %16, %20 : vector<120x128xf32>
    %22 = vector.extract_strided_slice %2 {offsets = [25, 0], sizes = [120, 128], strides = [1, 1]} : vector<168x128xbf16> to vector<120x128xbf16>
    %c1_20 = arith.constant 1 : index
    %c1_21 = arith.constant 1 : index
    %c0_22 = arith.constant 0 : index
    %c0_23 = arith.constant 0 : index
    %23 = vector.load %arg3[%c1_20, %c1_21, %c0_22, %c0_23] : memref<3x3x128x128xbf16, #tpu.memory_space<vmem>>, vector<1x1x128x128xbf16>
    %24 = vector.shape_cast %23 : vector<1x1x128x128xbf16> to vector<128x128xbf16>
    %cst_24 = arith.constant dense<0.000000e+00> : vector<120x128xf32>
    %25 = tpu.matmul %22, %24, %cst_24 {dimension_numbers = #tpu.dot_dimension_numbers<[1], [0], [0], [1], [0, 0, 1, 1], [], []>} : vector<120x128xbf16>, vector<128x128xbf16>, vector<120x128xf32> -> vector<120x128xf32>
    %26 = arith.addf %21, %25 : vector<120x128xf32>
    %27 = vector.extract_strided_slice %2 {offsets = [26, 0], sizes = [120, 128], strides = [1, 1]} : vector<168x128xbf16> to vector<120x128xbf16>
    %c1_25 = arith.constant 1 : index
    %c2_26 = arith.constant 2 : index
    %c0_27 = arith.constant 0 : index
    %c0_28 = arith.constant 0 : index
    %28 = vector.load %arg3[%c1_25, %c2_26, %c0_27, %c0_28] : memref<3x3x128x128xbf16, #tpu.memory_space<vmem>>, vector<1x1x128x128xbf16>
    %29 = vector.shape_cast %28 : vector<1x1x128x128xbf16> to vector<128x128xbf16>
    %cst_29 = arith.constant dense<0.000000e+00> : vector<120x128xf32>
    %30 = tpu.matmul %27, %29, %cst_29 {dimension_numbers = #tpu.dot_dimension_numbers<[1], [0], [0], [1], [0, 0, 1, 1], [], []>} : vector<120x128xbf16>, vector<128x128xbf16>, vector<120x128xf32> -> vector<120x128xf32>
    %31 = arith.addf %26, %30 : vector<120x128xf32>
    %32 = vector.extract_strided_slice %2 {offsets = [48, 0], sizes = [120, 128], strides = [1, 1]} : vector<168x128xbf16> to vector<120x128xbf16>
    %c2_30 = arith.constant 2 : index
    %c0_31 = arith.constant 0 : index
    %c0_32 = arith.constant 0 : index
    %c0_33 = arith.constant 0 : index
    %33 = vector.load %arg3[%c2_30, %c0_31, %c0_32, %c0_33] : memref<3x3x128x128xbf16, #tpu.memory_space<vmem>>, vector<1x1x128x128xbf16>
    %34 = vector.shape_cast %33 : vector<1x1x128x128xbf16> to vector<128x128xbf16>
    %cst_34 = arith.constant dense<0.000000e+00> : vector<120x128xf32>
    %35 = tpu.matmul %32, %34, %cst_34 {dimension_numbers = #tpu.dot_dimension_numbers<[1], [0], [0], [1], [0, 0, 1, 1], [], []>} : vector<120x128xbf16>, vector<128x128xbf16>, vector<120x128xf32> -> vector<120x128xf32>
    %36 = arith.addf %31, %35 : vector<120x128xf32>
    %37 = vector.extract_strided_slice %2 {offsets = [49, 0], sizes = [119, 128], strides = [1, 1]} : vector<168x128xbf16> to vector<119x128xbf16>
    %cst_35 = arith.constant 0.000000e+00 : bf16
    %38 = vector.broadcast %cst_35 : bf16 to vector<1x128xbf16>
    %39 = tpu.concatenate %37, %38 in 0 : vector<119x128xbf16>, vector<1x128xbf16> -> vector<120x128xbf16>
    %c2_36 = arith.constant 2 : index
    %c1_37 = arith.constant 1 : index
    %c0_38 = arith.constant 0 : index
    %c0_39 = arith.constant 0 : index
    %40 = vector.load %arg3[%c2_36, %c1_37, %c0_38, %c0_39] : memref<3x3x128x128xbf16, #tpu.memory_space<vmem>>, vector<1x1x128x128xbf16>
    %41 = vector.shape_cast %40 : vector<1x1x128x128xbf16> to vector<128x128xbf16>
    %cst_40 = arith.constant dense<0.000000e+00> : vector<120x128xf32>
    %42 = tpu.matmul %39, %41, %cst_40 {dimension_numbers = #tpu.dot_dimension_numbers<[1], [0], [0], [1], [0, 0, 1, 1], [], []>} : vector<120x128xbf16>, vector<128x128xbf16>, vector<120x128xf32> -> vector<120x128xf32>
    %43 = arith.addf %36, %42 : vector<120x128xf32>
    %44 = vector.extract_strided_slice %2 {offsets = [50, 0], sizes = [118, 128], strides = [1, 1]} : vector<168x128xbf16> to vector<118x128xbf16>
    %cst_41 = arith.constant 0.000000e+00 : bf16
    %45 = vector.broadcast %cst_41 : bf16 to vector<2x128xbf16>
    %46 = tpu.concatenate %44, %45 in 0 : vector<118x128xbf16>, vector<2x128xbf16> -> vector<120x128xbf16>
    %c2_42 = arith.constant 2 : index
    %c2_43 = arith.constant 2 : index
    %c0_44 = arith.constant 0 : index
    %c0_45 = arith.constant 0 : index
    %47 = vector.load %arg3[%c2_42, %c2_43, %c0_44, %c0_45] : memref<3x3x128x128xbf16, #tpu.memory_space<vmem>>, vector<1x1x128x128xbf16>
    %48 = vector.shape_cast %47 : vector<1x1x128x128xbf16> to vector<128x128xbf16>
    %cst_46 = arith.constant dense<0.000000e+00> : vector<120x128xf32>
    %49 = tpu.matmul %46, %48, %cst_46 {dimension_numbers = #tpu.dot_dimension_numbers<[1], [0], [0], [1], [0, 0, 1, 1], [], []>} : vector<120x128xbf16>, vector<128x128xbf16>, vector<120x128xf32> -> vector<120x128xf32>
    %50 = arith.addf %43, %49 : vector<120x128xf32>
    %c0_47 = arith.constant 0 : index
    %c0_48 = arith.constant 0 : index
    %51 = vector.load %arg5[%c0_47, %c0_48] : memref<1x128xf32, #tpu.memory_space<vmem>>, vector<1x128xf32>
    %52 = vector.broadcast %51 : vector<1x128xf32> to vector<120x128xf32>
    %53 = arith.mulf %50, %52 : vector<120x128xf32>
    %c0_49 = arith.constant 0 : index
    %c0_50 = arith.constant 0 : index
    %54 = vector.load %arg6[%c0_49, %c0_50] : memref<1x128xf32, #tpu.memory_space<vmem>>, vector<1x128xf32>
    %55 = vector.broadcast %54 : vector<1x128xf32> to vector<120x128xf32>
    %56 = arith.addf %53, %55 : vector<120x128xf32>
    %cst_51 = arith.constant 0.000000e+00 : f32
    %57 = vector.broadcast %cst_51 : f32 to vector<120x128xf32>
    %58 = arith.maximumf %56, %57 : vector<120x128xf32>
    %59 = vector.shape_cast %58 : vector<120x128xf32> to vector<5x24x128xf32>
    %60 = tpu.iota {dimensions = array<i32: 1>} : vector<5x24x128xi32>
    %c1_i32 = arith.constant 1 : i32
    %61 = vector.broadcast %c1_i32 : i32 to vector<5x24x128xi32>
    %62 = arith.cmpi sge, %60, %61 : vector<5x24x128xi32>
    %c16_i32 = arith.constant 16 : i32
    %63 = vector.broadcast %c16_i32 : i32 to vector<5x24x128xi32>
    %64 = arith.cmpi sle, %60, %63 : vector<5x24x128xi32>
    %65 = arith.andi %62, %64 : vector<5x24x128xi1>
    %cst_52 = arith.constant 0.000000e+00 : f32
    %66 = vector.broadcast %cst_52 : f32 to vector<5x24x128xf32>
    %67 = arith.select %65, %59, %66 : vector<5x24x128xi1>, vector<5x24x128xf32>
    %68 = arith.truncf %67 : vector<5x24x128xf32> to vector<5x24x128xbf16>
    %c0_53 = arith.constant 0 : index
    %c0_54 = arith.constant 0 : index
    %c0_55 = arith.constant 0 : index
    %69 = vector.load %arg11[%c0_53, %c0_54, %c0_55] : memref<10x24x128xbf16, #tpu.memory_space<vmem>>, vector<5x24x128xbf16>
    tpu.vector_store %arg11[%c0_53, %c0_54, %c0_55], %68 {strides = array<i32>} : memref<10x24x128xbf16, #tpu.memory_space<vmem>>, vector<5x24x128xbf16>,
    %c0_56 = arith.constant 0 : index
    %c5 = arith.constant 5 : index
    %c0_57 = arith.constant 0 : index
    %c0_58 = arith.constant 0 : index
    %70 = vector.load %arg2[%c0_56, %c5, %c0_57, %c0_58] : memref<1x12x24x128xbf16, #tpu.memory_space<vmem>>, vector<1x7x24x128xbf16>
    %71 = vector.shape_cast %70 : vector<1x7x24x128xbf16> to vector<7x24x128xbf16>
    %72 = vector.shape_cast %71 : vector<7x24x128xbf16> to vector<168x128xbf16>
    %73 = vector.extract_strided_slice %72 {offsets = [0, 0], sizes = [120, 128], strides = [1, 1]} : vector<168x128xbf16> to vector<120x128xbf16>
    %c0_59 = arith.constant 0 : index
    %c0_60 = arith.constant 0 : index
    %c0_61 = arith.constant 0 : index
    %c0_62 = arith.constant 0 : index
    %74 = vector.load %arg3[%c0_59, %c0_60, %c0_61, %c0_62] : memref<3x3x128x128xbf16, #tpu.memory_space<vmem>>, vector<1x1x128x128xbf16>
    %75 = vector.shape_cast %74 : vector<1x1x128x128xbf16> to vector<128x128xbf16>
    %cst_63 = arith.constant dense<0.000000e+00> : vector<120x128xf32>
    %76 = tpu.matmul %73, %75, %cst_63 {dimension_numbers = #tpu.dot_dimension_numbers<[1], [0], [0], [1], [0, 0, 1, 1], [], []>} : vector<120x128xbf16>, vector<128x128xbf16>, vector<120x128xf32> -> vector<120x128xf32>
    %77 = vector.extract_strided_slice %72 {offsets = [1, 0], sizes = [120, 128], strides = [1, 1]} : vector<168x128xbf16> to vector<120x128xbf16>
    %c0_64 = arith.constant 0 : index
    %c1_65 = arith.constant 1 : index
    %c0_66 = arith.constant 0 : index
    %c0_67 = arith.constant 0 : index
    %78 = vector.load %arg3[%c0_64, %c1_65, %c0_66, %c0_67] : memref<3x3x128x128xbf16, #tpu.memory_space<vmem>>, vector<1x1x128x128xbf16>
    %79 = vector.shape_cast %78 : vector<1x1x128x128xbf16> to vector<128x128xbf16>
    %cst_68 = arith.constant dense<0.000000e+00> : vector<120x128xf32>
    %80 = tpu.matmul %77, %79, %cst_68 {dimension_numbers = #tpu.dot_dimension_numbers<[1], [0], [0], [1], [0, 0, 1, 1], [], []>} : vector<120x128xbf16>, vector<128x128xbf16>, vector<120x128xf32> -> vector<120x128xf32>
    %81 = arith.addf %76, %80 : vector<120x128xf32>
    %82 = vector.extract_strided_slice %72 {offsets = [2, 0], sizes = [120, 128], strides = [1, 1]} : vector<168x128xbf16> to vector<120x128xbf16>
    %c0_69 = arith.constant 0 : index
    %c2_70 = arith.constant 2 : index
    %c0_71 = arith.constant 0 : index
    %c0_72 = arith.constant 0 : index
    %83 = vector.load %arg3[%c0_69, %c2_70, %c0_71, %c0_72] : memref<3x3x128x128xbf16, #tpu.memory_space<vmem>>, vector<1x1x128x128xbf16>
    %84 = vector.shape_cast %83 : vector<1x1x128x128xbf16> to vector<128x128xbf16>
    %cst_73 = arith.constant dense<0.000000e+00> : vector<120x128xf32>
    %85 = tpu.matmul %82, %84, %cst_73 {dimension_numbers = #tpu.dot_dimension_numbers<[1], [0], [0], [1], [0, 0, 1, 1], [], []>} : vector<120x128xbf16>, vector<128x128xbf16>, vector<120x128xf32> -> vector<120x128xf32>
    %86 = arith.addf %81, %85 : vector<120x128xf32>
    %87 = vector.extract_strided_slice %72 {offsets = [24, 0], sizes = [120, 128], strides = [1, 1]} : vector<168x128xbf16> to vector<120x128xbf16>
    %c1_74 = arith.constant 1 : index
    %c0_75 = arith.constant 0 : index
    %c0_76 = arith.constant 0 : index
    %c0_77 = arith.constant 0 : index
    %88 = vector.load %arg3[%c1_74, %c0_75, %c0_76, %c0_77] : memref<3x3x128x128xbf16, #tpu.memory_space<vmem>>, vector<1x1x128x128xbf16>
    %89 = vector.shape_cast %88 : vector<1x1x128x128xbf16> to vector<128x128xbf16>
    %cst_78 = arith.constant dense<0.000000e+00> : vector<120x128xf32>
    %90 = tpu.matmul %87, %89, %cst_78 {dimension_numbers = #tpu.dot_dimension_numbers<[1], [0], [0], [1], [0, 0, 1, 1], [], []>} : vector<120x128xbf16>, vector<128x128xbf16>, vector<120x128xf32> -> vector<120x128xf32>
    %91 = arith.addf %86, %90 : vector<120x128xf32>
    %92 = vector.extract_strided_slice %72 {offsets = [25, 0], sizes = [120, 128], strides = [1, 1]} : vector<168x128xbf16> to vector<120x128xbf16>
    %c1_79 = arith.constant 1 : index
    %c1_80 = arith.constant 1 : index
    %c0_81 = arith.constant 0 : index
    %c0_82 = arith.constant 0 : index
    %93 = vector.load %arg3[%c1_79, %c1_80, %c0_81, %c0_82] : memref<3x3x128x128xbf16, #tpu.memory_space<vmem>>, vector<1x1x128x128xbf16>
    %94 = vector.shape_cast %93 : vector<1x1x128x128xbf16> to vector<128x128xbf16>
    %cst_83 = arith.constant dense<0.000000e+00> : vector<120x128xf32>
    %95 = tpu.matmul %92, %94, %cst_83 {dimension_numbers = #tpu.dot_dimension_numbers<[1], [0], [0], [1], [0, 0, 1, 1], [], []>} : vector<120x128xbf16>, vector<128x128xbf16>, vector<120x128xf32> -> vector<120x128xf32>
    %96 = arith.addf %91, %95 : vector<120x128xf32>
    %97 = vector.extract_strided_slice %72 {offsets = [26, 0], sizes = [120, 128], strides = [1, 1]} : vector<168x128xbf16> to vector<120x128xbf16>
    %c1_84 = arith.constant 1 : index
    %c2_85 = arith.constant 2 : index
    %c0_86 = arith.constant 0 : index
    %c0_87 = arith.constant 0 : index
    %98 = vector.load %arg3[%c1_84, %c2_85, %c0_86, %c0_87] : memref<3x3x128x128xbf16, #tpu.memory_space<vmem>>, vector<1x1x128x128xbf16>
    %99 = vector.shape_cast %98 : vector<1x1x128x128xbf16> to vector<128x128xbf16>
    %cst_88 = arith.constant dense<0.000000e+00> : vector<120x128xf32>
    %100 = tpu.matmul %97, %99, %cst_88 {dimension_numbers = #tpu.dot_dimension_numbers<[1], [0], [0], [1], [0, 0, 1, 1], [], []>} : vector<120x128xbf16>, vector<128x128xbf16>, vector<120x128xf32> -> vector<120x128xf32>
    %101 = arith.addf %96, %100 : vector<120x128xf32>
    %102 = vector.extract_strided_slice %72 {offsets = [48, 0], sizes = [120, 128], strides = [1, 1]} : vector<168x128xbf16> to vector<120x128xbf16>
    %c2_89 = arith.constant 2 : index
    %c0_90 = arith.constant 0 : index
    %c0_91 = arith.constant 0 : index
    %c0_92 = arith.constant 0 : index
    %103 = vector.load %arg3[%c2_89, %c0_90, %c0_91, %c0_92] : memref<3x3x128x128xbf16, #tpu.memory_space<vmem>>, vector<1x1x128x128xbf16>
    %104 = vector.shape_cast %103 : vector<1x1x128x128xbf16> to vector<128x128xbf16>
    %cst_93 = arith.constant dense<0.000000e+00> : vector<120x128xf32>
    %105 = tpu.matmul %102, %104, %cst_93 {dimension_numbers = #tpu.dot_dimension_numbers<[1], [0], [0], [1], [0, 0, 1, 1], [], []>} : vector<120x128xbf16>, vector<128x128xbf16>, vector<120x128xf32> -> vector<120x128xf32>
    %106 = arith.addf %101, %105 : vector<120x128xf32>
    %107 = vector.extract_strided_slice %72 {offsets = [49, 0], sizes = [119, 128], strides = [1, 1]} : vector<168x128xbf16> to vector<119x128xbf16>
    %cst_94 = arith.constant 0.000000e+00 : bf16
    %108 = vector.broadcast %cst_94 : bf16 to vector<1x128xbf16>
    %109 = tpu.concatenate %107, %108 in 0 : vector<119x128xbf16>, vector<1x128xbf16> -> vector<120x128xbf16>
    %c2_95 = arith.constant 2 : index
    %c1_96 = arith.constant 1 : index
    %c0_97 = arith.constant 0 : index
    %c0_98 = arith.constant 0 : index
    %110 = vector.load %arg3[%c2_95, %c1_96, %c0_97, %c0_98] : memref<3x3x128x128xbf16, #tpu.memory_space<vmem>>, vector<1x1x128x128xbf16>
    %111 = vector.shape_cast %110 : vector<1x1x128x128xbf16> to vector<128x128xbf16>
    %cst_99 = arith.constant dense<0.000000e+00> : vector<120x128xf32>
    %112 = tpu.matmul %109, %111, %cst_99 {dimension_numbers = #tpu.dot_dimension_numbers<[1], [0], [0], [1], [0, 0, 1, 1], [], []>} : vector<120x128xbf16>, vector<128x128xbf16>, vector<120x128xf32> -> vector<120x128xf32>
    %113 = arith.addf %106, %112 : vector<120x128xf32>
    %114 = vector.extract_strided_slice %72 {offsets = [50, 0], sizes = [118, 128], strides = [1, 1]} : vector<168x128xbf16> to vector<118x128xbf16>
    %cst_100 = arith.constant 0.000000e+00 : bf16
    %115 = vector.broadcast %cst_100 : bf16 to vector<2x128xbf16>
    %116 = tpu.concatenate %114, %115 in 0 : vector<118x128xbf16>, vector<2x128xbf16> -> vector<120x128xbf16>
    %c2_101 = arith.constant 2 : index
    %c2_102 = arith.constant 2 : index
    %c0_103 = arith.constant 0 : index
    %c0_104 = arith.constant 0 : index
    %117 = vector.load %arg3[%c2_101, %c2_102, %c0_103, %c0_104] : memref<3x3x128x128xbf16, #tpu.memory_space<vmem>>, vector<1x1x128x128xbf16>
    %118 = vector.shape_cast %117 : vector<1x1x128x128xbf16> to vector<128x128xbf16>
    %cst_105 = arith.constant dense<0.000000e+00> : vector<120x128xf32>
    %119 = tpu.matmul %116, %118, %cst_105 {dimension_numbers = #tpu.dot_dimension_numbers<[1], [0], [0], [1], [0, 0, 1, 1], [], []>} : vector<120x128xbf16>, vector<128x128xbf16>, vector<120x128xf32> -> vector<120x128xf32>
    %120 = arith.addf %113, %119 : vector<120x128xf32>
    %c0_106 = arith.constant 0 : index
    %c0_107 = arith.constant 0 : index
    %121 = vector.load %arg5[%c0_106, %c0_107] : memref<1x128xf32, #tpu.memory_space<vmem>>, vector<1x128xf32>
    %122 = vector.broadcast %121 : vector<1x128xf32> to vector<120x128xf32>
    %123 = arith.mulf %120, %122 : vector<120x128xf32>
    %c0_108 = arith.constant 0 : index
    %c0_109 = arith.constant 0 : index
    %124 = vector.load %arg6[%c0_108, %c0_109] : memref<1x128xf32, #tpu.memory_space<vmem>>, vector<1x128xf32>
    %125 = vector.broadcast %124 : vector<1x128xf32> to vector<120x128xf32>
    %126 = arith.addf %123, %125 : vector<120x128xf32>
    %cst_110 = arith.constant 0.000000e+00 : f32
    %127 = vector.broadcast %cst_110 : f32 to vector<120x128xf32>
    %128 = arith.maximumf %126, %127 : vector<120x128xf32>
    %129 = vector.shape_cast %128 : vector<120x128xf32> to vector<5x24x128xf32>
    %130 = tpu.iota {dimensions = array<i32: 1>} : vector<5x24x128xi32>
    %c1_i32_111 = arith.constant 1 : i32
    %131 = vector.broadcast %c1_i32_111 : i32 to vector<5x24x128xi32>
    %132 = arith.cmpi sge, %130, %131 : vector<5x24x128xi32>
    %c16_i32_112 = arith.constant 16 : i32
    %133 = vector.broadcast %c16_i32_112 : i32 to vector<5x24x128xi32>
    %134 = arith.cmpi sle, %130, %133 : vector<5x24x128xi32>
    %135 = arith.andi %132, %134 : vector<5x24x128xi1>
    %cst_113 = arith.constant 0.000000e+00 : f32
    %136 = vector.broadcast %cst_113 : f32 to vector<5x24x128xf32>
    %137 = arith.select %135, %129, %136 : vector<5x24x128xi1>, vector<5x24x128xf32>
    %138 = arith.truncf %137 : vector<5x24x128xf32> to vector<5x24x128xbf16>
    %c5_114 = arith.constant 5 : index
    %c0_115 = arith.constant 0 : index
    %c0_116 = arith.constant 0 : index
    %139 = vector.load %arg11[%c5_114, %c0_115, %c0_116] : memref<10x24x128xbf16, #tpu.memory_space<vmem>>, vector<5x24x128xbf16>
    tpu.vector_store %arg11[%c5_114, %c0_115, %c0_116], %138 {strides = array<i32>} : memref<10x24x128xbf16, #tpu.memory_space<vmem>>, vector<5x24x128xbf16>,
    %c0_i32 = arith.constant 0 : i32
    %140 = arith.cmpi eq, %arg1, %c0_i32 : i32
    %141 = arith.extui %140 : i1 to i32
    %c0_i32_117 = arith.constant 0 : i32
    %142 = arith.cmpi ne, %141, %c0_i32_117 : i32
    scf.if %142 {
      %cst_246 = arith.constant 0.000000e+00 : bf16
      %278 = vector.broadcast %cst_246 : bf16 to vector<24x128xbf16>
      %c0_247 = arith.constant 0 : index
      %c0_248 = arith.constant 0 : index
      %c0_249 = arith.constant 0 : index
      %279 = vector.load %arg11[%c0_247, %c0_248, %c0_249] : memref<10x24x128xbf16, #tpu.memory_space<vmem>>, vector<1x24x128xbf16>
      %280 = vector.shape_cast %279 : vector<1x24x128xbf16> to vector<24x128xbf16>
      %281 = vector.shape_cast %278 : vector<24x128xbf16> to vector<1x24x128xbf16>
      tpu.vector_store %arg11[%c0_247, %c0_248, %c0_249], %281 {strides = array<i32>} : memref<10x24x128xbf16, #tpu.memory_space<vmem>>, vector<1x24x128xbf16>,
    } else {
    }
    %c1_i32_118 = arith.constant 1 : i32
    %143 = arith.cmpi eq, %arg1, %c1_i32_118 : i32
    %144 = arith.extui %143 : i1 to i32
    %c0_i32_119 = arith.constant 0 : i32
    %145 = arith.cmpi ne, %144, %c0_i32_119 : i32
    scf.if %145 {
      %cst_246 = arith.constant 0.000000e+00 : bf16
      %278 = vector.broadcast %cst_246 : bf16 to vector<24x128xbf16>
      %c9 = arith.constant 9 : index
      %c0_247 = arith.constant 0 : index
      %c0_248 = arith.constant 0 : index
      %279 = vector.load %arg11[%c9, %c0_247, %c0_248] : memref<10x24x128xbf16, #tpu.memory_space<vmem>>, vector<1x24x128xbf16>
      %280 = vector.shape_cast %279 : vector<1x24x128xbf16> to vector<24x128xbf16>
      %281 = vector.shape_cast %278 : vector<24x128xbf16> to vector<1x24x128xbf16>
      tpu.vector_store %arg11[%c9, %c0_247, %c0_248], %281 {strides = array<i32>} : memref<10x24x128xbf16, #tpu.memory_space<vmem>>, vector<1x24x128xbf16>,
    } else {
    }
    %c0_120 = arith.constant 0 : index
    %c0_121 = arith.constant 0 : index
    %c0_122 = arith.constant 0 : index
    %146 = vector.load %arg11[%c0_120, %c0_121, %c0_122] : memref<10x24x128xbf16, #tpu.memory_space<vmem>>, vector<7x24x128xbf16>
    %147 = vector.shape_cast %146 : vector<7x24x128xbf16> to vector<168x128xbf16>
    %148 = vector.extract_strided_slice %147 {offsets = [0, 0], sizes = [120, 128], strides = [1, 1]} : vector<168x128xbf16> to vector<120x128xbf16>
    %c0_123 = arith.constant 0 : index
    %c0_124 = arith.constant 0 : index
    %c0_125 = arith.constant 0 : index
    %c0_126 = arith.constant 0 : index
    %149 = vector.load %arg4[%c0_123, %c0_124, %c0_125, %c0_126] : memref<3x3x128x128xbf16, #tpu.memory_space<vmem>>, vector<1x1x128x128xbf16>
    %150 = vector.shape_cast %149 : vector<1x1x128x128xbf16> to vector<128x128xbf16>
    %cst_127 = arith.constant dense<0.000000e+00> : vector<120x128xf32>
    %151 = tpu.matmul %148, %150, %cst_127 {dimension_numbers = #tpu.dot_dimension_numbers<[1], [0], [0], [1], [0, 0, 1, 1], [], []>} : vector<120x128xbf16>, vector<128x128xbf16>, vector<120x128xf32> -> vector<120x128xf32>
    %152 = vector.extract_strided_slice %147 {offsets = [1, 0], sizes = [120, 128], strides = [1, 1]} : vector<168x128xbf16> to vector<120x128xbf16>
    %c0_128 = arith.constant 0 : index
    %c1_129 = arith.constant 1 : index
    %c0_130 = arith.constant 0 : index
    %c0_131 = arith.constant 0 : index
    %153 = vector.load %arg4[%c0_128, %c1_129, %c0_130, %c0_131] : memref<3x3x128x128xbf16, #tpu.memory_space<vmem>>, vector<1x1x128x128xbf16>
    %154 = vector.shape_cast %153 : vector<1x1x128x128xbf16> to vector<128x128xbf16>
    %cst_132 = arith.constant dense<0.000000e+00> : vector<120x128xf32>
    %155 = tpu.matmul %152, %154, %cst_132 {dimension_numbers = #tpu.dot_dimension_numbers<[1], [0], [0], [1], [0, 0, 1, 1], [], []>} : vector<120x128xbf16>, vector<128x128xbf16>, vector<120x128xf32> -> vector<120x128xf32>
    %156 = arith.addf %151, %155 : vector<120x128xf32>
    %157 = vector.extract_strided_slice %147 {offsets = [2, 0], sizes = [120, 128], strides = [1, 1]} : vector<168x128xbf16> to vector<120x128xbf16>
    %c0_133 = arith.constant 0 : index
    %c2_134 = arith.constant 2 : index
    %c0_135 = arith.constant 0 : index
    %c0_136 = arith.constant 0 : index
    %158 = vector.load %arg4[%c0_133, %c2_134, %c0_135, %c0_136] : memref<3x3x128x128xbf16, #tpu.memory_space<vmem>>, vector<1x1x128x128xbf16>
    %159 = vector.shape_cast %158 : vector<1x1x128x128xbf16> to vector<128x128xbf16>
    %cst_137 = arith.constant dense<0.000000e+00> : vector<120x128xf32>
    %160 = tpu.matmul %157, %159, %cst_137 {dimension_numbers = #tpu.dot_dimension_numbers<[1], [0], [0], [1], [0, 0, 1, 1], [], []>} : vector<120x128xbf16>, vector<128x128xbf16>, vector<120x128xf32> -> vector<120x128xf32>
    %161 = arith.addf %156, %160 : vector<120x128xf32>
    %162 = vector.extract_strided_slice %147 {offsets = [24, 0], sizes = [120, 128], strides = [1, 1]} : vector<168x128xbf16> to vector<120x128xbf16>
    %c1_138 = arith.constant 1 : index
    %c0_139 = arith.constant 0 : index
    %c0_140 = arith.constant 0 : index
    %c0_141 = arith.constant 0 : index
    %163 = vector.load %arg4[%c1_138, %c0_139, %c0_140, %c0_141] : memref<3x3x128x128xbf16, #tpu.memory_space<vmem>>, vector<1x1x128x128xbf16>
    %164 = vector.shape_cast %163 : vector<1x1x128x128xbf16> to vector<128x128xbf16>
    %cst_142 = arith.constant dense<0.000000e+00> : vector<120x128xf32>
    %165 = tpu.matmul %162, %164, %cst_142 {dimension_numbers = #tpu.dot_dimension_numbers<[1], [0], [0], [1], [0, 0, 1, 1], [], []>} : vector<120x128xbf16>, vector<128x128xbf16>, vector<120x128xf32> -> vector<120x128xf32>
    %166 = arith.addf %161, %165 : vector<120x128xf32>
    %167 = vector.extract_strided_slice %147 {offsets = [25, 0], sizes = [120, 128], strides = [1, 1]} : vector<168x128xbf16> to vector<120x128xbf16>
    %c1_143 = arith.constant 1 : index
    %c1_144 = arith.constant 1 : index
    %c0_145 = arith.constant 0 : index
    %c0_146 = arith.constant 0 : index
    %168 = vector.load %arg4[%c1_143, %c1_144, %c0_145, %c0_146] : memref<3x3x128x128xbf16, #tpu.memory_space<vmem>>, vector<1x1x128x128xbf16>
    %169 = vector.shape_cast %168 : vector<1x1x128x128xbf16> to vector<128x128xbf16>
    %cst_147 = arith.constant dense<0.000000e+00> : vector<120x128xf32>
    %170 = tpu.matmul %167, %169, %cst_147 {dimension_numbers = #tpu.dot_dimension_numbers<[1], [0], [0], [1], [0, 0, 1, 1], [], []>} : vector<120x128xbf16>, vector<128x128xbf16>, vector<120x128xf32> -> vector<120x128xf32>
    %171 = arith.addf %166, %170 : vector<120x128xf32>
    %172 = vector.extract_strided_slice %147 {offsets = [26, 0], sizes = [120, 128], strides = [1, 1]} : vector<168x128xbf16> to vector<120x128xbf16>
    %c1_148 = arith.constant 1 : index
    %c2_149 = arith.constant 2 : index
    %c0_150 = arith.constant 0 : index
    %c0_151 = arith.constant 0 : index
    %173 = vector.load %arg4[%c1_148, %c2_149, %c0_150, %c0_151] : memref<3x3x128x128xbf16, #tpu.memory_space<vmem>>, vector<1x1x128x128xbf16>
    %174 = vector.shape_cast %173 : vector<1x1x128x128xbf16> to vector<128x128xbf16>
    %cst_152 = arith.constant dense<0.000000e+00> : vector<120x128xf32>
    %175 = tpu.matmul %172, %174, %cst_152 {dimension_numbers = #tpu.dot_dimension_numbers<[1], [0], [0], [1], [0, 0, 1, 1], [], []>} : vector<120x128xbf16>, vector<128x128xbf16>, vector<120x128xf32> -> vector<120x128xf32>
    %176 = arith.addf %171, %175 : vector<120x128xf32>
    %177 = vector.extract_strided_slice %147 {offsets = [48, 0], sizes = [120, 128], strides = [1, 1]} : vector<168x128xbf16> to vector<120x128xbf16>
    %c2_153 = arith.constant 2 : index
    %c0_154 = arith.constant 0 : index
    %c0_155 = arith.constant 0 : index
    %c0_156 = arith.constant 0 : index
    %178 = vector.load %arg4[%c2_153, %c0_154, %c0_155, %c0_156] : memref<3x3x128x128xbf16, #tpu.memory_space<vmem>>, vector<1x1x128x128xbf16>
    %179 = vector.shape_cast %178 : vector<1x1x128x128xbf16> to vector<128x128xbf16>
    %cst_157 = arith.constant dense<0.000000e+00> : vector<120x128xf32>
    %180 = tpu.matmul %177, %179, %cst_157 {dimension_numbers = #tpu.dot_dimension_numbers<[1], [0], [0], [1], [0, 0, 1, 1], [], []>} : vector<120x128xbf16>, vector<128x128xbf16>, vector<120x128xf32> -> vector<120x128xf32>
    %181 = arith.addf %176, %180 : vector<120x128xf32>
    %182 = vector.extract_strided_slice %147 {offsets = [49, 0], sizes = [119, 128], strides = [1, 1]} : vector<168x128xbf16> to vector<119x128xbf16>
    %cst_158 = arith.constant 0.000000e+00 : bf16
    %183 = vector.broadcast %cst_158 : bf16 to vector<1x128xbf16>
    %184 = tpu.concatenate %182, %183 in 0 : vector<119x128xbf16>, vector<1x128xbf16> -> vector<120x128xbf16>
    %c2_159 = arith.constant 2 : index
    %c1_160 = arith.constant 1 : index
    %c0_161 = arith.constant 0 : index
    %c0_162 = arith.constant 0 : index
    %185 = vector.load %arg4[%c2_159, %c1_160, %c0_161, %c0_162] : memref<3x3x128x128xbf16, #tpu.memory_space<vmem>>, vector<1x1x128x128xbf16>
    %186 = vector.shape_cast %185 : vector<1x1x128x128xbf16> to vector<128x128xbf16>
    %cst_163 = arith.constant dense<0.000000e+00> : vector<120x128xf32>
    %187 = tpu.matmul %184, %186, %cst_163 {dimension_numbers = #tpu.dot_dimension_numbers<[1], [0], [0], [1], [0, 0, 1, 1], [], []>} : vector<120x128xbf16>, vector<128x128xbf16>, vector<120x128xf32> -> vector<120x128xf32>
    %188 = arith.addf %181, %187 : vector<120x128xf32>
    %189 = vector.extract_strided_slice %147 {offsets = [50, 0], sizes = [118, 128], strides = [1, 1]} : vector<168x128xbf16> to vector<118x128xbf16>
    %cst_164 = arith.constant 0.000000e+00 : bf16
    %190 = vector.broadcast %cst_164 : bf16 to vector<2x128xbf16>
    %191 = tpu.concatenate %189, %190 in 0 : vector<118x128xbf16>, vector<2x128xbf16> -> vector<120x128xbf16>
    %c2_165 = arith.constant 2 : index
    %c2_166 = arith.constant 2 : index
    %c0_167 = arith.constant 0 : index
    %c0_168 = arith.constant 0 : index
    %192 = vector.load %arg4[%c2_165, %c2_166, %c0_167, %c0_168] : memref<3x3x128x128xbf16, #tpu.memory_space<vmem>>, vector<1x1x128x128xbf16>
    %193 = vector.shape_cast %192 : vector<1x1x128x128xbf16> to vector<128x128xbf16>
    %cst_169 = arith.constant dense<0.000000e+00> : vector<120x128xf32>
    %194 = tpu.matmul %191, %193, %cst_169 {dimension_numbers = #tpu.dot_dimension_numbers<[1], [0], [0], [1], [0, 0, 1, 1], [], []>} : vector<120x128xbf16>, vector<128x128xbf16>, vector<120x128xf32> -> vector<120x128xf32>
    %195 = arith.addf %188, %194 : vector<120x128xf32>
    %c0_170 = arith.constant 0 : index
    %c0_171 = arith.constant 0 : index
    %196 = vector.load %arg7[%c0_170, %c0_171] : memref<1x128xf32, #tpu.memory_space<vmem>>, vector<1x128xf32>
    %197 = vector.broadcast %196 : vector<1x128xf32> to vector<120x128xf32>
    %198 = arith.mulf %195, %197 : vector<120x128xf32>
    %c0_172 = arith.constant 0 : index
    %c0_173 = arith.constant 0 : index
    %199 = vector.load %arg8[%c0_172, %c0_173] : memref<1x128xf32, #tpu.memory_space<vmem>>, vector<1x128xf32>
    %200 = vector.broadcast %199 : vector<1x128xf32> to vector<120x128xf32>
    %201 = arith.addf %198, %200 : vector<120x128xf32>
    %202 = vector.shape_cast %201 : vector<120x128xf32> to vector<5x24x128xf32>
    %203 = vector.extract_strided_slice %202 {offsets = [0, 0, 0], sizes = [5, 16, 4], strides = [1, 1, 1]} : vector<5x24x128xf32> to vector<5x16x4xf32>
    %c0_174 = arith.constant 0 : index
    %c0_175 = arith.constant 0 : index
    %c0_176 = arith.constant 0 : index
    %c0_177 = arith.constant 0 : index
    %204 = vector.load %arg9[%c0_174, %c0_175, %c0_176, %c0_177] : memref<1x8x16x4xf32, #tpu.memory_space<vmem>>, vector<1x5x16x4xf32>
    %205 = vector.shape_cast %204 : vector<1x5x16x4xf32> to vector<5x16x4xf32>
    %206 = arith.addf %203, %205 : vector<5x16x4xf32>
    %cst_178 = arith.constant 0.000000e+00 : f32
    %207 = vector.broadcast %cst_178 : f32 to vector<5x16x4xf32>
    %208 = arith.maximumf %206, %207 : vector<5x16x4xf32>
    %c0_179 = arith.constant 0 : index
    %c0_180 = arith.constant 0 : index
    %c0_181 = arith.constant 0 : index
    %c0_182 = arith.constant 0 : index
    %209 = vector.load %arg10[%c0_179, %c0_180, %c0_181, %c0_182] : memref<1x8x16x4xf32, #tpu.memory_space<vmem>>, vector<1x5x16x4xf32>
    %210 = vector.shape_cast %209 : vector<1x5x16x4xf32> to vector<5x16x4xf32>
    %211 = vector.shape_cast %208 : vector<5x16x4xf32> to vector<1x5x16x4xf32>
    tpu.vector_store %arg10[%c0_179, %c0_180, %c0_181, %c0_182], %211 {strides = array<i32>} : memref<1x8x16x4xf32, #tpu.memory_space<vmem>>, vector<1x5x16x4xf32>,
    %c5_183 = arith.constant 5 : index
    %c0_184 = arith.constant 0 : index
    %c0_185 = arith.constant 0 : index
    %212 = vector.load %arg11[%c5_183, %c0_184, %c0_185] : memref<10x24x128xbf16, #tpu.memory_space<vmem>>, vector<5x24x128xbf16>
    %213 = vector.shape_cast %212 : vector<5x24x128xbf16> to vector<120x128xbf16>
    %214 = vector.extract_strided_slice %213 {offsets = [0, 0], sizes = [72, 128], strides = [1, 1]} : vector<120x128xbf16> to vector<72x128xbf16>
    %c0_186 = arith.constant 0 : index
    %c0_187 = arith.constant 0 : index
    %c0_188 = arith.constant 0 : index
    %c0_189 = arith.constant 0 : index
    %215 = vector.load %arg4[%c0_186, %c0_187, %c0_188, %c0_189] : memref<3x3x128x128xbf16, #tpu.memory_space<vmem>>, vector<1x1x128x128xbf16>
    %216 = vector.shape_cast %215 : vector<1x1x128x128xbf16> to vector<128x128xbf16>
    %cst_190 = arith.constant dense<0.000000e+00> : vector<72x128xf32>
    %217 = tpu.matmul %214, %216, %cst_190 {dimension_numbers = #tpu.dot_dimension_numbers<[1], [0], [0], [1], [0, 0, 1, 1], [], []>} : vector<72x128xbf16>, vector<128x128xbf16>, vector<72x128xf32> -> vector<72x128xf32>
    %218 = vector.extract_strided_slice %213 {offsets = [1, 0], sizes = [72, 128], strides = [1, 1]} : vector<120x128xbf16> to vector<72x128xbf16>
    %c0_191 = arith.constant 0 : index
    %c1_192 = arith.constant 1 : index
    %c0_193 = arith.constant 0 : index
    %c0_194 = arith.constant 0 : index
    %219 = vector.load %arg4[%c0_191, %c1_192, %c0_193, %c0_194] : memref<3x3x128x128xbf16, #tpu.memory_space<vmem>>, vector<1x1x128x128xbf16>
    %220 = vector.shape_cast %219 : vector<1x1x128x128xbf16> to vector<128x128xbf16>
    %cst_195 = arith.constant dense<0.000000e+00> : vector<72x128xf32>
    %221 = tpu.matmul %218, %220, %cst_195 {dimension_numbers = #tpu.dot_dimension_numbers<[1], [0], [0], [1], [0, 0, 1, 1], [], []>} : vector<72x128xbf16>, vector<128x128xbf16>, vector<72x128xf32> -> vector<72x128xf32>
    %222 = arith.addf %217, %221 : vector<72x128xf32>
    %223 = vector.extract_strided_slice %213 {offsets = [2, 0], sizes = [72, 128], strides = [1, 1]} : vector<120x128xbf16> to vector<72x128xbf16>
    %c0_196 = arith.constant 0 : index
    %c2_197 = arith.constant 2 : index
    %c0_198 = arith.constant 0 : index
    %c0_199 = arith.constant 0 : index
    %224 = vector.load %arg4[%c0_196, %c2_197, %c0_198, %c0_199] : memref<3x3x128x128xbf16, #tpu.memory_space<vmem>>, vector<1x1x128x128xbf16>
    %225 = vector.shape_cast %224 : vector<1x1x128x128xbf16> to vector<128x128xbf16>
    %cst_200 = arith.constant dense<0.000000e+00> : vector<72x128xf32>
    %226 = tpu.matmul %223, %225, %cst_200 {dimension_numbers = #tpu.dot_dimension_numbers<[1], [0], [0], [1], [0, 0, 1, 1], [], []>} : vector<72x128xbf16>, vector<128x128xbf16>, vector<72x128xf32> -> vector<72x128xf32>
    %227 = arith.addf %222, %226 : vector<72x128xf32>
    %228 = vector.extract_strided_slice %213 {offsets = [24, 0], sizes = [72, 128], strides = [1, 1]} : vector<120x128xbf16> to vector<72x128xbf16>
    %c1_201 = arith.constant 1 : index
    %c0_202 = arith.constant 0 : index
    %c0_203 = arith.constant 0 : index
    %c0_204 = arith.constant 0 : index
    %229 = vector.load %arg4[%c1_201, %c0_202, %c0_203, %c0_204] : memref<3x3x128x128xbf16, #tpu.memory_space<vmem>>, vector<1x1x128x128xbf16>
    %230 = vector.shape_cast %229 : vector<1x1x128x128xbf16> to vector<128x128xbf16>
    %cst_205 = arith.constant dense<0.000000e+00> : vector<72x128xf32>
    %231 = tpu.matmul %228, %230, %cst_205 {dimension_numbers = #tpu.dot_dimension_numbers<[1], [0], [0], [1], [0, 0, 1, 1], [], []>} : vector<72x128xbf16>, vector<128x128xbf16>, vector<72x128xf32> -> vector<72x128xf32>
    %232 = arith.addf %227, %231 : vector<72x128xf32>
    %233 = vector.extract_strided_slice %213 {offsets = [25, 0], sizes = [72, 128], strides = [1, 1]} : vector<120x128xbf16> to vector<72x128xbf16>
    %c1_206 = arith.constant 1 : index
    %c1_207 = arith.constant 1 : index
    %c0_208 = arith.constant 0 : index
    %c0_209 = arith.constant 0 : index
    %234 = vector.load %arg4[%c1_206, %c1_207, %c0_208, %c0_209] : memref<3x3x128x128xbf16, #tpu.memory_space<vmem>>, vector<1x1x128x128xbf16>
    %235 = vector.shape_cast %234 : vector<1x1x128x128xbf16> to vector<128x128xbf16>
    %cst_210 = arith.constant dense<0.000000e+00> : vector<72x128xf32>
    %236 = tpu.matmul %233, %235, %cst_210 {dimension_numbers = #tpu.dot_dimension_numbers<[1], [0], [0], [1], [0, 0, 1, 1], [], []>} : vector<72x128xbf16>, vector<128x128xbf16>, vector<72x128xf32> -> vector<72x128xf32>
    %237 = arith.addf %232, %236 : vector<72x128xf32>
    %238 = vector.extract_strided_slice %213 {offsets = [26, 0], sizes = [72, 128], strides = [1, 1]} : vector<120x128xbf16> to vector<72x128xbf16>
    %c1_211 = arith.constant 1 : index
    %c2_212 = arith.constant 2 : index
    %c0_213 = arith.constant 0 : index
    %c0_214 = arith.constant 0 : index
    %239 = vector.load %arg4[%c1_211, %c2_212, %c0_213, %c0_214] : memref<3x3x128x128xbf16, #tpu.memory_space<vmem>>, vector<1x1x128x128xbf16>
    %240 = vector.shape_cast %239 : vector<1x1x128x128xbf16> to vector<128x128xbf16>
    %cst_215 = arith.constant dense<0.000000e+00> : vector<72x128xf32>
    %241 = tpu.matmul %238, %240, %cst_215 {dimension_numbers = #tpu.dot_dimension_numbers<[1], [0], [0], [1], [0, 0, 1, 1], [], []>} : vector<72x128xbf16>, vector<128x128xbf16>, vector<72x128xf32> -> vector<72x128xf32>
    %242 = arith.addf %237, %241 : vector<72x128xf32>
    %243 = vector.extract_strided_slice %213 {offsets = [48, 0], sizes = [72, 128], strides = [1, 1]} : vector<120x128xbf16> to vector<72x128xbf16>
    %c2_216 = arith.constant 2 : index
    %c0_217 = arith.constant 0 : index
    %c0_218 = arith.constant 0 : index
    %c0_219 = arith.constant 0 : index
    %244 = vector.load %arg4[%c2_216, %c0_217, %c0_218, %c0_219] : memref<3x3x128x128xbf16, #tpu.memory_space<vmem>>, vector<1x1x128x128xbf16>
    %245 = vector.shape_cast %244 : vector<1x1x128x128xbf16> to vector<128x128xbf16>
    %cst_220 = arith.constant dense<0.000000e+00> : vector<72x128xf32>
    %246 = tpu.matmul %243, %245, %cst_220 {dimension_numbers = #tpu.dot_dimension_numbers<[1], [0], [0], [1], [0, 0, 1, 1], [], []>} : vector<72x128xbf16>, vector<128x128xbf16>, vector<72x128xf32> -> vector<72x128xf32>
    %247 = arith.addf %242, %246 : vector<72x128xf32>
    %248 = vector.extract_strided_slice %213 {offsets = [49, 0], sizes = [71, 128], strides = [1, 1]} : vector<120x128xbf16> to vector<71x128xbf16>
    %cst_221 = arith.constant 0.000000e+00 : bf16
    %249 = vector.broadcast %cst_221 : bf16 to vector<1x128xbf16>
    %250 = tpu.concatenate %248, %249 in 0 : vector<71x128xbf16>, vector<1x128xbf16> -> vector<72x128xbf16>
    %c2_222 = arith.constant 2 : index
    %c1_223 = arith.constant 1 : index
    %c0_224 = arith.constant 0 : index
    %c0_225 = arith.constant 0 : index
    %251 = vector.load %arg4[%c2_222, %c1_223, %c0_224, %c0_225] : memref<3x3x128x128xbf16, #tpu.memory_space<vmem>>, vector<1x1x128x128xbf16>
    %252 = vector.shape_cast %251 : vector<1x1x128x128xbf16> to vector<128x128xbf16>
    %cst_226 = arith.constant dense<0.000000e+00> : vector<72x128xf32>
    %253 = tpu.matmul %250, %252, %cst_226 {dimension_numbers = #tpu.dot_dimension_numbers<[1], [0], [0], [1], [0, 0, 1, 1], [], []>} : vector<72x128xbf16>, vector<128x128xbf16>, vector<72x128xf32> -> vector<72x128xf32>
    %254 = arith.addf %247, %253 : vector<72x128xf32>
    %255 = vector.extract_strided_slice %213 {offsets = [50, 0], sizes = [70, 128], strides = [1, 1]} : vector<120x128xbf16> to vector<70x128xbf16>
    %cst_227 = arith.constant 0.000000e+00 : bf16
    %256 = vector.broadcast %cst_227 : bf16 to vector<2x128xbf16>
    %257 = tpu.concatenate %255, %256 in 0 : vector<70x128xbf16>, vector<2x128xbf16> -> vector<72x128xbf16>
    %c2_228 = arith.constant 2 : index
    %c2_229 = arith.constant 2 : index
    %c0_230 = arith.constant 0 : index
    %c0_231 = arith.constant 0 : index
    %258 = vector.load %arg4[%c2_228, %c2_229, %c0_230, %c0_231] : memref<3x3x128x128xbf16, #tpu.memory_space<vmem>>, vector<1x1x128x128xbf16>
    %259 = vector.shape_cast %258 : vector<1x1x128x128xbf16> to vector<128x128xbf16>
    %cst_232 = arith.constant dense<0.000000e+00> : vector<72x128xf32>
    %260 = tpu.matmul %257, %259, %cst_232 {dimension_numbers = #tpu.dot_dimension_numbers<[1], [0], [0], [1], [0, 0, 1, 1], [], []>} : vector<72x128xbf16>, vector<128x128xbf16>, vector<72x128xf32> -> vector<72x128xf32>
    %261 = arith.addf %254, %260 : vector<72x128xf32>
    %c0_233 = arith.constant 0 : index
    %c0_234 = arith.constant 0 : index
    %262 = vector.load %arg7[%c0_233, %c0_234] : memref<1x128xf32, #tpu.memory_space<vmem>>, vector<1x128xf32>
    %263 = vector.broadcast %262 : vector<1x128xf32> to vector<72x128xf32>
    %264 = arith.mulf %261, %263 : vector<72x128xf32>
    %c0_235 = arith.constant 0 : index
    %c0_236 = arith.constant 0 : index
    %265 = vector.load %arg8[%c0_235, %c0_236] : memref<1x128xf32, #tpu.memory_space<vmem>>, vector<1x128xf32>
    %266 = vector.broadcast %265 : vector<1x128xf32> to vector<72x128xf32>
    %267 = arith.addf %264, %266 : vector<72x128xf32>
    %268 = vector.shape_cast %267 : vector<72x128xf32> to vector<3x24x128xf32>
    %269 = vector.extract_strided_slice %268 {offsets = [0, 0, 0], sizes = [3, 16, 4], strides = [1, 1, 1]} : vector<3x24x128xf32> to vector<3x16x4xf32>
    %c0_237 = arith.constant 0 : index
    %c5_238 = arith.constant 5 : index
    %c0_239 = arith.constant 0 : index
    %c0_240 = arith.constant 0 : index
    %270 = vector.load %arg9[%c0_237, %c5_238, %c0_239, %c0_240] : memref<1x8x16x4xf32, #tpu.memory_space<vmem>>, vector<1x3x16x4xf32>
    %271 = vector.shape_cast %270 : vector<1x3x16x4xf32> to vector<3x16x4xf32>
    %272 = arith.addf %269, %271 : vector<3x16x4xf32>
    %cst_241 = arith.constant 0.000000e+00 : f32
    %273 = vector.broadcast %cst_241 : f32 to vector<3x16x4xf32>
    %274 = arith.maximumf %272, %273 : vector<3x16x4xf32>
    %c0_242 = arith.constant 0 : index
    %c5_243 = arith.constant 5 : index
    %c0_244 = arith.constant 0 : index
    %c0_245 = arith.constant 0 : index
    %275 = vector.load %arg10[%c0_242, %c5_243, %c0_244, %c0_245] : memref<1x8x16x4xf32, #tpu.memory_space<vmem>>, vector<1x3x16x4xf32>
    %276 = vector.shape_cast %275 : vector<1x3x16x4xf32> to vector<3x16x4xf32>
    %277 = vector.shape_cast %274 : vector<3x16x4xf32> to vector<1x3x16x4xf32>
    tpu.vector_store %arg10[%c0_242, %c5_243, %c0_244, %c0_245], %277 {strides = array<i32>} : memref<1x8x16x4xf32, #tpu.memory_space<vmem>>, vector<1x3x16x4xf32>,
    return
  }
  func.func @transform_0(%arg0: i32, %arg1: i32) -> (i32, i32, i32, i32) {
    %c2_i32 = arith.constant 2 : i32
    %0 = arith.muli %arg0, %c2_i32 : i32
    %1 = arith.addi %0, %arg1 : i32
    %c0_i32 = arith.constant 0 : i32
    %c0_i32_0 = arith.constant 0 : i32
    %c0_i32_1 = arith.constant 0 : i32
    %c0_i32_2 = arith.constant 0 : i32
    return %1, %c0_i32, %c0_i32_0, %c0_i32_1 : i32, i32, i32, i32
  }
  func.func @transform_1(%arg0: i32, %arg1: i32) -> (i32, i32, i32, i32) {
    %c0_i32 = arith.constant 0 : i32
    %c0_i32_0 = arith.constant 0 : i32
    %c0_i32_1 = arith.constant 0 : i32
    %c0_i32_2 = arith.constant 0 : i32
    %c0_i32_3 = arith.constant 0 : i32
    return %c0_i32, %c0_i32_0, %c0_i32_1, %c0_i32_2 : i32, i32, i32, i32
  }
  func.func @transform_2(%arg0: i32, %arg1: i32) -> (i32, i32, i32, i32) {
    %c0_i32 = arith.constant 0 : i32
    %c0_i32_0 = arith.constant 0 : i32
    %c0_i32_1 = arith.constant 0 : i32
    %c0_i32_2 = arith.constant 0 : i32
    %c0_i32_3 = arith.constant 0 : i32
    return %c0_i32, %c0_i32_0, %c0_i32_1, %c0_i32_2 : i32, i32, i32, i32
  }
  func.func @transform_3(%arg0: i32, %arg1: i32) -> (i32, i32) {
    %c0_i32 = arith.constant 0 : i32
    %c0_i32_0 = arith.constant 0 : i32
    %c0_i32_1 = arith.constant 0 : i32
    return %c0_i32, %c0_i32_0 : i32, i32
  }
  func.func @transform_4(%arg0: i32, %arg1: i32) -> (i32, i32) {
    %c0_i32 = arith.constant 0 : i32
    %c0_i32_0 = arith.constant 0 : i32
    %c0_i32_1 = arith.constant 0 : i32
    return %c0_i32, %c0_i32_0 : i32, i32
  }
  func.func @transform_5(%arg0: i32, %arg1: i32) -> (i32, i32) {
    %c0_i32 = arith.constant 0 : i32
    %c0_i32_0 = arith.constant 0 : i32
    %c0_i32_1 = arith.constant 0 : i32
    return %c0_i32, %c0_i32_0 : i32, i32
  }
  func.func @transform_6(%arg0: i32, %arg1: i32) -> (i32, i32) {
    %c0_i32 = arith.constant 0 : i32
    %c0_i32_0 = arith.constant 0 : i32
    %c0_i32_1 = arith.constant 0 : i32
    return %c0_i32, %c0_i32_0 : i32, i32
  }
  func.func @transform_7(%arg0: i32, %arg1: i32) -> (i32, i32, i32, i32) {
    %c0_i32 = arith.constant 0 : i32
    %c0_i32_0 = arith.constant 0 : i32
    %c0_i32_1 = arith.constant 0 : i32
    return %arg0, %arg1, %c0_i32, %c0_i32_0 : i32, i32, i32, i32
  }
  func.func @transform_8(%arg0: i32, %arg1: i32) -> (i32, i32, i32, i32) {
    %c0_i32 = arith.constant 0 : i32
    %c0_i32_0 = arith.constant 0 : i32
    %c0_i32_1 = arith.constant 0 : i32
    return %arg0, %arg1, %c0_i32, %c0_i32_0 : i32, i32, i32, i32
  }
}

</mosaic_0001>

<bundles_post_ra>
// kernel: tpu_custom_call.1
= control target key start
LH: loop header
LB: loop body
LE: loop exit
PB: predicated region body
PF: predicated region fallthrough
CT: control target
= control target key end

     0   :  { %13 = vsyncpa [#allocation4], 0  ;;  %s13146_s0 = inlined_call_operand.vmem [shape: bf16[4,12,24,128], index: 0, kind: input, shape index: {}]   ;;  %s13147_s1 = inlined_call_operand.hbm [shape: bf16[3,3,128,128], index: 1, kind: input, shape index: {}]   ;;  %s13148_s2 = inlined_call_operand.hbm [shape: bf16[3,3,128,128], index: 2, kind: input, shape index: {}]   ;;  %s13149_s3 = inlined_call_operand.vmem [shape: f32[1,128], index: 3, kind: input, shape index: {}]   ;;  %s13150_s4 = inlined_call_operand.vmem [shape: f32[1,128], index: 4, kind: input, shape index: {}]   ;;  %s13151_s5 = inlined_call_operand.vmem [shape: f32[1,128], index: 5, kind: input, shape index: {}]   ;;  %s13152_s6 = inlined_call_operand.vmem [shape: f32[1,128], index: 6, kind: input, shape index: {}]   ;;  %s13153_s7 = inlined_call_operand.vmem [shape: f32[2,16,16,4], index: 7, kind: input, shape index: {}]   ;;  %s13154_s8 = inlined_call_operand.vmem [shape: f32[2,16,16,4], index: 8, kind: output, shape index: {}]  }
   0x1   :  { %14 = vsyncpa [#allocation6], 0  ;;  %s10964_s27 = smov 0   ;;  %s10966_s28 = smov 0  }
   0x2   :  { %s10968_s29 = smov 0   ;;  %s10970_s30 = smov 0  }
   0x3   :  { %s10972_s9 = smov 0  }
   0x4 LB: > { %s8060_s10 = sadd.s32 4294967295, %s10909_s9   ;;  %s29_s11 = sadd.s32 1, %s10901_s29  ;;  %s10909_s9 = sphi %s10972_s9, %s20_s9   ;;  %s10905_s30 = sphi %s10970_s30, %s13235_s30   ;;  %s10901_s29 = sphi %s10968_s29, %s13234_s29   ;;  %s10897_s28 = sphi %s10966_s28, %s13233_s28   ;;  %s10893_s27 = sphi %s10964_s27, %s13232_s27  }
   0x5   : > { %p30_p0 = scmp.ge.s32.totalorder %s29_s11, 2  ;;  %s32_s12 = sadd.s32 1, %s10905_s30 }
   0x6   : > { %p8064_p1 = scmp.ge.s32.totalorder %s10909_s9, 1  ;;  %p249_p2 = scmp.lt.s32.totalorder %s10909_s9, 5 }
   0x7   : > { %s13237_s11 = smov (%p30_p0, %s29_s11), 0  ;;  %s13239_s12 = smov (!%p30_p0, %s32_s12), %s10905_s30 }
   0x8   : > { %p10997_p3 = pnand %p8064_p1, %p249_p2  ;;  %p34_p4 = scmp.ge.s32.totalorder %s13239_s12, 2 }
   0x9   : > { %p11001_p5 = scmp.eq.s32.totalorder %s8060_s10, 0  ;;  %s10911_s15 = smov [#allocation3]  }
   0xa   : > { %p10385_p6 = pneg %p10997_p3  ;;  %s13241_s12 = smov (%p34_p4, %s13239_s12), 0 }
   0xb   : > { %s261_s16 = sshll.u32 %s10911_s15, 4  ;;  %s262_s16 = int_to_ptr.vmem [resolvable:$true] %s261_s16 }
   0xc   : > { %p11011_p7 = pnand %p11001_p5, %p10385_p6  ;;  %s10822_s18 = scalar_lea.vmem %s262_s16, 9216 }
   0xd   : > { %p10823_p9 = scmp.ne.s32.totalorder %s262_s16, %s10822_s18  ;;  %p10830_p12 = scmp.lt.s32.totalorder %s262_s16, %s262_s16 }
   0xe   : > { %p10813_p8 = pneg %p11011_p7  ;;  %p10831_p13 = scmp.lt.s32.totalorder %s10822_s18, %s10822_s18 }
  0x10   : > { %p10825_p10 = pnand %p10823_p9, %p10813_p8  ;;  %p10832_p0 = por %p10831_p13, %p10830_p12 }
  0x12   : > { %p10826_p11 = pneg %p10825_p10 }
  0x14   : > { %p10833_p1 = pnand %p10832_p0, %p10826_p11 }
  0x16   : > { %10836 = shalt.err (!%p10833_p1)
}
  0x17   : > { %s10912_s19 = smov 64   ;;  %s10913_s20 = smov 4  }
  0x18   : > { %10388 = dma.hbm_to_vmem [thread:$0]  (!%p11011_p7), %s13147_s1, 9216, %s262_s16, [#allocation4], %s10912_s19, %s10912_s19, %s10913_s20  }
  0x19   : > { %s10914_s23 = smov [#allocation5]  }
  0x1a   : > { %s274_s24 = sshll.u32 %s10914_s23, 4  ;;  %s275_s24 = int_to_ptr.vmem [resolvable:$true] %s274_s24 }
  0x1b   : > { %s10848_s25 = scalar_lea.vmem %s275_s24, 9216  ;;  %p10856_p9 = scmp.lt.s32.totalorder %s275_s24, %s275_s24 }
  0x1c   : > { %p10849_p2 = scmp.ne.s32.totalorder %s275_s24, %s10848_s25  ;;  %p10857_p10 = scmp.lt.s32.totalorder %s10848_s25, %s10848_s25 }
  0x1e   : > { %p10851_p4 = pnand %p10849_p2, %p10813_p8  ;;  %p10858_p11 = por %p10857_p10, %p10856_p9 }
  0x20   : > { %p10852_p6 = pneg %p10851_p4 }
  0x22   : > { %p10859_p12 = pnand %p10858_p11, %p10852_p6 }
  0x24   : > { %10862 = shalt.err (!%p10859_p12)
}
  0x25   : > { %10391 = dma.hbm_to_vmem [thread:$0]  (!%p11011_p7), %s13148_s2, 9216, %s275_s24, [#allocation6], %s10912_s19, %s10912_s19, %s10913_s20  }
  0x26   : > { %328 = sbr.rel (%p10997_p3) target bundleno = 1138 (0x472), region = 52 }
  0x2b   : > { %10884 = dma.done.wait (%p11001_p5), [#allocation4], 9216  }
  0x2c   : > { %10886 = vsyncadd (%p11001_p5), [#allocation4], 4294958080 }
  0x2d   : > { %10888 = dma.done.wait (%p11001_p5), [#allocation6], 9216  }
  0x2e   : > { %10890 = vsyncadd (%p11001_p5), [#allocation6], 4294958080  ;;  %s8073_s15 = sshll.u32 %s10893_s27, 3  ;;  %p393_p7 = scmp.lt.s32.totalorder %s10897_s28, 1  ;;  %v10444_v0 = vld [vmem:[#allocation3 + $0x78] sm:$0xff]   ;;  %v10446_v2 = vld [vmem:[#allocation3 + $0x70] sm:$0xff]  }
  0x2f   : > { %p395_p3 = scmp.lt.s32.totalorder %s8073_s15, 15  ;;  %s8071_s13 = sshll.u32 %s10897_s28, 1  ;;  %v10445_v1 = vld [vmem:[#allocation3 + $0x38] sm:$0xff]   ;;  %9188 = vmatprep.subr.bf16.mxu0 %v10444_v0  ;;  %v10447_v3 = vld [vmem:[#allocation3 + $0x30] sm:$0xff]   ;;  %v10448_v4 = vld [vmem:[#allocation3 + $0x68] sm:$0xff]   ;;  %vm895_vm1 = vcmask 1046528  }
  0x30   : > { %s13243_s28 = smov (!%p393_p7, %s10897_s28), 1  ;;  %s384_s17 = sadd.s32 %s10893_s27, %s8071_s13  ;;  %9220 = vmatprep.subr.bf16.mxu1 %v10445_v1  ;;  %9189 = vmatpush3.bf16.msra.mxu0 %v10444_v0  ;;  %v10449_v5 = vld [vmem:[#allocation3 + $0x28] sm:$0xff]   ;;  %v10450_v6 = vld [vmem:[#allocation3 + $0x60] sm:$0xff]   ;;  %v10452_v8 = vld [vmem:[#allocation3 + $0x58] sm:$0xff]   ;;  %vm509_vm0 = vsmask.f32 7424 }
  0x31   : > { %s13245_s15 = smov (!%p395_p3, %s8073_s15), 15  ;;  %s8075_s16 = sshll.u32 %s13243_s28, 5  ;;  %9221 = vmatpush3.bf16.msra.mxu1 %v10445_v1  ;;  %9190 = vmatprep.subr.bf16.mxu0 %v10446_v2  ;;  %v10451_v7 = vld [vmem:[#allocation3 + $0x20] sm:$0xff]   ;;  %v10453_v9 = vld [vmem:[#allocation3 + $0x18] sm:$0xff]   ;;  %v10454_v10 = vld [vmem:[#allocation3 + $0x50] sm:$0xff]   ;;  %vm1938_vm2 = vcmask 1043456  }
  0x32   : > { %s8074_s18 = sshll.u32 %s13245_s15, 1  ;;  %p385_p8 = scmp.lt.s32.totalorder %s384_s17, 3  ;;  %9222 = vmatprep.subr.bf16.mxu1 %v10447_v3  ;;  %v10455_v11 = vld [vmem:[#allocation3 + $0x10] sm:$0xff]   ;;  %v10456_v21 = vld [vmem:[#allocation3 + $0x48] sm:$0xff]   ;;  %v10458_v25 = vld [vmem:[#allocation3 + $0x40] sm:$0xff]   ;;  %vm2127_vm5 = vcmask 1042432  }
  0x33   : > { %s399_s19 = sadd.s32 %s8075_s16, %s8074_s18  ;;  %v10457_v23 = vld [vmem:[#allocation3 + $0x8] sm:$0xff]   ;;  %v10459_v27 = vld [vmem:[#allocation3] sm:$0xff]   ;;  %v10463_v42 = vld [vmem:[#allocation3 + $0xb8] sm:$0xff]   ;;  %vm1939_vm3 = vsmask.f32 3328  ;;  %p8324_p5 = scmp.ne.s32.totalorder %s10893_s27, 0 }
  0x34   : > { %s8076_s20 = sshll.u32 %s399_s19, 3  ;;  %s13247_s17 = smov (!%p385_p8, %s384_s17), 3  ;;  %9191 = vmatpush3.bf16.msra.mxu0 %v10446_v2  ;;  %v10464_v44 = vld [vmem:[#allocation3 + $0xf8] sm:$0xff]   ;;  %v10465_v47 = vld [vmem:[#allocation3 + $0xb0] sm:$0xff]   ;;  %v10469_v0 = vld [vmem:[#allocation3 + $0xa8] sm:$0xff]  }
  0x35   : > { %s11051_s22 = scalar_lea.vmem %s13153_s7, %s8076_s20  ;;  %s11056_s25 = scalar_lea.vmem %s13154_s8, %s8076_s20  ;;  %9223 = vmatpush3.bf16.msra.mxu1 %v10447_v3  ;;  %9192 = vmatprep.subr.bf16.mxu0 %v10448_v4  ;;  %v10466_v55 = vld [vmem:[#allocation3 + $0xf0] sm:$0xff]   ;;  %v10470_v1 = vld [vmem:[#allocation3 + $0xe8] sm:$0xff]   ;;  %vm11357_vm4 = vmand %vm1938_vm2, %vm1939_vm3 }
  0x36   : > { %9224 = vmatprep.subr.bf16.mxu1 %v10449_v5  ;;  %s10376_s28 = smul.u32 144, %s13247_s17 }
  0x38   : > { %9193 = vmatpush3.bf16.msra.mxu0 %v10448_v4  ;;  %s11062_s15 = scalar_lea.vmem %s13146_s0, %s10376_s28 }
  0x39   : > { %9225 = vmatpush3.bf16.msra.mxu1 %v10449_v5  ;;  %9194 = vmatprep.subr.bf16.mxu0 %v10450_v6  ;;  %v417_v12 = vld [vmem:[%s11062_s15 + $0x8] sm:$0xf]  ;;  %v11066_v13 = vld [vmem:[%s11062_s15 + $0xc] sm:$0xf]  ;;  %v11069_v14 = vld [vmem:[%s11062_s15] sm:$0xff]  }
  0x3a   : > { %9226 = vmatprep.subr.bf16.mxu1 %v10451_v7  ;;  %v11072_v15 = vld [vmem:[%s11062_s15 + $0x10] sm:$0xf]  ;;  %v11075_v16 = vcombine.low %v417_v12, %v11066_v13  ;;  %v11078_v17 = vld [vmem:[%s11062_s15 + $0x14] sm:$0xf]  ;;  %v511_v18 = vshrl.u32 %v11069_v14, 16  ;;  %v513_v19 = vshll.u32 %v11069_v14, 16  ;;  %9236 = vmatprep.mubr.bf16.mxu1 %v11069_v14 }
  0x3b   : > { %v11085_v20 = vcombine.low %v11072_v15, %v11078_v17  ;;  %v11091_v31 = vld [vmem:[%s11062_s15 + $0x18] sm:$0xf]  ;;  %v11094_v32 = vld [vmem:[%s11062_s15 + $0x1c] sm:$0xf]  ;;  %v11101_v34 = vld [vmem:[%s11062_s15 + $0x20] sm:$0xf] }
  0x3c   : > { %9195 = vmatpush3.bf16.msra.mxu0 %v10450_v6  ;;  %v518_v22 = vshll.u32 %v11075_v16, 16  ;;  %v515_v24 = vrot.slane %v513_v19, 1  ;;  %v522_v29 = vshrl.u32 %v11075_v16, 16  ;;  %v11098_v33 = vcombine.low %v11091_v31, %v11094_v32  ;;  %v11104_v35 = vld [vmem:[%s11062_s15 + $0x24] sm:$0xf]  ;;  %v10471_v6 = vld [vmem:[#allocation3 + $0xa0] sm:$0xff]  }
  0x3d   : > { %9227 = vmatpush3.bf16.msra.mxu1 %v10451_v7  ;;  %9196 = vmatprep.subr.bf16.mxu0 %v10452_v8  ;;  %v526_v30 = vshll.u32 %v11085_v20, 16  ;;  %v530_v37 = vshrl.u32 %v11085_v20, 16  ;;  %v11111_v39 = vcombine.low %v11101_v34, %v11104_v35  ;;  %v11114_v43 = vld [vmem:[%s11062_s15 + $0x28] sm:$0xf]  ;;  %v11118_v46 = vld [vmem:[%s11062_s15 + $0x2c] sm:$0xf] }
  0x3e   : > { %9228 = vmatprep.subr.bf16.mxu1 %v10453_v9  ;;  %v520_v26 = vrot.slane %v518_v22, 1  ;;  %v516_v28 = vor.u32 %v515_v24, %v511_v18  ;;  %v534_v38 = vshll.u32 %v11098_v33, 16  ;;  %v538_v45 = vshrl.u32 %v11098_v33, 16  ;;  %v11127_v53 = vld [vmem:[%s11062_s15 + $0x30] sm:$0xf] }
  0x3f   : > { %v528_v41 = vrot.slane %v526_v30, 1  ;;  %v542_v50 = vshll.u32 %v11111_v39, 16  ;;  %v11123_v51 = vcombine.low %v11114_v43, %v11118_v46  ;;  %v11130_v54 = vld [vmem:[%s11062_s15 + $0x34] sm:$0xf]  ;;  %v546_v59 = vshrl.u32 %v11111_v39, 16  ;;  %v10481_v30 = vld [vmem:[#allocation3 + $0x88] sm:$0xff]  }
  0x40   : > { %9197 = vmatpush3.bf16.msra.mxu0 %v10452_v8  ;;  %v521_v36 = vsel %vm509_vm0, %v516_v28, %v520_v26  ;;  %v524_v40 = vor.u32 %v522_v29, %v520_v26  ;;  %v536_v49 = vrot.slane %v534_v38, 1  ;;  %v11136_v60 = vld [vmem:[%s11062_s15 + $0x38] sm:$0xf]  ;;  %v11141_v62 = vcombine.low %v11127_v53, %v11130_v54  ;;  %v11144_v63 = vld [vmem:[%s11062_s15 + $0x3c] sm:$0xf]  ;;  %v10476_v22 = vld [vmem:[#allocation3 + $0xd8] sm:$0xff]  }
  0x41   : > { %9229 = vmatpush3.bf16.msra.mxu1 %v10453_v9  ;;  %9198 = vmatprep.subr.bf16.mxu0 %v10454_v10  ;;  %v532_v48 = vor.u32 %v530_v37, %v528_v41  ;;  %v550_v56 = vshll.u32 %v11123_v51, 16  ;;  %v544_v58 = vrot.slane %v542_v50, 1  ;;  %v11149_v4 = vcombine.low %v11136_v60, %v11144_v63  ;;  %v10472_v9 = vld [vmem:[#allocation3 + $0xe0] sm:$0xff]   ;;  %v10477_v26 = vld [vmem:[#allocation3 + $0x90] sm:$0xff]  }
  0x42   : > { %9230 = vmatprep.subr.bf16.mxu1 %v10455_v11  ;;  %9204 = vmatprep.mubr.bf16.mxu0 %v521_v36  ;;  %v529_v52 = vsel %vm509_vm0, %v524_v40, %v528_v41  ;;  %v540_v61 = vor.u32 %v538_v45, %v536_v49  ;;  %v554_v7 = vshrl.u32 %v11123_v51, 16  ;;  %v558_v8 = vshll.u32 %v11141_v62, 16  ;;  %v10482_v36 = vld [vmem:[#allocation3 + $0xc8] sm:$0xff]  }
  0x43   : > { %v537_v57 = vsel %vm509_vm0, %v532_v48, %v536_v49  ;;  %v552_v2 = vrot.slane %v550_v56, 1  ;;  %v548_v3 = vor.u32 %v546_v59, %v544_v58  ;;  %v566_v12 = vshll.u32 %v11149_v4, 16  ;;  %v10488_v48 = vld [vmem:[#allocation3 + $0x178] sm:$0xff]   ;;  %v10496_v59 = vld [vmem:[#allocation3 + $0x160] sm:$0xff]  }
  0x44   : > { %9199 = vmatpush3.bf16.msra.mxu0 %v10454_v10  ;;  %v11152_v5 = vsel %vm509_vm0, %v540_v61, %v544_v58  ;;  %v560_v19 = vrot.slane %v558_v8, 1  ;;  %v570_v29 = vshrl.u32 %v11149_v4, 16  ;;  %v896_v38 = vrot.slane %v11069_v14, 1  ;;  %v10502_v8 = vld [vmem:[#allocation3 + $0x150] sm:$0xff]  }
  0x45   : > { %9231 = vmatpush3.bf16.msra.mxu1 %v10455_v11  ;;  %9200 = vmatprep.subr.bf16.mxu0 %v10456_v21  ;;  %v11158_v10 = vsel %vm509_vm0, %v548_v3, %v552_v2  ;;  %v562_v11 = vshrl.u32 %v11141_v62, 16  ;;  %v556_v18 = vor.u32 %v554_v7, %v552_v2  ;;  %v568_v24 = vrot.slane %v566_v12, 1  ;;  %v10501_v7 = vld [vmem:[#allocation3 + $0x110] sm:$0xff]  }
  0x46   : > { %9232 = vmatprep.subr.bf16.mxu1 %v10457_v23  ;;  %v897_v40 = vrot.slane %v11075_v16, 1  ;;  %v8097_v41 = vcombine.low %v11136_v60, %v11136_v60  ;;  %v899_v14 = vrot.slane %v11085_v20, 1  ;;  %v901_v49 = vrot.slane %v11098_v33, 1 }
  0x47   : > { %v11176_v37 = vor.u32 %v570_v29, %v568_v24  ;;  %v903_v56 = vrot.slane %v11111_v39, 1  ;;  %v11225_v2 = vrot.slane %v11149_v4, 1  ;;  %v11233_v3 = vcombine.low %v11130_v54, %v11136_v60 }
  0x48   : > { %9201 = vmatpush3.bf16.msra.mxu0 %v10456_v21  ;;  %v10475_v21 = vld [vmem:[#allocation3 + $0x98] sm:$0xff]   ;;  %v898_v45 = vsel %vm895_vm1, %v896_v38, %v897_v40  ;;  %v900_v50 = vsel %vm895_vm1, %v897_v40, %v899_v14 }
  0x49   : > { %9233 = vmatpush3.bf16.msra.mxu1 %v10457_v23  ;;  %9202 = vmatprep.subr.bf16.mxu0 %v10458_v25  ;;  %v564_v23 = vor.u32 %v562_v11, %v560_v19  ;;  %v11206_v58 = vsel %vm895_vm1, %v901_v49, %v903_v56 }
  0x4a   : > { %9234 = vmatprep.subr.bf16.mxu1 %v10459_v27 }
  0x4b   : > { %v11170_v28 = vsel %vm509_vm0, %v564_v23, %v568_v24 }
  0x4c   : > { %9203 = vmatpush3.bf16.msra.mxu0 %v10458_v25  ;;  %v11166_v25 = vsel %vm509_vm0, %v556_v18, %v560_v19  ;;  %v11251_v18 = vld [vmem:[%s11062_s15 + $0x44] sm:$0xf] }
  0x4d   : > { %9235 = vmatpush3.bf16.msra.mxu1 %v10459_v27  ;;  %9252 = vmatprep.subr.bf16.mxu0 %v10463_v42  ;;  %v10478_v27 = vld [vmem:[#allocation3 + $0xd0] sm:$0xff]   ;;  %v10508_v19 = vld [vmem:[#allocation3 + $0x108] sm:$0xff]  }
  0x4e   : > { %9284 = vmatprep.subr.bf16.mxu1 %v10464_v44 }
  0x4f   : > { %9205 = vmatmul.mubr.bf16.vlgmr.msra.gmra.mxu0 %v529_v52  ;;  %v902_v52 = vsel %vm895_vm1, %v899_v14, %v901_v49  ;;  %v10512_v14 = vld [vmem:[#allocation3 + $0x1b8] sm:$0xff]  }
  0x50   : > { %9237 = vmatmul.mubr.bf16.vlgmr.msra.gmra.mxu1 %v11075_v16  ;;  %9253 = vmatpush3.bf16.msra.mxu0 %v10463_v42  ;;  %v10483_v42 = vld [vmem:[#allocation3 + $0x80] sm:$0xff]   ;;  %v10487_v16 = vld [vmem:[#allocation3 + $0x138] sm:$0xff]  }
  0x51   : > { %9285 = vmatpush3.bf16.msra.mxu1 %v10464_v44  ;;  %9254 = vmatprep.subr.bf16.mxu0 %v10465_v47  ;;  %v10484_v44 = vld [vmem:[#allocation3 + $0xc0] sm:$0xff]  }
  0x52   : > { %9286 = vmatprep.subr.bf16.mxu1 %v10466_v55  ;;  %9208 = vmatprep.mubr.bf16.mxu0 %v537_v57  ;;  %v905_v57 = vrot.slane %v11123_v51, 1 }
  0x53   : > { %9240 = vmatprep.mubr.bf16.mxu1 %v11085_v20  ;;  %v10490_v20 = vld [vmem:[#allocation3 + $0x170] sm:$0xff]  }
  0x54   : > { %9255 = vmatpush3.bf16.msra.mxu0 %v10465_v47  ;;  %v11186_v47 = vcombine.low %v11066_v13, %v11072_v15  ;;  %v11194_v13 = vcombine.low %v11078_v17, %v11091_v31  ;;  %v10489_v15 = vld [vmem:[#allocation3 + $0x130] sm:$0xff]   ;;  %v10493_v17 = vld [vmem:[#allocation3 + $0x128] sm:$0xff]   ;;  %v11214_v61 = vsel %vm895_vm1, %v903_v56, %v905_v57 }
  0x55   : > { %9287 = vmatpush3.bf16.msra.mxu1 %v10466_v55  ;;  %9256 = vmatprep.subr.bf16.mxu0 %v10469_v0  ;;  %v11199_v55 = vcombine.low %v11094_v32, %v11101_v34  ;;  %v10494_v31 = vld [vmem:[#allocation3 + $0x168] sm:$0xff]   ;;  %v11210_v32 = vcombine.low %v11104_v35, %v11114_v43  ;;  %v10495_v34 = vld [vmem:[#allocation3 + $0x120] sm:$0xff]   ;;  %v907_v35 = vrot.slane %v11141_v62, 1  ;;  %v10499_v43 = vld [vmem:[#allocation3 + $0x118] sm:$0xff]  }
  0x56   : > { %9288 = vmatprep.subr.bf16.mxu1 %v10470_v1  ;;  %v1302_v60 = vshll.u32 %v11194_v13, 16  ;;  %v1306_v23 = vshrl.u32 %v11194_v13, 16  ;;  %v1541_v24 = vrot.slane %v11186_v47, 1  ;;  %v10515_v56 = vld [vmem:[#allocation3 + $0x1f0] sm:$0xff]  }
  0x57   : > { %9209 = vmatmul.mubr.bf16.gmra.mxu0 %v11152_v5  ;;  %v11242_v11 = vsel %vm895_vm1, %v907_v35, %v11225_v2  ;;  %v1310_v29 = vshll.u32 %v11199_v55, 16  ;;  %v1314_v40 = vshrl.u32 %v11199_v55, 16 }
  0x58   : > { %9241 = vmatmul.mubr.bf16.gmra.mxu1 %v11098_v33  ;;  %9257 = vmatpush3.bf16.msra.mxu0 %v10469_v0  ;;  %v11218_v0 = vcombine.low %v11118_v46, %v11127_v53  ;;  %v1297_v46 = vshll.u32 %v11186_v47, 16  ;;  %v11229_v53 = vsel %vm895_vm1, %v905_v57, %v907_v35  ;;  %v1334_v57 = vshll.u32 %v11233_v3, 16 }
  0x59   : > { %9289 = vmatpush3.bf16.msra.mxu1 %v10470_v1  ;;  %9258 = vmatprep.subr.bf16.mxu0 %v10471_v6  ;;  %v10500_v1 = vld [vmem:[#allocation3 + $0x158] sm:$0xff]  }
  0x5a   : > { %9290 = vmatprep.subr.bf16.mxu1 %v10472_v9  ;;  %9212 = vmatprep.mubr.bf16.mxu0 %v11158_v10  ;;  %v1299_v54 = vrot.slane %v1297_v46, 1  ;;  %v10517_v46 = vld [vmem:[#allocation3 + $0x1e8] sm:$0xff]  }
  0x5b   : > { %9244 = vmatprep.mubr.bf16.mxu1 %v11111_v39 }
  0x5c   : > { %9259 = vmatpush3.bf16.msra.mxu0 %v10471_v6  ;;  %v11236_v6 = vld [vmem:[%s11062_s15 + $0x40] sm:$0xf] }
  0x5d   : > { %9291 = vmatpush3.bf16.msra.mxu1 %v10472_v9  ;;  %9260 = vmatprep.subr.bf16.mxu0 %v10475_v21  ;;  %v1295_v9 = vshrl.u32 %v11186_v47, 16  ;;  %v11246_v12 = vcombine.low %v11144_v63, %v11236_v6  ;;  %v1304_v63 = vrot.slane %v1302_v60, 1 }
  0x5e   : > { %9292 = vmatprep.subr.bf16.mxu1 %v10476_v22 }
  0x5f   : > { %9213 = vmatmul.mubr.bf16.gmra.mxu0 %v11166_v25 }
  0x60   : > { %9245 = vmatmul.mubr.bf16.gmra.mxu1 %v11123_v51  ;;  %9261 = vmatpush3.bf16.msra.mxu0 %v10475_v21  ;;  %v10509_v21 = vld [vmem:[#allocation3 + $0x148] sm:$0xff]  }
  0x61   : > { %9293 = vmatpush3.bf16.msra.mxu1 %v10476_v22  ;;  %9262 = vmatprep.subr.bf16.mxu0 %v10477_v26  ;;  %v1300_v22 = vor.u32 %v1299_v54, %v1295_v9  ;;  %v1336_v9 = vrot.slane %v1334_v57, 1  ;;  %v1550_v54 = vrot.slane %v11233_v3, 1 }
  0x62   : > { %9294 = vmatprep.subr.bf16.mxu1 %v10478_v27  ;;  %9216 = vmatprep.mubr.bf16.mxu0 %v11170_v28 }
  0x63   : > { %9248 = vmatprep.mubr.bf16.mxu1 %v11141_v62  ;;  %v1305_v38 = vsel %vm509_vm0, %v1300_v22, %v1304_v63  ;;  %v10518_v22 = vld [vmem:[#allocation3 + $0x1a0] sm:$0xff]  }
  0x64   : > { %9263 = vmatpush3.bf16.msra.mxu0 %v10477_v26  ;;  %v8121_v26 = vcombine.low %v11251_v18, %v11251_v18 }
  0x65   : > { %9295 = vmatpush3.bf16.msra.mxu1 %v10478_v27  ;;  %9264 = vmatprep.subr.bf16.mxu0 %v10481_v30  ;;  %v1542_v27 = vrot.slane %v11194_v13, 1 }
  0x66   : > { %9296 = vmatprep.subr.bf16.mxu1 %v10482_v36 }
  0x67   : > { %9217 = vmatmul.mubr.bf16.gmra.mxu0 %v11176_v37 }
  0x68   : > { %9249 = vmatmul.mubr.bf16.gmra.mxu1 %v8097_v41  ;;  %9265 = vmatpush3.bf16.msra.mxu0 %v10481_v30  ;;  %v10510_v30 = vld [vmem:[#allocation3 + $0x100] sm:$0xff]   ;;  %v1318_v41 = vshll.u32 %v11210_v32, 16 }
  0x69   : > { %9297 = vmatpush3.bf16.msra.mxu1 %v10482_v36  ;;  %9266 = vmatprep.subr.bf16.mxu0 %v10483_v42  ;;  %v10511_v36 = vld [vmem:[#allocation3 + $0x140] sm:$0xff]  }
  0x6a   : > { %9298 = vmatprep.subr.bf16.mxu1 %v10484_v44  ;;  %9268 = vmatprep.mubr.bf16.mxu0 %v898_v45  ;;  %v1312_v45 = vrot.slane %v1310_v29, 1  ;;  %v1320_v49 = vrot.slane %v1318_v41, 1 }
  0x6b   : > { %9300 = vmatprep.mubr.bf16.mxu1 %v11186_v47  ;;  %v1544_v47 = vrot.slane %v11199_v55, 1 }
  0x6c   : > { %9267 = vmatpush3.bf16.msra.mxu0 %v10483_v42  ;;  %v1308_v42 = vor.u32 %v1306_v23, %v1304_v63  ;;  %v10519_v63 = vld [vmem:[#allocation3 + $0x1e0] sm:$0xff]  }
  0x6d   : > { %9299 = vmatpush3.bf16.msra.mxu1 %v10484_v44  ;;  %9316 = vmatprep.subr.bf16.mxu0 %v10487_v16  ;;  %v1543_v44 = vsel %vm895_vm1, %v1541_v24, %v1542_v27  ;;  %v1346_v24 = vshrl.u32 %v11246_v12, 16 }
  0x6e   : > { %9348 = vmatprep.subr.bf16.mxu1 %v10488_v48 }
  0x6f   : > { %9269 = vmatmul.mubr.bf16.vlgmr.msra.gmra.mxu0 %v900_v50  ;;  %v1546_v50 = vrot.slane %v11210_v32, 1 }
  0x70   : > { %9301 = vmatmul.mubr.bf16.vlgmr.msra.gmra.mxu1 %v11194_v13  ;;  %9317 = vmatpush3.bf16.msra.mxu0 %v10487_v16  ;;  %v10513_v16 = vld [vmem:[#allocation3 + $0x1f8] sm:$0xff]   ;;  %v1313_v13 = vsel %vm509_vm0, %v1308_v42, %v1312_v45 }
  0x71   : > { %9349 = vmatpush3.bf16.msra.mxu1 %v10488_v48  ;;  %9318 = vmatprep.subr.bf16.mxu0 %v10489_v15  ;;  %v1316_v48 = vor.u32 %v1314_v40, %v1312_v45 }
  0x72   : > { %9350 = vmatprep.subr.bf16.mxu1 %v10490_v20  ;;  %9272 = vmatprep.mubr.bf16.mxu0 %v902_v52  ;;  %v1545_v52 = vsel %vm895_vm1, %v1542_v27, %v1544_v47 }
  0x73   : > { %9304 = vmatprep.mubr.bf16.mxu1 %v11199_v55  ;;  %v10514_v55 = vld [vmem:[#allocation3 + $0x1b0] sm:$0xff]  }
  0x74   : > { %9319 = vmatpush3.bf16.msra.mxu0 %v10489_v15  ;;  %v1322_v15 = vshrl.u32 %v11210_v32, 16 }
  0x75   : > { %9351 = vmatpush3.bf16.msra.mxu1 %v10490_v20  ;;  %9320 = vmatprep.subr.bf16.mxu0 %v10493_v17  ;;  %v1326_v20 = vshll.u32 %v11218_v0, 16 }
  0x76   : > { %9352 = vmatprep.subr.bf16.mxu1 %v10494_v31 }
  0x77   : > { %9273 = vmatmul.mubr.bf16.gmra.mxu0 %v11206_v58  ;;  %v1328_v35 = vrot.slane %v1326_v20, 1  ;;  %v10527_v20 = vld [vmem:[#allocation3 + $0x1c0] sm:$0xff]  }
  0x78   : > { %9305 = vmatmul.mubr.bf16.gmra.mxu1 %v11210_v32  ;;  %9321 = vmatpush3.bf16.msra.mxu0 %v10493_v17  ;;  %v1321_v17 = vsel %vm509_vm0, %v1316_v48, %v1320_v49  ;;  %v1547_v32 = vsel %vm895_vm1, %v1544_v47, %v1546_v50  ;;  %v10522_v47 = vld [vmem:[#allocation3 + $0x190] sm:$0xff]  }
  0x79   : > { %9353 = vmatpush3.bf16.msra.mxu1 %v10494_v31  ;;  %9322 = vmatprep.subr.bf16.mxu0 %v10495_v34  ;;  %v1330_v31 = vshrl.u32 %v11218_v0, 16 }
  0x7a   : > { %9354 = vmatprep.subr.bf16.mxu1 %v10496_v59  ;;  %9276 = vmatprep.mubr.bf16.mxu0 %v11214_v61 }
  0x7b   : > { %9308 = vmatprep.mubr.bf16.mxu1 %v11218_v0 }
  0x7c   : > { %9323 = vmatpush3.bf16.msra.mxu0 %v10495_v34  ;;  %v11276_v34 = vld [vmem:[%s11062_s15 + $0x48] sm:$0xf] }
  0x7d   : > { %9355 = vmatpush3.bf16.msra.mxu1 %v10496_v59  ;;  %9324 = vmatprep.subr.bf16.mxu0 %v10499_v43  ;;  %v1324_v59 = vor.u32 %v1322_v15, %v1320_v49  ;;  %v10524_v49 = vld [vmem:[#allocation3 + $0x188] sm:$0xff]   ;;  %v10526_v15 = vld [vmem:[#allocation3 + $0x180] sm:$0xff]  }
  0x7e   : > { %9356 = vmatprep.subr.bf16.mxu1 %v10500_v1 }
  0x7f   : > { %9277 = vmatmul.mubr.bf16.gmra.mxu0 %v11229_v53  ;;  %v1329_v60 = vsel %vm509_vm0, %v1324_v59, %v1328_v35 }
  0x80   : > { %9309 = vmatmul.mubr.bf16.gmra.mxu1 %v11233_v3  ;;  %9325 = vmatpush3.bf16.msra.mxu0 %v10499_v43  ;;  %v1548_v43 = vrot.slane %v11218_v0, 1  ;;  %v1342_v0 = vshll.u32 %v11246_v12, 16 }
  0x81   : > { %9357 = vmatpush3.bf16.msra.mxu1 %v10500_v1  ;;  %9326 = vmatprep.subr.bf16.mxu0 %v10501_v7  ;;  %v10516_v1 = vld [vmem:[#allocation3 + $0x1a8] sm:$0xff]  }
  0x82   : > { %9358 = vmatprep.subr.bf16.mxu1 %v10502_v8  ;;  %9280 = vmatprep.mubr.bf16.mxu0 %v11242_v11  ;;  %v1344_v29 = vrot.slane %v1342_v0, 1 }
  0x83   : > { %9312 = vmatprep.mubr.bf16.mxu1 %v11246_v12 }
  0x84   : > { %9327 = vmatpush3.bf16.msra.mxu0 %v10501_v7  ;;  %v11282_v7 = vcombine.low %v11251_v18, %v11276_v34  ;;  %v1348_v40 = vor.u32 %v1346_v24, %v1344_v29 }
  0x85   : > { %9359 = vmatpush3.bf16.msra.mxu1 %v10502_v8  ;;  %9328 = vmatprep.subr.bf16.mxu0 %v10508_v19  ;;  %v1332_v8 = vor.u32 %v1330_v31, %v1328_v35  ;;  %v10530_v31 = vld [vmem:[#allocation3 + $0x230] sm:$0xff]  }
  0x86   : > { %9360 = vmatprep.subr.bf16.mxu1 %v10509_v21 }
  0x87   : > { %9281 = vmatmul.mubr.bf16.gmra.mxu0 %v11225_v2  ;;  %v1337_v23 = vsel %vm509_vm0, %v1332_v8, %v1336_v9  ;;  %v8194_v8 = vld [vmem:[%s11062_s15 + $0x44] sm:$0xf] }
  0x88   : > { %9313 = vmatmul.mubr.bf16.gmra.mxu1 %v8121_v26  ;;  %9329 = vmatpush3.bf16.msra.mxu0 %v10508_v19  ;;  %v1338_v19 = vshrl.u32 %v11233_v3, 16  ;;  %v1350_v26 = vshll.u32 %v11282_v7, 16  ;;  %v1551_v3 = vsel %vm895_vm1, %v1548_v43, %v1550_v54 }
  0x89   : > { %9361 = vmatpush3.bf16.msra.mxu1 %v10509_v21  ;;  %9330 = vmatprep.subr.bf16.mxu0 %v10510_v30  ;;  %v1549_v21 = vsel %vm895_vm1, %v1546_v50, %v1548_v43  ;;  %v10525_v50 = vld [vmem:[#allocation3 + $0x1c8] sm:$0xff]  }
  0x8a   : > { %9362 = vmatprep.subr.bf16.mxu1 %v10511_v36  ;;  %9332 = vmatprep.mubr.bf16.mxu0 %v1305_v38  ;;  %v1340_v27 = vor.u32 %v1338_v19, %v1336_v9  ;;  %v10521_v38 = vld [vmem:[#allocation3 + $0x1d8] sm:$0xff]   ;;  %v1352_v41 = vrot.slane %v1350_v26, 1  ;;  %v11328_v9 = vld [vmem:[%s11062_s15 + $0x3c] sm:$0xff]  }
  0x8b   : > { %9364 = vmatprep.mubr.bf16.mxu1 %v1543_v44  ;;  %v1554_v44 = vrot.slane %v11282_v7, 1  ;;  %v2570_v24 = vshrl.u32 %v11328_v9, 16  ;;  %v11348_v26 = vld [vmem:[%s11062_s15 + $0x54] sm:$0xf] }
  0x8c   : > { %9331 = vmatpush3.bf16.msra.mxu0 %v10510_v30  ;;  %v1552_v30 = vrot.slane %v11246_v12, 1  ;;  %v1345_v42 = vsel %vm509_vm0, %v1340_v27, %v1344_v29  ;;  %v1353_v12 = vsel %vm509_vm0, %v1348_v40, %v1352_v41  ;;  %v11352_v27 = vld [vmem:[%s11062_s15 + $0x58] sm:$0xf] }
  0x8d   : > { %9363 = vmatpush3.bf16.msra.mxu1 %v10511_v36  ;;  %9380 = vmatprep.subr.bf16.mxu0 %v10512_v14  ;;  %v10520_v36 = vld [vmem:[#allocation3 + $0x198] sm:$0xff]  }
  0x8e   : > { %9412 = vmatprep.subr.bf16.mxu1 %v10513_v16  ;;  %v1553_v45 = vsel %vm895_vm1, %v1550_v54, %v1552_v30  ;;  %v1555_v48 = vsel %vm895_vm1, %v1552_v30, %v1554_v44 }
  0x8f   : > { %9333 = vmatmul.mubr.bf16.vlgmr.msra.gmra.mxu0 %v1313_v13 }
  0x90   : > { %9365 = vmatmul.mubr.bf16.vlgmr.msra.gmra.mxu1 %v1545_v52  ;;  %9381 = vmatpush3.bf16.msra.mxu0 %v10512_v14  ;;  %v10523_v14 = vld [vmem:[#allocation3 + $0x1d0] sm:$0xff]   ;;  %v10528_v52 = vld [vmem:[#allocation3 + $0x238] sm:$0xff]  }
  0x91   : > { %9413 = vmatpush3.bf16.msra.mxu1 %v10513_v16  ;;  %9382 = vmatprep.subr.bf16.mxu0 %v10514_v55  ;;  %v1354_v16 = vshrl.u32 %v11282_v7, 16 }
  0x92   : > { %9414 = vmatprep.subr.bf16.mxu1 %v10515_v56  ;;  %9336 = vmatprep.mubr.bf16.mxu0 %v1321_v17  ;;  %v11304_v17 = vcombine.low %v11236_v6, %v11251_v18  ;;  %v10533_v6 = vld [vmem:[#allocation3 + $0x68] sm:$0xff]  }
  0x93   : > { %9368 = vmatprep.mubr.bf16.mxu1 %v1547_v32  ;;  %v1356_v13 = vor.u32 %v1354_v16, %v1352_v41  ;;  %v10531_v32 = vld [vmem:[#allocation3 + $0x70] sm:$0xff]   ;;  %v10544_v16 = vld [vmem:[#allocation3 + $0x40] sm:$0xff]  }
  0x94   : > { %9383 = vmatpush3.bf16.msra.mxu0 %v10514_v55  ;;  %v10529_v55 = vld [vmem:[#allocation3 + $0x78] sm:$0xff]   ;;  %v1915_v59 = vshrl.u32 %v11304_v17, 16 }
  0x95   : > { %9415 = vmatpush3.bf16.msra.mxu1 %v10515_v56  ;;  %9384 = vmatprep.subr.bf16.mxu0 %v10516_v1  ;;  %v434_v56 = vld [vmem:[%s11062_s15 + $0x4c] sm:$0xf] }
  0x96   : > { %9416 = vmatprep.subr.bf16.mxu1 %v10517_v46  ;;  %v11308_v57 = vcombine.low %v11276_v34, %v434_v56  ;;  %v11389_v56 = vld [vmem:[%s11062_s15 + $0x64] sm:$0xf] }
  0x97   : > { %9337 = vmatmul.mubr.bf16.gmra.mxu0 %v1329_v60 }
  0x98   : > { %9369 = vmatmul.mubr.bf16.gmra.mxu1 %v1549_v21  ;;  %9385 = vmatpush3.bf16.msra.mxu0 %v10516_v1  ;;  %v1919_v18 = vshll.u32 %v11308_v57, 16  ;;  %v1923_v35 = vshrl.u32 %v11308_v57, 16  ;;  %v2572_v21 = vshll.u32 %v11328_v9, 16 }
  0x99   : > { %9417 = vmatpush3.bf16.msra.mxu1 %v10517_v46  ;;  %9386 = vmatprep.subr.bf16.mxu0 %v10518_v22  ;;  %v10537_v46 = vld [vmem:[#allocation3 + $0x58] sm:$0xff]  }
  0x9a   : > { %9418 = vmatprep.subr.bf16.mxu1 %v10519_v63  ;;  %9340 = vmatprep.mubr.bf16.mxu0 %v1337_v23  ;;  %v1921_v43 = vrot.slane %v1919_v18, 1  ;;  %v10539_v23 = vld [vmem:[#allocation3 + $0x50] sm:$0xff]   ;;  %v2574_v40 = vrot.slane %v2572_v21, 1  ;;  %v10549_v18 = vld [vmem:[#allocation3 + $0xb8] sm:$0xff]   ;;  %v11421_v21 = vld [vmem:[%s11062_s15 + $0x78] sm:$0xf] }
  0x9b   : > { %9372 = vmatprep.mubr.bf16.mxu1 %v1551_v3  ;;  %v10541_v3 = vld [vmem:[#allocation3 + $0x208] sm:$0xff]  }
  0x9c   : > { %9387 = vmatpush3.bf16.msra.mxu0 %v10518_v22  ;;  %v1925_v60 = vor.u32 %v1923_v35, %v1921_v43  ;;  %v11340_v22 = vld [vmem:[%s11062_s15 + $0x4c] sm:$0xf] }
  0x9d   : > { %9419 = vmatpush3.bf16.msra.mxu1 %v10519_v63  ;;  %9388 = vmatprep.subr.bf16.mxu0 %v10520_v36  ;;  %v11343_v63 = vld [vmem:[%s11062_s15 + $0x50] sm:$0xf] }
  0x9e   : > { %9420 = vmatprep.subr.bf16.mxu1 %v10521_v38 }
  0x9f   : > { %9341 = vmatmul.mubr.bf16.gmra.mxu0 %v1345_v42  ;;  %v11363_v42 = vld [vmem:[%s11062_s15 + $0x5c] sm:$0xf] }
  0xa0   : > { %9373 = vmatmul.mubr.bf16.gmra.mxu1 %v1553_v45  ;;  %9389 = vmatpush3.bf16.msra.mxu0 %v10520_v36  ;;  %v13164_v36 = vmov 0  ;;  %v11372_v45 = vcombine.low %v11348_v26, %v11352_v27 }
  0xa1   : > { %9421 = vmatpush3.bf16.msra.mxu1 %v10521_v38  ;;  %9390 = vmatprep.subr.bf16.mxu0 %v10522_v47  ;;  %v13165_v36 = vsel %vm11357_vm4, 4294967295, %v13164_v36  ;;  %v10542_v38 = vld [vmem:[#allocation3 + $0x48] sm:$0xff]  }
  0xa2   : > { %9422 = vmatprep.subr.bf16.mxu1 %v10523_v14  ;;  %9344 = vmatprep.mubr.bf16.mxu0 %v1353_v12  ;;  %13166 = vst [vmem:[#allocation9_spill] sm:$0xff] %v13165_v36 }
  0xa3   : > { %9376 = vmatprep.mubr.bf16.mxu1 %v1555_v48  ;;  %v2575_v48 = vor.u32 %v2574_v40, %v2570_v24  ;;  %v10557_v40 = vld [vmem:[#allocation3 + $0xa0] sm:$0xff]  }
  0xa4   : > { %9391 = vmatpush3.bf16.msra.mxu0 %v10522_v47  ;;  %v11375_v47 = vld [vmem:[%s11062_s15 + $0x60] sm:$0xf] }
  0xa5   : > { %9423 = vmatpush3.bf16.msra.mxu1 %v10523_v14  ;;  %9392 = vmatprep.subr.bf16.mxu0 %v10524_v49  ;;  %v10543_v14 = vld [vmem:[#allocation3 + $0x200] sm:$0xff]  }
  0xa6   : > { %9424 = vmatprep.subr.bf16.mxu1 %v10525_v50 }
  0xa7   : > { %9345 = vmatmul.mubr.bf16.gmra.mxu0 %v1356_v13 }
  0xa8   : > { %9377 = vmatmul.mubr.bf16.gmra.mxu1 %v1554_v44  ;;  %9393 = vmatpush3.bf16.msra.mxu0 %v10524_v49  ;;  %v11367_v44 = vcombine.low %v11340_v22, %v11343_v63 }
  0xa9   : > { %9425 = vmatpush3.bf16.msra.mxu1 %v10525_v50  ;;  %9394 = vmatprep.subr.bf16.mxu0 %v10526_v15 }
  0xaa   : > { %9426 = vmatprep.subr.bf16.mxu1 %v10527_v20  ;;  %9396 = vmatprep.mubr.bf16.mxu0 %v11098_v33  ;;  %v1911_v33 = vshll.u32 %v11304_v17, 16  ;;  %v2585_v13 = vshll.u32 %v11367_v44, 16 }
  0xab   : > { %9428 = vmatprep.mubr.bf16.mxu1 %v11152_v5  ;;  %v10532_v5 = vld [vmem:[#allocation3 + $0x228] sm:$0xff]  }
  0xac   : > { %9395 = vmatpush3.bf16.msra.mxu0 %v10526_v15  ;;  %v1913_v34 = vrot.slane %v1911_v33, 1  ;;  %v11383_v15 = vcombine.low %v11363_v42, %v11375_v47 }
  0xad   : > { %9427 = vmatpush3.bf16.msra.mxu1 %v10527_v20  ;;  %9444 = vmatprep.subr.bf16.mxu0 %v10528_v52  ;;  %v2589_v20 = vshrl.u32 %v11367_v44, 16 }
  0xae   : > { %9476 = vmatprep.subr.bf16.mxu1 %v10529_v55  ;;  %v1914_v1 = vsel %vm509_vm0, %v11176_v37, %v1913_v34  ;;  %v1917_v54 = vor.u32 %v1915_v59, %v1913_v34  ;;  %v10550_v34 = vld [vmem:[#allocation3 + $0x30] sm:$0xff]  }
  0xaf   : > { %9397 = vmatmul.mubr.bf16.vlgmr.msra.gmra.mxu0 %v11111_v39  ;;  %v11318_v39 = vld [vmem:[%s11062_s15 + $0x50] ss:$0 sps:$4 sm:$0xff]  }
  0xb0   : > { %9429 = vmatmul.mubr.bf16.vlgmr.msra.gmra.mxu1 %v11158_v10  ;;  %9445 = vmatpush3.bf16.msra.mxu0 %v10528_v52  ;;  %v10534_v10 = vld [vmem:[#allocation3 + $0x220] sm:$0xff]   ;;  %v1927_v7 = vshll.u32 %v11318_v39, 16  ;;  %v1931_v37 = vshrl.u32 %v11318_v39, 16  ;;  %v2593_v52 = vshll.u32 %v11372_v45, 16 }
  0xb1   : > { %9477 = vmatpush3.bf16.msra.mxu1 %v10529_v55  ;;  %9446 = vmatprep.subr.bf16.mxu0 %v10530_v31  ;;  %v10548_v55 = vld [vmem:[#allocation3 + $0x38] sm:$0xff]  }
  0xb2   : > { %9478 = vmatprep.subr.bf16.mxu1 %v10531_v32  ;;  %9400 = vmatprep.mubr.bf16.mxu0 %v11123_v51  ;;  %v10535_v51 = vld [vmem:[#allocation3 + $0x60] sm:$0xff]   ;;  %v1929_v19 = vrot.slane %v1927_v7, 1  ;;  %v10554_v7 = vld [vmem:[#allocation3 + $0x28] sm:$0xff]  }
  0xb3   : > { %9432 = vmatprep.mubr.bf16.mxu1 %v11166_v25  ;;  %v10536_v25 = vld [vmem:[#allocation3 + $0x218] sm:$0xff]  }
  0xb4   : > { %9447 = vmatpush3.bf16.msra.mxu0 %v10530_v31  ;;  %v1930_v29 = vsel %vm509_vm0, %v1925_v60, %v1929_v19  ;;  %v1933_v30 = vor.u32 %v1931_v37, %v1929_v19  ;;  %v11414_v37 = vld [vmem:[%s11062_s15 + $0x74] sm:$0xf] }
  0xb5   : > { %9479 = vmatpush3.bf16.msra.mxu1 %v10531_v32  ;;  %9448 = vmatprep.subr.bf16.mxu0 %v10532_v5  ;;  %v11393_v32 = vld [vmem:[%s11062_s15 + $0x68] sm:$0xf] }
  0xb6   : > { %9480 = vmatprep.subr.bf16.mxu1 %v10533_v6  ;;  %v1941_v12 = vsel %vm11357_vm4, %v1933_v30, 0  ;;  %v11399_v59 = vcombine.low %v11389_v56, %v11393_v32  ;;  %v10556_v30 = vld [vmem:[#allocation3 + $0x20] sm:$0xff]  }
  0xb7   : > { %9401 = vmatmul.mubr.bf16.gmra.mxu0 %v11141_v62  ;;  %v11331_v62 = vld [vmem:[%s11062_s15 + $0x48] sm:$0xf] }
  0xb8   : > { %9433 = vmatmul.mubr.bf16.gmra.mxu1 %v11170_v28  ;;  %9449 = vmatpush3.bf16.msra.mxu0 %v10532_v5  ;;  %v10538_v28 = vld [vmem:[#allocation3 + $0x210] sm:$0xff]   ;;  %v11336_v0 = vcombine.low %v8194_v8, %v11331_v62  ;;  %v2587_v5 = vrot.slane %v2585_v13, 1  ;;  %v2605_v8 = vshrl.u32 %v11383_v15, 16 }
  0xb9   : > { %9481 = vmatpush3.bf16.msra.mxu1 %v10533_v6  ;;  %9450 = vmatprep.subr.bf16.mxu0 %v10534_v10  ;;  %v2601_v6 = vshll.u32 %v11383_v15, 16 }
  0xba   : > { %9482 = vmatprep.subr.bf16.mxu1 %v10535_v51  ;;  %9404 = vmatprep.mubr.bf16.mxu0 %v11149_v4  ;;  %v1922_v4 = vsel %vm509_vm0, %v1917_v54, %v1921_v43  ;;  %v2577_v41 = vshll.u32 %v11336_v0, 16  ;;  %v2581_v50 = vshrl.u32 %v11336_v0, 16  ;;  %v2591_v35 = vor.u32 %v2589_v20, %v2587_v5 }
  0xbb   : > { %9436 = vmatprep.mubr.bf16.mxu1 %v1914_v1  ;;  %v11404_v1 = vld [vmem:[%s11062_s15 + $0x6c] sm:$0xf]  ;;  %v2609_v54 = vshll.u32 %v11399_v59, 16 }
  0xbc   : > { %9451 = vmatpush3.bf16.msra.mxu0 %v10534_v10  ;;  %v2579_v49 = vrot.slane %v2577_v41, 1  ;;  %v10551_v10 = vld [vmem:[#allocation3 + $0xb0] sm:$0xff]  }
  0xbd   : > { %9483 = vmatpush3.bf16.msra.mxu1 %v10535_v51  ;;  %9452 = vmatprep.subr.bf16.mxu0 %v10536_v25  ;;  %v2595_v51 = vrot.slane %v2593_v52, 1  ;;  %v2611_v24 = vrot.slane %v2609_v54, 1  ;;  %v2958_v54 = vrot.slane %v11372_v45, 1 }
  0xbe   : > { %9484 = vmatprep.subr.bf16.mxu1 %v10537_v46  ;;  %v2580_v31 = vsel %vm509_vm0, %v2575_v48, %v2579_v49  ;;  %v2583_v33 = vor.u32 %v2581_v50, %v2579_v49  ;;  %v2122_v50 = vrot.slane %v11318_v39, 1 }
  0xbf   : > { %9405 = vmatmul.mubr.bf16.gmra.mxu0 %v11304_v17 }
  0xc0   : > { %9437 = vmatmul.mubr.bf16.gmra.mxu1 %v1922_v4  ;;  %9453 = vmatpush3.bf16.msra.mxu0 %v10536_v25  ;;  %v2588_v43 = vsel %vm509_vm0, %v2583_v33, %v2587_v5  ;;  %v2597_v25 = vshrl.u32 %v11372_v45, 16  ;;  %v2118_v4 = vrot.slane %v11304_v17, 1 }
  0xc1   : > { %9485 = vmatpush3.bf16.msra.mxu1 %v10537_v46  ;;  %9454 = vmatprep.subr.bf16.mxu0 %v10538_v28  ;;  %v11407_v46 = vld [vmem:[%s11062_s15 + $0x70] sm:$0xf] }
  0xc2   : > { %9486 = vmatprep.subr.bf16.mxu1 %v10539_v23  ;;  %9408 = vmatprep.mubr.bf16.mxu0 %v11308_v57  ;;  %v2599_v60 = vor.u32 %v2597_v25, %v2595_v51  ;;  %v11418_v19 = vcombine.low %v11404_v1, %v11407_v46  ;;  %v2119_v17 = vsel %vm895_vm1, %v11225_v2, %v2118_v4  ;;  %v10561_v2 = vld [vmem:[#allocation3 + $0x98] sm:$0xff]  }
  0xc3   : > { %9440 = vmatprep.mubr.bf16.mxu1 %v1930_v29 }
  0xc4   : > { %9455 = vmatpush3.bf16.msra.mxu0 %v10538_v28  ;;  %v2596_v28 = vsel %vm509_vm0, %v2591_v35, %v2595_v51  ;;  %v2954_v35 = vrot.slane %v11336_v0, 1  ;;  %v10567_v51 = vld [vmem:[#allocation3] sm:$0xff]  }
  0xc5   : > { %9487 = vmatpush3.bf16.msra.mxu1 %v10539_v23  ;;  %9456 = vmatprep.subr.bf16.mxu0 %v10541_v3 }
  0xc6   : > { %9488 = vmatprep.subr.bf16.mxu1 %v10542_v38 }
  0xc7   : > { %9409 = vmatmul.mubr.bf16.gmra.mxu0 %v11318_v39 }
  0xc8   : > { %9441 = vmatmul.mubr.bf16.gmra.mxu1 %v1941_v12  ;;  %9457 = vmatpush3.bf16.msra.mxu0 %v10541_v3  ;;  %v11427_v3 = vcombine.low %v11414_v37, %v11421_v21  ;;  %v2621_v12 = vshrl.u32 %v11418_v19, 16 }
  0xc9   : > { %9489 = vmatpush3.bf16.msra.mxu1 %v10542_v38  ;;  %9458 = vmatprep.subr.bf16.mxu0 %v10543_v14  ;;  %v2613_v38 = vshrl.u32 %v11399_v59, 16 }
  0xca   : > { %9490 = vmatprep.subr.bf16.mxu1 %v10544_v16  ;;  %9460 = vmatprep.mubr.bf16.mxu0 %v11206_v58  ;;  %v2603_v58 = vrot.slane %v2601_v6, 1  ;;  %v2629_v5 = vshrl.u32 %v11427_v3, 16  ;;  %v10565_v6 = vld [vmem:[#allocation3 + $0x8] sm:$0xff]  }
  0xcb   : > { %9492 = vmatprep.mubr.bf16.mxu1 %v2580_v31  ;;  %v2615_v48 = vor.u32 %v2613_v38, %v2611_v24  ;;  %v10563_v31 = vld [vmem:[#allocation3 + $0x90] sm:$0xff]   ;;  %v10575_v38 = vld [vmem:[#allocation3 + $0xe0] sm:$0xff]  }
  0xcc   : > { %9459 = vmatpush3.bf16.msra.mxu0 %v10543_v14  ;;  %v2607_v23 = vor.u32 %v2605_v8, %v2603_v58  ;;  %v11430_v29 = vsel %vm509_vm0, %v2599_v60, %v2603_v58  ;;  %v2120_v14 = vrot.slane %v11308_v57, 1  ;;  %v2956_v58 = vrot.slane %v11367_v44, 1  ;;  %v10570_v8 = vld [vmem:[#allocation3 + $0x138] sm:$0xff]   ;;  %v10571_v60 = vld [vmem:[#allocation3 + $0xf0] sm:$0xff]  }
  0xcd   : > { %9491 = vmatpush3.bf16.msra.mxu1 %v10544_v16  ;;  %9508 = vmatprep.subr.bf16.mxu0 %v10548_v55  ;;  %v2625_v16 = vshll.u32 %v11427_v3, 16 }
  0xce   : > { %9540 = vmatprep.subr.bf16.mxu1 %v10549_v18  ;;  %v11439_v41 = vsel %vm509_vm0, %v2607_v23, %v2611_v24  ;;  %v2121_v13 = vsel %vm895_vm1, %v2118_v4, %v2120_v14  ;;  %v2123_v33 = vsel %vm895_vm1, %v2120_v14, %v2122_v50  ;;  %v2959_v4 = vsel %vm895_vm1, %v2956_v58, %v2958_v54  ;;  %v10573_v23 = vld [vmem:[#allocation3 + $0xe8] sm:$0xff]   ;;  %v10577_v14 = vld [vmem:[#allocation3 + $0xd8] sm:$0xff]  }
  0xcf   : > { %9461 = vmatmul.mubr.bf16.vlgmr.msra.gmra.mxu0 %v11214_v61  ;;  %v10555_v61 = vld [vmem:[#allocation3 + $0xa8] sm:$0xff]   ;;  %v2627_v20 = vrot.slane %v2625_v16, 1  ;;  %v11489_v16 = vrot.slane %v11427_v3, 1 }
  0xd0   : > { %9493 = vmatmul.mubr.bf16.vlgmr.msra.gmra.mxu1 %v2588_v43  ;;  %9509 = vmatpush3.bf16.msra.mxu0 %v10548_v55  ;;  %v10562_v55 = vld [vmem:[#allocation3 + $0x10] sm:$0xff]   ;;  %v10568_v43 = vld [vmem:[#allocation3 + $0x80] sm:$0xff]   ;;  %v10574_v24 = vld [vmem:[#allocation3 + $0x128] sm:$0xff]  }
  0xd1   : > { %9541 = vmatpush3.bf16.msra.mxu1 %v10549_v18  ;;  %9510 = vmatprep.subr.bf16.mxu0 %v10550_v34  ;;  %v10566_v18 = vld [vmem:[#allocation3 + $0x88] sm:$0xff]  }
  0xd2   : > { %9542 = vmatprep.subr.bf16.mxu1 %v10551_v10  ;;  %9464 = vmatprep.mubr.bf16.mxu0 %v11229_v53  ;;  %v2617_v53 = vshll.u32 %v11418_v19, 16 }
  0xd3   : > { %9496 = vmatprep.mubr.bf16.mxu1 %v2596_v28  ;;  %v2957_v28 = vsel %vm895_vm1, %v2954_v35, %v2956_v58  ;;  %v10590_v58 = vld [vmem:[#allocation3 + $0x1b8] sm:$0xff]  }
  0xd4   : > { %9511 = vmatpush3.bf16.msra.mxu0 %v10550_v34  ;;  %v2619_v49 = vrot.slane %v2617_v53, 1  ;;  %v11457_v34 = vor.u32 %v2629_v5, %v2627_v20  ;;  %v10576_v53 = vld [vmem:[#allocation3 + $0x120] sm:$0xff]   ;;  %v11517_v5 = vcombine.low %v11375_v47, %v11389_v56 }
  0xd5   : > { %9543 = vmatpush3.bf16.msra.mxu1 %v10551_v10  ;;  %9512 = vmatprep.subr.bf16.mxu0 %v10554_v7  ;;  %v2953_v10 = vrot.slane %v11328_v9, 1 }
  0xd6   : > { %9544 = vmatprep.subr.bf16.mxu1 %v10555_v61  ;;  %v2623_v57 = vor.u32 %v2621_v12, %v2619_v49  ;;  %v11448_v52 = vsel %vm509_vm0, %v2615_v48, %v2619_v49  ;;  %v10578_v12 = vld [vmem:[#allocation3 + $0x118] sm:$0xff]   ;;  %v11493_v48 = vcombine.low %v11343_v63, %v11348_v26  ;;  %v10579_v49 = vld [vmem:[#allocation3 + $0xd0] sm:$0xff]   ;;  %v3373_v47 = vshll.u32 %v11517_v5, 16 }
  0xd7   : > { %9465 = vmatmul.mubr.bf16.gmra.mxu0 %v11242_v11  ;;  %v10560_v11 = vld [vmem:[#allocation3 + $0x18] sm:$0xff]   ;;  %v2955_v25 = vsel %vm895_vm1, %v2953_v10, %v2954_v35 }
  0xd8   : > { %9497 = vmatmul.mubr.bf16.gmra.mxu1 %v11430_v29  ;;  %9513 = vmatpush3.bf16.msra.mxu0 %v10554_v7  ;;  %v11453_v39 = vsel %vm509_vm0, %v2623_v57, %v2627_v20  ;;  %v10569_v7 = vld [vmem:[#allocation3 + $0xf8] sm:$0xff]   ;;  %v11509_v57 = vcombine.low %v11352_v27, %v11363_v42  ;;  %v10583_v20 = vld [vmem:[#allocation3 + $0x108] sm:$0xff]   ;;  %v10584_v27 = vld [vmem:[#allocation3 + $0xc0] sm:$0xff]   ;;  %v3361_v42 = vshrl.u32 %v11493_v48, 16 }
  0xd9   : > { %9545 = vmatpush3.bf16.msra.mxu1 %v10555_v61  ;;  %9514 = vmatprep.subr.bf16.mxu0 %v10556_v30  ;;  %v10572_v61 = vld [vmem:[#allocation3 + $0x130] sm:$0xff]  }
  0xda   : > { %9546 = vmatprep.subr.bf16.mxu1 %v10557_v40  ;;  %9468 = vmatprep.mubr.bf16.mxu0 %v2119_v17  ;;  %v2964_v17 = vrot.slane %v11418_v19, 1  ;;  %v3369_v35 = vshrl.u32 %v11509_v57, 16 }
  0xdb   : > { %9500 = vmatprep.mubr.bf16.mxu1 %v11439_v41 }
  0xdc   : > { %9515 = vmatpush3.bf16.msra.mxu0 %v10556_v30  ;;  %v2962_v30 = vrot.slane %v11399_v59, 1 }
  0xdd   : > { %9547 = vmatpush3.bf16.msra.mxu1 %v10557_v40  ;;  %9516 = vmatprep.subr.bf16.mxu0 %v10560_v11  ;;  %v11483_v40 = vcombine.low %v11331_v62, %v11340_v22 }
  0xde   : > { %9548 = vmatprep.subr.bf16.mxu1 %v10561_v2  ;;  %v11497_v22 = vsel %vm895_vm1, %v2962_v30, %v2964_v17 }
  0xdf   : > { %9469 = vmatmul.mubr.bf16.gmra.mxu0 %v2121_v13  ;;  %v3352_v62 = vshll.u32 %v11483_v40, 16  ;;  %v3350_v63 = vshrl.u32 %v11483_v40, 16  ;;  %v10582_v13 = vld [vmem:[#allocation3 + $0xc8] sm:$0xff]  }
  0xe0   : > { %9501 = vmatmul.mubr.bf16.gmra.mxu1 %v11448_v52  ;;  %9517 = vmatpush3.bf16.msra.mxu0 %v10560_v11  ;;  %v10580_v11 = vld [vmem:[#allocation3 + $0x110] sm:$0xff]  }
  0xe1   : > { %9549 = vmatpush3.bf16.msra.mxu1 %v10561_v2  ;;  %9518 = vmatprep.subr.bf16.mxu0 %v10562_v55  ;;  %v11503_v2 = vsel %vm895_vm1, %v2964_v17, %v11489_v16  ;;  %v3354_v26 = vrot.slane %v3352_v62, 1  ;;  %v11551_v62 = vld [vmem:[%s11062_s15 + $0x80] sm:$0xf] }
  0xe2   : > { %9550 = vmatprep.subr.bf16.mxu1 %v10563_v31  ;;  %9472 = vmatprep.mubr.bf16.mxu0 %v2123_v33 }
  0xe3   : > { %9504 = vmatprep.mubr.bf16.mxu1 %v11453_v39 }
  0xe4   : > { %9519 = vmatpush3.bf16.msra.mxu0 %v10562_v55  ;;  %v8229_v55 = vcombine.low %v11414_v37, %v11414_v37 }
  0xe5   : > { %9551 = vmatpush3.bf16.msra.mxu1 %v10563_v31  ;;  %9520 = vmatprep.subr.bf16.mxu0 %v10565_v6  ;;  %v3355_v31 = vor.u32 %v3354_v26, %v3350_v63  ;;  %v10596_v63 = vld [vmem:[#allocation3 + $0x1a8] sm:$0xff]  }
  0xe6   : > { %9552 = vmatprep.subr.bf16.mxu1 %v10566_v18 }
  0xe7   : > { %9473 = vmatmul.mubr.msk.bf16.gmra.mxu0 %vm2127_vm5, %v2122_v50  ;;  %v3357_v50 = vshll.u32 %v11493_v48, 16 }
  0xe8   : > { %9505 = vmatmul.mubr.bf16.gmra.mxu1 %v11457_v34  ;;  %9521 = vmatpush3.bf16.msra.mxu0 %v10565_v6  ;;  %v3365_v6 = vshll.u32 %v11509_v57, 16 }
  0xe9   : > { %9553 = vmatpush3.bf16.msra.mxu1 %v10566_v18  ;;  %9522 = vmatprep.subr.bf16.mxu0 %v10567_v51  ;;  %v3359_v33 = vrot.slane %v3357_v50, 1  ;;  %v10585_v18 = vld [vmem:[#allocation3 + $0x100] sm:$0xff]  }
  0xea   : > { %9554 = vmatprep.subr.bf16.mxu1 %v10568_v43  ;;  %9524 = vmatprep.mubr.bf16.mxu0 %v11328_v9  ;;  %v2960_v9 = vrot.slane %v11383_v15, 1 }
  0xeb   : > { %9556 = vmatprep.mubr.bf16.mxu1 %v2955_v25  ;;  %v3360_v10 = vsel %vm509_vm0, %v3355_v31, %v3359_v33  ;;  %v3363_v56 = vor.u32 %v3361_v42, %v3359_v33  ;;  %v11527_v25 = vcombine.low %v11393_v32, %v11404_v1  ;;  %v3377_v32 = vshrl.u32 %v11517_v5, 16  ;;  %v10597_v42 = vld [vmem:[#allocation3 + $0x160] sm:$0xff]  }
  0xec   : > { %9523 = vmatpush3.bf16.msra.mxu0 %v10567_v51  ;;  %v3367_v51 = vrot.slane %v3365_v6, 1 }
  0xed   : > { %9555 = vmatpush3.bf16.msra.mxu1 %v10568_v43  ;;  %9572 = vmatprep.subr.bf16.mxu0 %v10569_v7  ;;  %v10589_v43 = vld [vmem:[#allocation3 + $0x178] sm:$0xff]   ;;  %v3381_v1 = vshll.u32 %v11527_v25, 16 }
  0xee   : > { %9604 = vmatprep.subr.bf16.mxu1 %v10570_v8 }
  0xef   : > { %9525 = vmatmul.mubr.bf16.vlgmr.msra.gmra.mxu0 %v11336_v0  ;;  %v11474_v0 = vsel %vm895_vm1, %v2958_v54, %v2960_v9  ;;  %v11532_v54 = vcombine.low %v11407_v46, %v11414_v37  ;;  %v3383_v17 = vrot.slane %v3381_v1, 1  ;;  %v10601_v1 = vld [vmem:[#allocation3 + $0x158] sm:$0xff]  }
  0xf0   : > { %9557 = vmatmul.mubr.bf16.vlgmr.msra.gmra.mxu1 %v2957_v28  ;;  %9573 = vmatpush3.bf16.msra.mxu0 %v10569_v7  ;;  %v3371_v7 = vor.u32 %v3369_v35, %v3367_v51  ;;  %v3368_v28 = vsel %vm509_vm0, %v3363_v56, %v3367_v51  ;;  %v10598_v35 = vld [vmem:[#allocation3 + $0x1a0] sm:$0xff]  }
  0xf1   : > { %9605 = vmatpush3.bf16.msra.mxu1 %v10570_v8  ;;  %9574 = vmatprep.subr.bf16.mxu0 %v10571_v60  ;;  %v3375_v8 = vrot.slane %v3373_v47, 1  ;;  %v3393_v6 = vshrl.u32 %v11532_v54, 16 }
  0xf2   : > { %9606 = vmatprep.subr.bf16.mxu1 %v10572_v61  ;;  %9528 = vmatprep.mubr.bf16.mxu0 %v11367_v44  ;;  %v11479_v44 = vsel %vm895_vm1, %v2960_v9, %v2962_v30 }
  0xf3   : > { %9560 = vmatprep.mubr.bf16.mxu1 %v2959_v4  ;;  %v11538_v4 = vld [vmem:[%s11062_s15 + $0x7c] sm:$0xf]  ;;  %v3376_v37 = vsel %vm509_vm0, %v3371_v7, %v3375_v8 }
  0xf4   : > { %9575 = vmatpush3.bf16.msra.mxu0 %v10571_v60  ;;  %v10591_v60 = vld [vmem:[#allocation3 + $0x170] sm:$0xff]  }
  0xf5   : > { %9607 = vmatpush3.bf16.msra.mxu1 %v10572_v61  ;;  %9576 = vmatprep.subr.bf16.mxu0 %v10573_v23  ;;  %v10592_v61 = vld [vmem:[#allocation3 + $0x1b0] sm:$0xff]  }
  0xf6   : > { %9608 = vmatprep.subr.bf16.mxu1 %v10574_v24 }
  0xf7   : > { %9529 = vmatmul.mubr.bf16.gmra.mxu0 %v11372_v45 }
  0xf8   : > { %9561 = vmatmul.mubr.bf16.gmra.mxu1 %v11474_v0  ;;  %9577 = vmatpush3.bf16.msra.mxu0 %v10573_v23  ;;  %v3385_v23 = vshrl.u32 %v11527_v25, 16 }
  0xf9   : > { %9609 = vmatpush3.bf16.msra.mxu1 %v10574_v24  ;;  %9578 = vmatprep.subr.bf16.mxu0 %v10575_v38  ;;  %v3389_v24 = vshll.u32 %v11532_v54, 16 }
  0xfa   : > { %9610 = vmatprep.subr.bf16.mxu1 %v10576_v53  ;;  %9532 = vmatprep.mubr.bf16.mxu0 %v11383_v15 }
  0xfb   : > { %9564 = vmatprep.mubr.bf16.mxu1 %v11479_v44 }
  0xfc   : > { %9579 = vmatpush3.bf16.msra.mxu0 %v10575_v38 }
  0xfd   : > { %9611 = vmatpush3.bf16.msra.mxu1 %v10576_v53  ;;  %9580 = vmatprep.subr.bf16.mxu0 %v10577_v14  ;;  %v3379_v53 = vor.u32 %v3377_v32, %v3375_v8 }
  0xfe   : > { %9612 = vmatprep.subr.bf16.mxu1 %v10578_v12 }
  0xff   : > { %9533 = vmatmul.mubr.bf16.gmra.mxu0 %v11399_v59 }
 0x100   : > { %9565 = vmatmul.mubr.bf16.gmra.mxu1 %v11497_v22  ;;  %9581 = vmatpush3.bf16.msra.mxu0 %v10577_v14  ;;  %v10595_v14 = vld [vmem:[#allocation3 + $0x168] sm:$0xff]  }
 0x101   : > { %9613 = vmatpush3.bf16.msra.mxu1 %v10578_v12  ;;  %9582 = vmatprep.subr.bf16.mxu0 %v10579_v49  ;;  %v11548_v12 = vcombine.low %v11421_v21, %v11538_v4 }
 0x102   : > { %9614 = vmatprep.subr.bf16.mxu1 %v10580_v11  ;;  %9536 = vmatprep.mubr.bf16.mxu0 %v11418_v19 }
 0x103   : > { %9568 = vmatprep.mubr.bf16.mxu1 %v11503_v2 }
 0x104   : > { %9583 = vmatpush3.bf16.msra.mxu0 %v10579_v49  ;;  %v11554_v49 = vld [vmem:[%s11062_s15 + $0x84] sm:$0xf] }
 0x105   : > { %9615 = vmatpush3.bf16.msra.mxu1 %v10580_v11  ;;  %9584 = vmatprep.subr.bf16.mxu0 %v10582_v13  ;;  %v11561_v21 = vcombine.low %v11551_v62, %v11554_v49 }
 0x106   : > { %9616 = vmatprep.subr.bf16.mxu1 %v10583_v20 }
 0x107   : > { %9537 = vmatmul.mubr.bf16.gmra.mxu0 %v8229_v55  ;;  %v3391_v55 = vrot.slane %v3389_v24, 1  ;;  %v3405_v7 = vshll.u32 %v11561_v21, 16 }
 0x108   : > { %9569 = vmatmul.mubr.bf16.gmra.mxu1 %v11489_v16  ;;  %9585 = vmatpush3.bf16.msra.mxu0 %v10582_v13 }
 0x109   : > { %9617 = vmatpush3.bf16.msra.mxu1 %v10583_v20  ;;  %9586 = vmatprep.subr.bf16.mxu0 %v10584_v27  ;;  %v3387_v20 = vor.u32 %v3385_v23, %v3383_v17 }
 0x10a   : > { %9618 = vmatprep.subr.bf16.mxu1 %v10585_v18  ;;  %9588 = vmatprep.mubr.bf16.mxu0 %v11483_v40 }
 0x10b   : > { %9620 = vmatprep.mubr.bf16.mxu1 %v3360_v10 }
 0x10c   : > { %9587 = vmatpush3.bf16.msra.mxu0 %v10584_v27  ;;  %v3384_v27 = vsel %vm509_vm0, %v3379_v53, %v3383_v17 }
 0x10d   : > { %9619 = vmatpush3.bf16.msra.mxu1 %v10585_v18  ;;  %9636 = vmatprep.subr.bf16.mxu0 %v10589_v43  ;;  %v3397_v18 = vshll.u32 %v11548_v12, 16 }
 0x10e   : > { %9668 = vmatprep.subr.bf16.mxu1 %v10590_v58 }
 0x10f   : > { %v9206_v9 = vpop.f32.mrf.mxu0  ;;  %9589 = vmatmul.mubr.bf16.vlgmr.msra.gmra.mxu0 %v11493_v48  ;;  %v3399_v32 = vrot.slane %v3397_v18, 1  ;;  %v10607_v18 = vld [vmem:[#allocation3 + $0x148] sm:$0xff]  }
 0x110   : > { %v9238_v46 = vpop.f32.mrf.mxu1  ;;  %9621 = vmatmul.mubr.bf16.vlgmr.msra.gmra.mxu1 %v3368_v28  ;;  %9637 = vmatpush3.bf16.msra.mxu0 %v10589_v43  ;;  %v3392_v43 = vsel %vm509_vm0, %v3387_v20, %v3391_v55 }
 0x111   : > { %v11544_v30 = vadd.f32 %v9238_v46, %v9206_v9  ;;  %9669 = vmatpush3.bf16.msra.mxu1 %v10590_v58  ;;  %v663_v38 = vpop.f32.mrf.mxu0  ;;  %9638 = vmatprep.subr.bf16.mxu0 %v10591_v60  ;;  %v3401_v58 = vshrl.u32 %v11548_v12, 16  ;;  %v10602_v9 = vld [vmem:[#allocation3 + $0x198] sm:$0xff]  }
 0x112   : > { %v816_v11 = vpop.f32.mrf.mxu1  ;;  %9670 = vmatprep.subr.bf16.mxu1 %v10592_v61  ;;  %9592 = vmatprep.mubr.bf16.mxu0 %v11509_v57 }
 0x113   : > { %v11557_v26 = vadd.f32 %v816_v11, %v663_v38  ;;  %v9207_v50 = vpop.f32.mrf.mxu0  ;;  %9624 = vmatprep.mubr.bf16.mxu1 %v3376_v37  ;;  %v3403_v24 = vor.u32 %v3401_v58, %v3399_v32  ;;  %v3407_v38 = vrot.slane %v3405_v7, 1  ;;  %v10603_v11 = vld [vmem:[#allocation3 + $0x150] sm:$0xff]   ;;  %v3595_v58 = vrot.slane %v11483_v40, 1 }
 0x114   : > { %v9239_v13 = vpop.f32.mrf.mxu1  ;;  %9639 = vmatpush3.bf16.msra.mxu0 %v10591_v60  ;;  %v3395_v60 = vor.u32 %v3393_v6, %v3391_v55  ;;  %v3596_v7 = vrot.slane %v11493_v48, 1  ;;  %v3598_v48 = vrot.slane %v11509_v57, 1 }
 0x115   : > { %v11563_v31 = vadd.f32 %v9239_v13, %v9207_v50  ;;  %9671 = vmatpush3.bf16.msra.mxu1 %v10592_v61  ;;  %v666_v33 = vpop.f32.mrf.mxu0  ;;  %9640 = vmatprep.subr.bf16.mxu0 %v10595_v14  ;;  %v10604_v50 = vld [vmem:[#allocation3 + $0x190] sm:$0xff]  }
 0x116   : > { %v819_v10 = vpop.f32.mrf.mxu1  ;;  %9672 = vmatprep.subr.bf16.mxu1 %v10596_v63  ;;  %v3597_v40 = vsel %vm895_vm1, %v3595_v58, %v3596_v7  ;;  %v3599_v57 = vsel %vm895_vm1, %v3596_v7, %v3598_v48  ;;  %v3602_v7 = vrot.slane %v11527_v25, 1 }
 0x117   : > { %v11568_v47 = vadd.f32 %v819_v10, %v666_v33  ;;  %v9210_v56 = vpop.f32.mrf.mxu0  ;;  %9593 = vmatmul.mubr.bf16.gmra.mxu0 %v11517_v5  ;;  %v3408_v33 = vsel %vm509_vm0, %v3403_v24, %v3407_v38 }
 0x118   : > { %v9242_v51 = vpop.f32.mrf.mxu1  ;;  %9625 = vmatmul.mubr.bf16.gmra.mxu1 %v3384_v27  ;;  %9641 = vmatpush3.bf16.msra.mxu0 %v10595_v14  ;;  %v3400_v14 = vsel %vm509_vm0, %v3395_v60, %v3399_v32  ;;  %v3409_v27 = vshrl.u32 %v11561_v21, 16 }
 0x119   : > { %v11574_v8 = vadd.f32 %v9242_v51, %v9210_v56  ;;  %9673 = vmatpush3.bf16.msra.mxu1 %v10596_v63  ;;  %v679_v28 = vpop.f32.mrf.mxu0  ;;  %9642 = vmatprep.subr.bf16.mxu0 %v10597_v42 }
 0x11a   : > { %v832_v61 = vpop.f32.mrf.mxu1  ;;  %9674 = vmatprep.subr.bf16.mxu1 %v10598_v35  ;;  %9596 = vmatprep.mubr.bf16.mxu0 %v11527_v25  ;;  %v3411_v60 = vor.u32 %v3409_v27, %v3407_v38 }
 0x11b   : > { %v11577_v46 = vadd.f32 %v832_v61, %v679_v28  ;;  %v9211_v37 = vpop.f32.mrf.mxu0  ;;  %9628 = vmatprep.mubr.bf16.mxu1 %v3392_v43  ;;  %v8253_v43 = vcombine.low %v11551_v62, %v11551_v62  ;;  %v10609_v61 = vld [vmem:[#allocation3 + $0x140] sm:$0xff]  }
 0x11c   : > { %v9243_v23 = vpop.f32.mrf.mxu1  ;;  %9643 = vmatpush3.bf16.msra.mxu0 %v10597_v42 }
 0x11d   : > { %v11579_v53 = vadd.f32 %v9243_v23, %v9211_v37  ;;  %9675 = vmatpush3.bf16.msra.mxu1 %v10598_v35  ;;  %v682_v17 = vpop.f32.mrf.mxu0  ;;  %9644 = vmatprep.subr.bf16.mxu0 %v10601_v1  ;;  %v10608_v35 = vld [vmem:[#allocation3 + $0x188] sm:$0xff]   ;;  %v10610_v37 = vld [vmem:[#allocation3 + $0x180] sm:$0xff]  }
 0x11e   : > { %v835_v63 = vpop.f32.mrf.mxu1  ;;  %9676 = vmatprep.subr.bf16.mxu1 %v10602_v9 }
 0x11f   : > { %v11582_v13 = vadd.f32 %v835_v63, %v682_v17  ;;  %v9214_v20 = vpop.f32.mrf.mxu0  ;;  %9597 = vmatmul.mubr.bf16.gmra.mxu0 %v11532_v54 }
 0x120   : > { %v9246_v55 = vpop.f32.mrf.mxu1  ;;  %9629 = vmatmul.mubr.bf16.gmra.mxu1 %v3400_v14  ;;  %9645 = vmatpush3.bf16.msra.mxu0 %v10601_v1 }
 0x121   : > { %v11587_v42 = vadd.f32 %v9246_v55, %v9214_v20  ;;  %9677 = vmatpush3.bf16.msra.mxu1 %v10602_v9  ;;  %v695_v6 = vpop.f32.mrf.mxu0  ;;  %9646 = vmatprep.subr.bf16.mxu0 %v10603_v11 }
 0x122   : > { %v848_v10 = vpop.f32.mrf.mxu1  ;;  %9678 = vmatprep.subr.bf16.mxu1 %v10604_v50  ;;  %9600 = vmatprep.mubr.bf16.mxu0 %v11548_v12 }
 0x123   : > { %v11590_v56 = vadd.f32 %v848_v10, %v695_v6  ;;  %v9215_v51 = vpop.f32.mrf.mxu0  ;;  %9632 = vmatprep.mubr.bf16.mxu1 %v3408_v33  ;;  %v3600_v33 = vrot.slane %v11517_v5, 1 }
 0x124   : > { %v9247_v28 = vpop.f32.mrf.mxu1  ;;  %9647 = vmatpush3.bf16.msra.mxu0 %v10603_v11  ;;  %v10611_v11 = vld [vmem:[#allocation3 + $0x1f8] sm:$0xff]  }
 0x125   : > { %v11596_v32 = vadd.f32 %v9247_v28, %v9215_v51  ;;  %9679 = vmatpush3.bf16.msra.mxu1 %v10604_v50  ;;  %v698_v1 = vpop.f32.mrf.mxu0  ;;  %9648 = vmatprep.subr.bf16.mxu0 %v10607_v18  ;;  %v10612_v50 = vld [vmem:[#allocation3 + $0x238] sm:$0xff]   ;;  %v3601_v58 = vsel %vm895_vm1, %v3598_v48, %v3600_v33 }
 0x126   : > { %v851_v9 = vpop.f32.mrf.mxu1  ;;  %9680 = vmatprep.subr.bf16.mxu1 %v10608_v35 }
 0x127   : > { %v11598_v23 = vadd.f32 %v851_v9, %v698_v1  ;;  %v9218_v24 = vpop.f32.mrf.mxu0  ;;  %9601 = vmatmul.mubr.bf16.gmra.mxu0 %v8253_v43 }
 0x128   : > { %v9250_v17 = vpop.f32.mrf.mxu1  ;;  %9633 = vmatmul.mubr.bf16.gmra.mxu1 %v3411_v60  ;;  %9649 = vmatpush3.bf16.msra.mxu0 %v10607_v18  ;;  %v10613_v18 = vld [vmem:[#allocation3 + $0x1f0] sm:$0xff]   ;;  %v10615_v60 = vld [vmem:[#allocation3 + $0x1e8] sm:$0xff]  }
 0x129   : > { %v11602_v38 = vadd.f32 %v9250_v17, %v9218_v24  ;;  %9681 = vmatpush3.bf16.msra.mxu1 %v10608_v35  ;;  %v711_v14 = vpop.f32.mrf.mxu0  ;;  %9650 = vmatprep.subr.bf16.mxu0 %v10609_v61  ;;  %v10614_v35 = vld [vmem:[#allocation3 + $0x230] sm:$0xff]   ;;  %v3603_v17 = vsel %vm895_vm1, %v3600_v33, %v3602_v7 }
 0x12a   : > { %v864_v63 = vpop.f32.mrf.mxu1  ;;  %9682 = vmatprep.subr.bf16.mxu1 %v10610_v37  ;;  %9652 = vmatprep.mubr.bf16.mxu0 %v3597_v40 }
 0x12b   : > { %v11604_v20 = vadd.f32 %v864_v63, %v711_v14  ;;  %v9219_v55 = vpop.f32.mrf.mxu0  ;;  %9684 = vmatprep.mubr.bf16.mxu1 %v11372_v45 }
 0x12c   : > { %v9251_v27 = vpop.f32.mrf.mxu1  ;;  %9651 = vmatpush3.bf16.msra.mxu0 %v10609_v61 }
 0x12d   : > { %9683 = vmatpush3.bf16.msra.mxu1 %v10610_v37  ;;  %v714_v6 = vpop.f32.mrf.mxu0  ;;  %9700 = vmatprep.subr.bf16.mxu0 %v10611_v11  ;;  %v10616_v37 = vld [vmem:[#allocation3 + $0x228] sm:$0xff]   ;;  %v3606_v27 = vrot.slane %v11548_v12, 1 }
 0x12e   : > { %v867_v10 = vpop.f32.mrf.mxu1  ;;  %9732 = vmatprep.subr.bf16.mxu1 %v10612_v50 }
 0x12f   : > { %v11609_v51 = vadd.f32 %v867_v10, %v714_v6  ;;  %v9270_v43 = vpop.f32.mrf.mxu0  ;;  %9653 = vmatmul.mubr.bf16.vlgmr.msra.gmra.mxu0 %v3599_v57 }
 0x130   : > { %v1065_v45 = vadd.f32 %v9270_v43, %v11544_v30  ;;  %v9302_v5 = vpop.f32.mrf.mxu1  ;;  %9685 = vmatmul.mubr.bf16.vlgmr.msra.gmra.mxu1 %v11383_v15  ;;  %9701 = vmatpush3.bf16.msra.mxu0 %v10611_v11  ;;  %v3604_v15 = vrot.slane %v11532_v54, 1 }
 0x131   : > { %9733 = vmatpush3.bf16.msra.mxu1 %v10612_v50  ;;  %v1001_v28 = vpop.f32.mrf.mxu0  ;;  %9702 = vmatprep.subr.bf16.mxu0 %v10613_v18 }
 0x132   : > { %v11615_v1 = vadd.f32 %v9302_v5, %v1065_v45  ;;  %v1063_v61 = vadd.f32 %v1001_v28, %v11557_v26  ;;  %v1197_v9 = vpop.f32.mrf.mxu1  ;;  %9734 = vmatprep.subr.bf16.mxu1 %v10614_v35  ;;  %9656 = vmatprep.mubr.bf16.mxu0 %v3601_v58  ;;  %v10617_v26 = vld [vmem:[#allocation3 + $0x1e0] sm:$0xff]   ;;  %v3605_v50 = vsel %vm895_vm1, %v3602_v7, %v3604_v15  ;;  %v8211_v5 = vld [vmem:[%s11062_s15 + $0x88] sm:$0xf] }
 0x133   : > { %v9271_v24 = vpop.f32.mrf.mxu0  ;;  %9688 = vmatprep.mubr.bf16.mxu1 %v11399_v59  ;;  %v10618_v59 = vld [vmem:[#allocation3 + $0x220] sm:$0xff]   ;;  %v3607_v45 = vsel %vm895_vm1, %v3604_v15, %v3606_v27  ;;  %v10622_v28 = vld [vmem:[#allocation3 + $0x1d0] sm:$0xff]   ;;  %v10626_v15 = vld [vmem:[#allocation3 + $0x1c8] sm:$0xff]  }
 0x134   : > { %v11620_v30 = vadd.f32 %v1197_v9, %v1063_v61  ;;  %v1066_v25 = vadd.f32 %v9271_v24, %v11563_v31  ;;  %v9303_v40 = vpop.f32.mrf.mxu1  ;;  %9703 = vmatpush3.bf16.msra.mxu0 %v10613_v18 }
 0x135   : > { %9735 = vmatpush3.bf16.msra.mxu1 %v10614_v35  ;;  %v1004_v48 = vpop.f32.mrf.mxu0  ;;  %9704 = vmatprep.subr.bf16.mxu0 %v10615_v60  ;;  %v10621_v35 = vld [vmem:[#allocation3 + $0x218] sm:$0xff]  }
 0x136   : > { %v11624_v14 = vadd.f32 %v9303_v40, %v1066_v25  ;;  %v1064_v11 = vadd.f32 %v1004_v48, %v11568_v47  ;;  %v1200_v63 = vpop.f32.mrf.mxu1  ;;  %9736 = vmatprep.subr.bf16.mxu1 %v10616_v37  ;;  %v10620_v47 = vld [vmem:[#allocation3 + $0x1d8] sm:$0xff]  }
 0x137   : > { %v9274_v54 = vpop.f32.mrf.mxu0  ;;  %9657 = vmatmul.mubr.bf16.gmra.mxu0 %v3603_v17 }
 0x138   : > { %v11628_v31 = vadd.f32 %v1200_v63, %v1064_v11  ;;  %v1069_v55 = vadd.f32 %v9274_v54, %v11574_v8  ;;  %v9306_v33 = vpop.f32.mrf.mxu1  ;;  %9689 = vmatmul.mubr.bf16.gmra.mxu1 %v11418_v19  ;;  %9705 = vmatpush3.bf16.msra.mxu0 %v10615_v60  ;;  %v3608_v19 = vrot.slane %v11561_v21, 1  ;;  %v11666_v63 = vld [vmem:[%s11062_s15 + $0x8c] ss:$0 sps:$4 sm:$0xff]   ;;  %v10628_v54 = vld [vmem:[#allocation3 + $0x1c0] sm:$0xff]  }
 0x139   : > { %9737 = vmatpush3.bf16.msra.mxu1 %v10616_v37  ;;  %v1017_v57 = vpop.f32.mrf.mxu0  ;;  %9706 = vmatprep.subr.bf16.mxu0 %v10617_v26  ;;  %v11652_v37 = vcombine.low %v11554_v49, %v8211_v5  ;;  %v10627_v49 = vld [vmem:[#allocation3 + $0x208] sm:$0xff]  }
 0x13a   : > { %v11633_v6 = vadd.f32 %v9306_v33, %v1069_v55  ;;  %v1067_v18 = vadd.f32 %v1017_v57, %v11577_v46  ;;  %v1213_v10 = vpop.f32.mrf.mxu1  ;;  %9738 = vmatprep.subr.bf16.mxu1 %v10618_v59  ;;  %9660 = vmatprep.mubr.bf16.mxu0 %v3605_v50  ;;  %v11644_v46 = vcombine.low %v11538_v4, %v11551_v62  ;;  %v10629_v33 = vld [vmem:[#allocation3 + $0x200] sm:$0xff]  }
 0x13b   : > { %v9275_v8 = vpop.f32.mrf.mxu0  ;;  %9692 = vmatprep.mubr.bf16.mxu1 %v11427_v3  ;;  %v3609_v9 = vsel %vm895_vm1, %v3606_v27, %v3608_v19 }
 0x13c   : > { %v11638_v43 = vadd.f32 %v1213_v10, %v1067_v18  ;;  %v1070_v12 = vadd.f32 %v9275_v8, %v11579_v53  ;;  %v9307_v58 = vpop.f32.mrf.mxu1  ;;  %9707 = vmatpush3.bf16.msra.mxu0 %v10617_v26  ;;  %v10623_v53 = vld [vmem:[#allocation3 + $0x210] sm:$0xff]  }
 0x13d   : > { %9739 = vmatpush3.bf16.msra.mxu1 %v10618_v59  ;;  %v1020_v7 = vpop.f32.mrf.mxu0  ;;  %9708 = vmatprep.subr.bf16.mxu0 %v10620_v47 }
 0x13e   : > { %v11647_v3 = vadd.f32 %v9307_v58, %v1070_v12  ;;  %v1068_v21 = vadd.f32 %v1020_v7, %v11582_v13  ;;  %v1216_v60 = vpop.f32.mrf.mxu1  ;;  %9740 = vmatprep.subr.bf16.mxu1 %v10621_v35  ;;  %v3964_v58 = vshll.u32 %v11644_v46, 16 }
 0x13f   : > { %v9278_v61 = vpop.f32.mrf.mxu0  ;;  %9661 = vmatmul.mubr.bf16.gmra.mxu0 %v3607_v45 }
 0x140   : > { %v11654_v4 = vadd.f32 %v1216_v60, %v1068_v21  ;;  %v1073_v62 = vadd.f32 %v9278_v61, %v11587_v42  ;;  %v9310_v24 = vpop.f32.mrf.mxu1  ;;  %9693 = vmatmul.mubr.bf16.gmra.mxu1 %v11644_v46  ;;  %9709 = vmatpush3.bf16.msra.mxu0 %v10620_v47  ;;  %v3968_v61 = vshrl.u32 %v11644_v46, 16 }
 0x141   : > { %9741 = vmatpush3.bf16.msra.mxu1 %v10621_v35  ;;  %v1033_v13 = vpop.f32.mrf.mxu0  ;;  %9710 = vmatprep.subr.bf16.mxu0 %v10622_v28 }
 0x142   : > { %v11658_v25 = vadd.f32 %v9310_v24, %v1073_v62  ;;  %v1071_v40 = vadd.f32 %v1033_v13, %v11590_v56  ;;  %v1229_v17 = vpop.f32.mrf.mxu1  ;;  %9742 = vmatprep.subr.bf16.mxu1 %v10623_v53  ;;  %9664 = vmatprep.mubr.bf16.mxu0 %v3609_v9  ;;  %v3980_v9 = vshll.u32 %v11666_v63, 16 }
 0x143   : > { %v9279_v48 = vpop.f32.mrf.mxu0  ;;  %9696 = vmatprep.mubr.bf16.mxu1 %v11652_v37 }
 0x144   : > { %v11662_v42 = vadd.f32 %v1229_v17, %v1071_v40  ;;  %v1074_v26 = vadd.f32 %v9279_v48, %v11596_v32  ;;  %v9311_v11 = vpop.f32.mrf.mxu1  ;;  %9711 = vmatpush3.bf16.msra.mxu0 %v10622_v28  ;;  %v3966_v28 = vrot.slane %v3964_v58, 1  ;;  %v4169_v17 = vrot.slane %v11652_v37, 1 }
 0x145   : > { %9743 = vmatpush3.bf16.msra.mxu1 %v10623_v53  ;;  %v1036_v59 = vpop.f32.mrf.mxu0  ;;  %9712 = vmatprep.subr.bf16.mxu0 %v10626_v15  ;;  %v3982_v48 = vrot.slane %v3980_v9, 1 }
 0x146   : > { %v11668_v56 = vadd.f32 %v9311_v11, %v1074_v26  ;;  %v1072_v50 = vadd.f32 %v1036_v59, %v11598_v23  ;;  %v1232_v55 = vpop.f32.mrf.mxu1  ;;  %9744 = vmatprep.subr.bf16.mxu1 %v10627_v49 }
 0x147   : > { %v9282_v27 = vpop.f32.mrf.mxu0  ;;  %9665 = vmatmul.mubr.bf16.gmra.mxu0 %v3608_v19 }
 0x148   : > { %v11671_v57 = vadd.f32 %v1232_v55, %v1072_v50  ;;  %v1077_v32 = vadd.f32 %v9282_v27, %v11602_v38  ;;  %v9314_v47 = vpop.f32.mrf.mxu1  ;;  %9697 = vmatmul.mubr.bf16.gmra.mxu1 %v11666_v63  ;;  %9713 = vmatpush3.bf16.msra.mxu0 %v10626_v15 }
 0x149   : > { %9745 = vmatpush3.bf16.msra.mxu1 %v10627_v49  ;;  %v1049_v18 = vpop.f32.mrf.mxu0  ;;  %9714 = vmatprep.subr.bf16.mxu0 %v10628_v54 }
 0x14a   : > { %v11675_v10 = vadd.f32 %v9314_v47, %v1077_v32  ;;  %v1075_v23 = vadd.f32 %v1049_v18, %v11604_v20  ;;  %v1245_v35 = vpop.f32.mrf.mxu1  ;;  %9746 = vmatprep.subr.bf16.mxu1 %v10629_v33  ;;  %9716 = vmatprep.mubr.bf16.mxu0 %v11430_v29 }
 0x14b   : > { %v9283_v8 = vpop.f32.mrf.mxu0  ;;  %9748 = vmatprep.mubr.bf16.mxu1 %v11474_v0 }
 0x14c   : > { %v11680_v19 = vadd.f32 %v1245_v35, %v1075_v23  ;;  %v9315_v38 = vpop.f32.mrf.mxu1  ;;  %9715 = vmatpush3.bf16.msra.mxu0 %v10628_v54 }
 0x14d   : > { %9747 = vmatpush3.bf16.msra.mxu1 %v10629_v33  ;;  %v1052_v12 = vpop.f32.mrf.mxu0 }
 0x14e   : > { %13167 = vst [vmem:[#allocation10_spill] sm:$0xff] %v11680_v19  ;;  %v1076_v45 = vadd.f32 %v1052_v12, %v11609_v51  ;;  %v1248_v5 = vpop.f32.mrf.mxu1  ;;  %v4167_v51 = vrot.slane %v11644_v46, 1 }
 0x14f   : > { %v11684_v7 = vpop.f32.mrf.mxu0  ;;  %9717 = vmatmul.mubr.bf16.vlgmr.msra.gmra.mxu0 %v11439_v41  ;;  %v3972_v41 = vshll.u32 %v11652_v37, 16 }
 0x150   : > { %v11687_v20 = vadd.f32 %v1248_v5, %v1076_v45  ;;  %v11689_v29 = vpop.f32.mrf.mxu1  ;;  %9749 = vmatmul.mubr.bf16.vlgmr.msra.gmra.mxu1 %v11479_v44  ;;  %9720 = vmatprep.mubr.bf16.mxu0 %v11448_v52  ;;  %v3967_v52 = vsel %vm509_vm0, %v11457_v34, %v3966_v28  ;;  %v4168_v24 = vsel %vm895_vm1, %v11489_v16, %v4167_v51  ;;  %v4171_v16 = vrot.slane %v11666_v63, 1 }
 0x151   : > { %v11693_v0 = vpop.f32.mrf.mxu0  ;;  %9752 = vmatprep.mubr.bf16.mxu1 %v11497_v22  ;;  %v3976_v22 = vshrl.u32 %v11652_v37, 16  ;;  %v3974_v15 = vrot.slane %v3972_v41, 1  ;;  %v3970_v34 = vor.u32 %v3968_v61, %v3966_v28  ;;  %v4170_v50 = vsel %vm895_vm1, %v4167_v51, %v4169_v17 }
 0x152   : > { %13168 = vst [vmem:[#allocation11_spill] sm:$0xff] %v11687_v20  ;;  %v11696_v21 = vpop.f32.mrf.mxu1  ;;  %v4172_v33 = vsel %vm895_vm1, %v4169_v17, %v4171_v16  ;;  %v1511_v20 = vadd.f32 %v11684_v7, %v11615_v1 }
 0x153   : > { %v11699_v60 = vpop.f32.mrf.mxu0  ;;  %v3978_v49 = vor.u32 %v3976_v22, %v3974_v15  ;;  %v3975_v59 = vsel %vm509_vm0, %v3970_v34, %v3974_v15 }
 0x154   : > { %v11702_v53 = vpop.f32.mrf.mxu1 }
 0x155   : > { %v11705_v44 = vpop.f32.mrf.mxu0  ;;  %v3983_v37 = vsel %vm509_vm0, %v3978_v49, %v3982_v48 }
 0x156   : > { %v11711_v62 = vpop.f32.mrf.mxu1  ;;  %v1510_v1 = vadd.f32 %v11705_v44, %v11628_v31 }
 0x157   : > { %v11715_v13 = vpop.f32.mrf.mxu0  ;;  %9721 = vmatmul.mubr.bf16.gmra.mxu0 %v11453_v39 }
 0x158   : > { %v11718_v46 = vpop.f32.mrf.mxu1  ;;  %9753 = vmatmul.mubr.bf16.gmra.mxu1 %v11503_v2  ;;  %9724 = vmatprep.mubr.bf16.mxu0 %v3967_v52  ;;  %v3984_v2 = vshrl.u32 %v11666_v63, 16 }
 0x159   : > { %v11721_v40 = vpop.f32.mrf.mxu0  ;;  %9756 = vmatprep.mubr.bf16.mxu1 %v4168_v24 }
 0x15a   : > { %v11724_v26 = vpop.f32.mrf.mxu1  ;;  %v3986_v47 = vor.u32 %v3984_v2, %v3982_v48  ;;  %v1513_v31 = vadd.f32 %v11721_v40, %v11638_v43 }
 0x15b   : > { %v11727_v11 = vpop.f32.mrf.mxu0 }
 0x15c   : > { %v11729_v39 = vpop.f32.mrf.mxu1  ;;  %v3991_v8 = vsel %vm11357_vm4, %v3986_v47, 0  ;;  %v1516_v44 = vadd.f32 %v11727_v11, %v11647_v3 }
 0x15d   : > { %v11733_v54 = vpop.f32.mrf.mxu0 }
 0x15e   : > { %v11737_v55 = vpop.f32.mrf.mxu1 }
 0x15f   : > { %v11740_v27 = vpop.f32.mrf.mxu0  ;;  %9725 = vmatmul.mubr.bf16.gmra.mxu0 %v3975_v59 }
 0x160   : > { %v11742_v32 = vpop.f32.mrf.mxu1  ;;  %9757 = vmatmul.mubr.bf16.gmra.mxu1 %v4170_v50  ;;  %9728 = vmatprep.mubr.bf16.mxu0 %v3983_v37 }
 0x161   : > { %v11744_v18 = vpop.f32.mrf.mxu0  ;;  %9760 = vmatprep.mubr.bf16.mxu1 %v4172_v33 }
 0x162   : > { %v11746_v63 = vpop.f32.mrf.mxu1 }
 0x163   : > { %v11748_v23 = vpop.f32.mrf.mxu0 }
 0x164   : > { %v11750_v35 = vpop.f32.mrf.mxu1 }
 0x165   : > { %v11754_v38 = vpop.f32.mrf.mxu0 }
 0x166   : > { %v11756_v12 = vpop.f32.mrf.mxu1 }
 0x167   : > { %v11758_v58 = vpop.f32.mrf.mxu0  ;;  %9729 = vmatmul.mubr.bf16.gmra.mxu0 %v3991_v8 }
 0x168   : > { %v11760_v45 = vpop.f32.mrf.mxu1  ;;  %9761 = vmatmul.mubr.msk.bf16.gmra.mxu1 %vm2127_vm5, %v4171_v16 }
 0x169   : > { %13169 = vst [vmem:[#allocation12_spill] sm:$0xff] %v11760_v45  ;;  %v11763_v5 = vpop.f32.mrf.mxu0 }
 0x16a   : > { %13170 = vst [vmem:[#allocation13_spill] sm:$0xff] %v11763_v5  ;;  %v11765_v28 = vpop.f32.mrf.mxu1  ;;  %v2367_v5 = vlaneseq }
 0x16b   : > { %13171 = vst [vmem:[#allocation14_spill] sm:$0xff] %v11765_v28  ;;  %v9347_v51 = vpop.f32.mrf.mxu0 }
 0x16c   : > { %v9379_v41 = vpop.f32.mrf.mxu1 }
 0x16d   : > { %v11767_v61 = vpop.f32.mrf.mxu0 }
 0x16e   : > { %13172 = vst [vmem:[#allocation15_spill] sm:$0xff] %v11767_v61  ;;  %v11769_v52 = vpop.f32.mrf.mxu1 }
 0x16f   : > { %13173 = vst [vmem:[#allocation16_spill] sm:$0xff] %v11769_v52  ;;  %v9398_v22 = vpop.f32.mrf.mxu0 }
 0x170   : > { %v9430_v9 = vpop.f32.mrf.mxu1 }
 0x171   : > { %v1833_v24 = vpop.f32.mrf.mxu0 }
 0x172   : > { %v2041_v15 = vpop.f32.mrf.mxu1 }
 0x173   : > { %v9399_v34 = vpop.f32.mrf.mxu0 }
 0x174   : > { %v9431_v17 = vpop.f32.mrf.mxu1 }
 0x175   : > { %v1836_v49 = vpop.f32.mrf.mxu0 }
 0x176   : > { %v11771_v48 = vpop.f32.mrf.mxu1 }
 0x177   : > { %v11773_v16 = vpop.f32.mrf.mxu0 }
 0x178   : > { %v11775_v59 = vpop.f32.mrf.mxu1 }
 0x179   : > { %v11777_v2 = vpop.f32.mrf.mxu0 }
 0x17a   : > { %v11779_v50 = vpop.f32.mrf.mxu1 }
 0x17b   : > { %v11781_v37 = vpop.f32.mrf.mxu0 }
 0x17c   : > { %v11783_v33 = vpop.f32.mrf.mxu1 }
 0x17d   : > { %v11785_v47 = vpop.f32.mrf.mxu0 }
 0x17e   : > { %v11787_v8 = vpop.f32.mrf.mxu1 }
 0x17f   : > { %13174 = vst [vmem:[#allocation17_spill] sm:$0xff] %v11787_v8  ;;  %v11789_v51 = vpop.f32.mrf.mxu0  ;;  %v1509_v8 = vadd.f32 %v11693_v0, %v11620_v30 }
 0x180   : > { %v11791_v41 = vpop.f32.mrf.mxu1 }
 0x181   : > { %13175 = vst [vmem:[#allocation18_spill] sm:$0xff] %v11791_v41  ;;  %v11793_v36 = vpop.f32.mrf.mxu0  ;;  %v1708_v30 = vadd.f32 %v11696_v21, %v1509_v8 }
 0x182   : > { %13176 = vst [vmem:[#allocation19_spill] sm:$0xff] %v11793_v36  ;;  %v11795_v52 = vpop.f32.mrf.mxu1  ;;  %v1710_v36 = vadd.f32 %v11689_v29, %v1511_v20 }
 0x183   : > { %13177 = vst [vmem:[#allocation20_spill] sm:$0xff] %v11795_v52  ;;  %v11797_v61 = vpop.f32.mrf.mxu0  ;;  %v1512_v52 = vadd.f32 %v11699_v60, %v11624_v14  ;;  %v1515_v14 = vadd.f32 %v11715_v13, %v11633_v6  ;;  %v1895_v29 = vadd.f32 %v1833_v24, %v1708_v30  ;;  %v1514_v24 = vadd.f32 %v11733_v54, %v11654_v4 }
 0x184   : > { %13178 = vst [vmem:[#allocation21_spill] sm:$0xff] %v11797_v61  ;;  %v11801_v28 = vpop.f32.mrf.mxu1  ;;  %v1897_v0 = vadd.f32 %v9398_v22, %v1710_v36  ;;  %v1712_v22 = vadd.f32 %v11724_v26, %v1513_v31  ;;  %v1520_v4 = vadd.f32 %v11748_v23, %v11668_v56 }
 0x185   : > { %13179 = vst [vmem:[#allocation22_spill] sm:$0xff] %v11801_v28  ;;  %v11803_v45 = vpop.f32.mrf.mxu0  ;;  %v11820_v28 = vshrl.u32 %v2367_v5, 7  ;;  %v1711_v20 = vadd.f32 %v11702_v53, %v1512_v52  ;;  %v1714_v43 = vadd.f32 %v11718_v46, %v1515_v14  ;;  %v2103_v40 = vadd.f32 %v2041_v15, %v1895_v29 }
 0x186   : > { %v11807_v19 = vpop.f32.mrf.mxu1  ;;  %v2105_v5 = vadd.f32 %v9430_v9, %v1897_v0  ;;  %v1715_v9 = vadd.f32 %v11729_v39, %v1516_v44  ;;  %v1517_v15 = vadd.f32 %v11744_v18, %v11662_v42  ;;  %v1713_v0 = vadd.f32 %v11737_v55, %v1514_v24  ;;  %v13187_v24 = vld [vmem:[#allocation17_spill] sm:$0xff] }
 0x187   : > { %13180 = vst [vmem:[#allocation23_spill] sm:$0xff] %v11807_v19  ;;  %v11809_v41 = vpop.f32.mrf.mxu0  ;;  %13183 = vst [vmem:[#allocation26_spill] sm:$0xff] %v11820_v28  ;;  %v11836_v36 = vadd.s32 16, %v11820_v28  ;;  %v1898_v53 = vadd.f32 %v9399_v34, %v1711_v20  ;;  %v11857_v34 = vld [vmem:[%s13150_s4] ss:$0 sm:$0xff]  ;;  %vm2371_vm7 = vcmp.ge.s32.totalorder %v11820_v28, 1  ;;  %v1719_v14 = vadd.f32 %v11750_v35, %v1520_v4 }
 0x188   : > { %13181 = vst [vmem:[#allocation24_spill] sm:$0xff] %v11809_v41  ;;  %v11814_v61 = vpop.f32.mrf.mxu1 }
 0x189   : > { %13182 = vst [vmem:[#allocation25_spill] sm:$0xff] %v11814_v61  ;;  %v11818_v7 = vpop.f32.mrf.mxu0  ;;  %v1709_v61 = vadd.f32 %v11711_v62, %v1510_v1  ;;  %13184 = vst [vmem:[#allocation27_spill] sm:$0xff] %v11836_v36  ;;  %v11843_v62 = vld [vmem:[%s13149_s3] ss:$0 sm:$0xff]  ;;  %vm2376_vm6 = vcmp.le.s32.totalorder %v11836_v36, 16  ;;  %v2106_v26 = vadd.f32 %v9431_v17, %v1898_v53  ;;  %v1899_v1 = vadd.f32 %v11777_v2, %v1712_v22  ;;  %v13186_v22 = vld [vmem:[#allocation13_spill] sm:$0xff] }
 0x18a   : > { %v11823_v19 = vpop.f32.mrf.mxu1  ;;  %v1523_v53 = vadd.f32 %v11758_v58, %v11675_v10 }
 0x18b   : > { %v9411_v41 = vpop.f32.mrf.mxu0  ;;  %v1896_v6 = vadd.f32 %v1836_v49, %v1709_v61  ;;  %v1519_v61 = vadd.f32 %v11740_v27, %v11658_v25  ;;  %v1518_v25 = vadd.f32 %v11754_v38, %v11671_v57  ;;  %v1901_v27 = vadd.f32 %v11773_v16, %v1714_v43 }
 0x18c   : > { %v9443_v60 = vpop.f32.mrf.mxu1  ;;  %v1902_v57 = vadd.f32 %v11781_v37, %v1715_v9  ;;  %v1716_v38 = vadd.f32 %v11746_v63, %v1517_v15  ;;  %v1900_v37 = vadd.f32 %v11785_v47, %v1713_v0 }
 0x18d   : > { %v11833_v21 = vpop.f32.mrf.mxu0  ;;  %v2104_v54 = vadd.f32 %v11771_v48, %v1896_v6  ;;  %v1718_v56 = vadd.f32 %v11742_v32, %v1519_v61  ;;  %v1717_v55 = vadd.f32 %v11756_v12, %v1518_v25  ;;  %v2109_v32 = vadd.f32 %v11775_v59, %v1901_v27 }
 0x18e   : > { %v11838_v52 = vpop.f32.mrf.mxu1  ;;  %v2107_v60 = vadd.f32 %v11779_v50, %v1899_v1  ;;  %v2110_v35 = vadd.f32 %v11783_v33, %v1902_v57  ;;  %v2108_v61 = vadd.f32 %v13187_v24, %v1900_v37  ;;  %v13189_v1 = vld [vmem:[#allocation18_spill] sm:$0xff]  ;;  %v13190_v57 = vld [vmem:[#allocation12_spill] sm:$0xff] }
 0x18f   : > { %v9462_v13 = vpop.f32.mrf.mxu0  ;;  %v1905_v47 = vadd.f32 %v11789_v51, %v1718_v56  ;;  %v13192_v37 = vld [vmem:[#allocation20_spill] sm:$0xff] }
 0x190   : > { %v2295_v3 = vadd.f32 %v9462_v13, %v2105_v5  ;;  %v11846_v11 = vpop.f32.mrf.mxu1 }
 0x191   : > { %v2231_v46 = vpop.f32.mrf.mxu0 }
 0x192   : > { %v2317_v39 = vmul.f32 %v11843_v62, %v2295_v3  ;;  %v2293_v49 = vadd.f32 %v2231_v46, %v2103_v40  ;;  %v11863_v8 = vpop.f32.mrf.mxu1  ;;  %v13185_v3 = vld [vmem:[#allocation10_spill] sm:$0xff]  ;;  %v13188_v46 = vld [vmem:[#allocation19_spill] sm:$0xff] }
 0x193   : > { %v9463_v41 = vpop.f32.mrf.mxu0  ;;  %v1521_v9 = vadd.f32 %v13186_v22, %v13185_v3  ;;  %v1903_v10 = vadd.f32 %v13188_v46, %v1716_v38  ;;  %v13191_v38 = vld [vmem:[#allocation21_spill] sm:$0xff]  ;;  %v13197_v22 = vld [vmem:[#allocation22_spill] sm:$0xff] }
 0x194   : > { %v2339_v42 = vadd.f32 %v11857_v34, %v2317_v39  ;;  %v2315_v18 = vmul.f32 %v11843_v62, %v2293_v49  ;;  %v2296_v17 = vadd.f32 %v9463_v41, %v2106_v26  ;;  %v11874_v30 = vpop.f32.mrf.mxu1 }
 0x195   : > { %v2234_v23 = vpop.f32.mrf.mxu0 }
 0x196   : > { %v2337_v48 = vadd.f32 %v11857_v34, %v2315_v18  ;;  %v2318_v16 = vmul.f32 %v11843_v62, %v2296_v17  ;;  %v2294_v2 = vadd.f32 %v2234_v23, %v2104_v54  ;;  %v11883_v20 = vpop.f32.mrf.mxu1  ;;  %v2354_v31 = vmax.f32 %v2339_v42, 0.0 }
 0x197   : > { %v9466_v29 = vpop.f32.mrf.mxu0  ;;  %v2113_v42 = vadd.f32 %v13189_v1, %v1905_v47  ;;  %v1722_v23 = vadd.f32 %v13190_v57, %v1523_v53  ;;  %v13194_v53 = vld [vmem:[#allocation11_spill] sm:$0xff] }
 0x198   : > { %v2340_v63 = vadd.f32 %v11857_v34, %v2318_v16  ;;  %v2316_v44 = vmul.f32 %v11843_v62, %v2294_v2  ;;  %v11892_v5 = vpop.f32.mrf.mxu1  ;;  %v2352_v12 = vmax.f32 %v2337_v48, 0.0  ;;  %v2299_v6 = vadd.f32 %v9466_v29, %v2109_v32 }
 0x199   : > { %v2247_v59 = vpop.f32.mrf.mxu0  ;;  %v2382_v15 = vsel %vm2376_vm6, %v2354_v31, 0.0  ;;  %v1906_v48 = vadd.f32 %v13191_v38, %v1719_v14  ;;  %v1904_v16 = vadd.f32 %v11803_v45, %v1717_v55  ;;  %v2111_v29 = vadd.f32 %v13192_v37, %v1903_v10 }
 0x19a   : > { %v2355_v13 = vmax.f32 %v2340_v63, 0.0  ;;  %v2338_v50 = vadd.f32 %v11857_v34, %v2316_v44  ;;  %v2297_v43 = vadd.f32 %v2247_v59, %v2107_v60  ;;  %v11899_v40 = vpop.f32.mrf.mxu1  ;;  %v2321_v58 = vmul.f32 %v11843_v62, %v2299_v6  ;;  %v13195_v6 = vld [vmem:[#allocation15_spill] sm:$0xff]  ;;  %v13196_v59 = vld [vmem:[#allocation24_spill] sm:$0xff] }
 0x19b   : > { %v9467_v33 = vpop.f32.mrf.mxu0  ;;  %v2380_v4 = vsel %vm2371_vm7, %v2352_v12, 0.0  ;;  %v1522_v14 = vadd.f32 %v13195_v6, %v13194_v53  ;;  %v1909_v47 = vadd.f32 %v13196_v59, %v1722_v23  ;;  %v2114_v24 = vadd.f32 %v13197_v22, %v1906_v48 }
 0x19c   : > { %v2383_v51 = vsel %vm2371_vm7, %v2355_v13, 0.0  ;;  %v2353_v26 = vmax.f32 %v2338_v50, 0.0  ;;  %v2300_v39 = vadd.f32 %v9467_v33, %v2110_v35  ;;  %v11910_v49 = vpop.f32.mrf.mxu1  ;;  %v2343_v54 = vadd.f32 %v11857_v34, %v2321_v58  ;;  %v13193_v35 = vld [vmem:[#allocation14_spill] sm:$0xff] }
 0x19d   : > { %v8564_v25 = vpack.c.bf16 %v2383_v51, %v2382_v15  ;;  %v2319_v27 = vmul.f32 %v11843_v62, %v2297_v43  ;;  %v2250_v41 = vpop.f32.mrf.mxu0  ;;  %v1720_v12 = vadd.f32 %v13193_v35, %v1521_v9 }
 0x19e   : > { %v8559_v18 = vpack.c.bf16 %v2353_v26, %v2380_v4  ;;  %v2322_v17 = vmul.f32 %v11843_v62, %v2300_v39  ;;  %v2298_v0 = vadd.f32 %v2250_v41, %v2108_v61  ;;  %v11918_v56 = vpop.f32.mrf.mxu1  ;;  %v2358_v2 = vmax.f32 %v2343_v54, 0.0  ;;  %v13198_v61 = vld [vmem:[#allocation23_spill] sm:$0xff] }
 0x19f   : > { %8626 = vst [vmem:[#allocation2 + $0x8] sm:$0xff] %v8564_v25   ;;  %v9470_v32 = vpop.f32.mrf.mxu0  ;;  %v2341_v45 = vadd.f32 %v11857_v34, %v2319_v27  ;;  %v2112_v46 = vadd.f32 %v13198_v61, %v1904_v16  ;;  %v1907_v9 = vadd.f32 %v11818_v7, %v1720_v12  ;;  %v13199_v27 = vld [vmem:[#allocation25_spill] sm:$0xff] }
 0x1a0   : > { %8560 = vst [vmem:[#allocation2] sm:$0xff] %v8559_v18   ;;  %v2344_v60 = vadd.f32 %v11857_v34, %v2322_v17  ;;  %v2320_v31 = vmul.f32 %v11843_v62, %v2298_v0  ;;  %v2303_v63 = vadd.f32 %v9470_v32, %v2113_v42  ;;  %v11926_v44 = vpop.f32.mrf.mxu1  ;;  %v2386_v10 = vsel %vm2371_vm7, %v2358_v2, 0.0  ;;  %v13200_v17 = vld [vmem:[#allocation16_spill] sm:$0xff] }
 0x1a1   : > { %v2263_v55 = vpop.f32.mrf.mxu0  ;;  %v2356_v4 = vmax.f32 %v2341_v45, 0.0  ;;  %v2117_v41 = vadd.f32 %v13199_v27, %v1909_v47  ;;  %v1721_v0 = vadd.f32 %v13200_v17, %v1522_v14  ;;  %v2115_v48 = vadd.f32 %v11823_v19, %v1907_v9 }
 0x1a2   : > { %v2359_v13 = vmax.f32 %v2344_v60, 0.0  ;;  %v2342_v50 = vadd.f32 %v11857_v34, %v2320_v31  ;;  %v2301_v43 = vadd.f32 %v2263_v55, %v2111_v29  ;;  %v11934_v3 = vpop.f32.mrf.mxu1  ;;  %v2325_v51 = vmul.f32 %v11843_v62, %v2303_v63 }
 0x1a3   : > { %v9471_v58 = vpop.f32.mrf.mxu0  ;;  %v1908_v29 = vadd.f32 %v11833_v21, %v1721_v0 }
 0x1a4   : > { %v8574_v33 = vpack.c.bf16 %v2359_v13, %v2386_v10  ;;  %v2357_v15 = vmax.f32 %v2342_v50, 0.0  ;;  %v2323_v26 = vmul.f32 %v11843_v62, %v2301_v43  ;;  %v11943_v39 = vpop.f32.mrf.mxu1  ;;  %v2304_v25 = vadd.f32 %v9471_v58, %v2114_v24 }
 0x1a5   : > { %v2266_v54 = vpop.f32.mrf.mxu0  ;;  %v2347_v16 = vadd.f32 %v11857_v34, %v2325_v51  ;;  %v2116_v13 = vadd.f32 %v11838_v52, %v1908_v29 }
 0x1a6   : > { %8628 = vst [vmem:[#allocation2 + $0x18] sm:$0xff] %v8574_v33   ;;  %v2385_v7 = vsel %vm2376_vm6, %v2357_v15, 0.0  ;;  %v2345_v1 = vadd.f32 %v11857_v34, %v2323_v26  ;;  %v2302_v42 = vadd.f32 %v2266_v54, %v2112_v46  ;;  %v11949_v18 = vpop.f32.mrf.mxu1  ;;  %v2326_v23 = vmul.f32 %v11843_v62, %v2304_v25 }
 0x1a7   : > { %v8569_v57 = vpack.c.bf16 %v2385_v7, %v2356_v4  ;;  %v9474_v38 = vpop.f32.mrf.mxu0  ;;  %v2362_v45 = vmax.f32 %v2347_v16, 0.0 }
 0x1a8   : > { %v2324_v2 = vmul.f32 %v11843_v62, %v2302_v42  ;;  %v2307_v32 = vadd.f32 %v9474_v38, %v2117_v41  ;;  %v11956_v37 = vpop.f32.mrf.mxu1  ;;  %v2360_v60 = vmax.f32 %v2345_v1, 0.0  ;;  %v2348_v31 = vadd.f32 %v11857_v34, %v2326_v23 }
 0x1a9   : > { %8627 = vst [vmem:[#allocation2 + $0x10] sm:$0xff] %v8569_v57   ;;  %v2279_v63 = vpop.f32.mrf.mxu0 }
 0x1aa   : > { %v2346_v35 = vadd.f32 %v11857_v34, %v2324_v2  ;;  %v2329_v12 = vmul.f32 %v11843_v62, %v2307_v32  ;;  %v2305_v53 = vadd.f32 %v2279_v63, %v2115_v48  ;;  %v11962_v19 = vpop.f32.mrf.mxu1  ;;  %v2363_v6 = vmax.f32 %v2348_v31, 0.0 }
 0x1ab   : > { %v9475_v14 = vpop.f32.mrf.mxu0  ;;  %v2388_v50 = vsel %vm2376_vm6, %v2360_v60, 0.0 }
 0x1ac   : > { %v2361_v55 = vmax.f32 %v2346_v35, 0.0  ;;  %v2351_v59 = vadd.f32 %v11857_v34, %v2329_v12  ;;  %v2327_v21 = vmul.f32 %v11843_v62, %v2305_v53  ;;  %v9507_v47 = vpop.f32.mrf.mxu1  ;;  %v2391_v43 = vsel %vm2376_vm6, %v2363_v6, 0.0 }
 0x1ad   : > { %v2282_v22 = vpop.f32.mrf.mxu0  ;;  %v8584_v24 = vpack.c.bf16 %v2391_v43, %v2362_v45 }
 0x1ae   : > { %v2389_v61 = vsel %vm2371_vm7, %v2361_v55, 0.0  ;;  %v2366_v46 = vmax.f32 %v2351_v59, 0.0  ;;  %v2349_v9 = vadd.f32 %v11857_v34, %v2327_v21  ;;  %v11974_v10 = vpop.f32.mrf.mxu1  ;;  %v2306_v33 = vadd.f32 %v2282_v22, %v2116_v13 }
 0x1af   : > { %v8579_v58 = vpack.c.bf16 %v2389_v61, %v2388_v50  ;;  %v9526_v15 = vpop.f32.mrf.mxu0  ;;  %8630 = vst [vmem:[#allocation2 + $0x28] sm:$0xff] %v8584_v24  }
 0x1b0   : > { %v2394_v52 = vsel %vm2376_vm6, %v2366_v46, 0.0  ;;  %v2884_v51 = vadd.f32 %v9526_v15, %v11846_v11  ;;  %v9558_v26 = vpop.f32.mrf.mxu1  ;;  %v2328_v25 = vmul.f32 %v11843_v62, %v2306_v33  ;;  %v2364_v27 = vmax.f32 %v2349_v9, 0.0 }
 0x1b1   : > { %8629 = vst [vmem:[#allocation2 + $0x20] sm:$0xff] %v8579_v58   ;;  %v8540_v4 = vpack.c.bf16 %v2394_v52, %v2394_v52  ;;  %v2875_v54 = vpop.f32.mrf.mxu0 }
 0x1b2   : > { %v11980_v41 = vadd.f32 %v9558_v26, %v2884_v51  ;;  %v2876_v7 = vadd.f32 %v2875_v54, %v11863_v8  ;;  %v3058_v1 = vpop.f32.mrf.mxu1  ;;  %v2350_v42 = vadd.f32 %v11857_v34, %v2328_v25  ;;  %v2392_v48 = vsel %vm2371_vm7, %v2364_v27, 0.0 }
 0x1b3   : > { %2474 = vst [vmem:[#allocation2 + $0x38] sm:$0xf] %v8540_v4  ;;  %v9527_v17 = vpop.f32.mrf.mxu0 }
 0x1b4   : > { %v11984_v0 = vadd.f32 %v3058_v1, %v2876_v7  ;;  %v2887_v11 = vadd.f32 %v9527_v17, %v11874_v30  ;;  %v9559_v57 = vpop.f32.mrf.mxu1  ;;  %v2365_v23 = vmax.f32 %v2350_v42, 0.0 }
 0x1b5   : > { %v2878_v38 = vpop.f32.mrf.mxu0 }
 0x1b6   : > { %v11989_v16 = vadd.f32 %v9559_v57, %v2887_v11  ;;  %v2879_v2 = vadd.f32 %v2878_v38, %v11883_v20  ;;  %v3061_v8 = vpop.f32.mrf.mxu1  ;;  %v8589_v32 = vpack.c.bf16 %v2365_v23, %v2392_v48 }
 0x1b7   : > { %v9530_v29 = vpop.f32.mrf.mxu0 }
 0x1b8   : > { %v11992_v60 = vadd.f32 %v3061_v8, %v2879_v2  ;;  %v2900_v31 = vadd.f32 %v9530_v29, %v11892_v5  ;;  %v9562_v63 = vpop.f32.mrf.mxu1  ;;  %8631 = vst [vmem:[#allocation2 + $0x30] sm:$0xff] %v8589_v32  }
 0x1b9   : > { %v2891_v30 = vpop.f32.mrf.mxu0 }
 0x1ba   : > { %v11995_v35 = vadd.f32 %v9562_v63, %v2900_v31  ;;  %v2892_v12 = vadd.f32 %v2891_v30, %v11899_v40  ;;  %v3074_v53 = vpop.f32.mrf.mxu1 }
 0x1bb   : > { %v9531_v6 = vpop.f32.mrf.mxu0 }
 0x1bc   : > { %v11998_v14 = vadd.f32 %v3074_v53, %v2892_v12  ;;  %v2903_v20 = vadd.f32 %v9531_v6, %v11910_v49  ;;  %v9563_v45 = vpop.f32.mrf.mxu1 }
 0x1bd   : > { %v2894_v55 = vpop.f32.mrf.mxu0 }
 0x1be   : > { %v3127_v59 = vadd.f32 %v9563_v45, %v2903_v20  ;;  %v2895_v21 = vadd.f32 %v2894_v55, %v11918_v56  ;;  %v3077_v47 = vpop.f32.mrf.mxu1 }
 0x1bf   : > { %v9534_v5 = vpop.f32.mrf.mxu0 }
 0x1c0   : > { %v12002_v13 = vadd.f32 %v3077_v47, %v2895_v21  ;;  %v2916_v50 = vadd.f32 %v9534_v5, %v11926_v44  ;;  %v9566_v43 = vpop.f32.mrf.mxu1 }
 0x1c1   : > { %v2907_v22 = vpop.f32.mrf.mxu0 }
 0x1c2   : > { %v3130_v40 = vadd.f32 %v9566_v43, %v2916_v50  ;;  %v2908_v24 = vadd.f32 %v2907_v22, %v11934_v3  ;;  %v3090_v61 = vpop.f32.mrf.mxu1 }
 0x1c3   : > { %v9535_v46 = vpop.f32.mrf.mxu0 }
 0x1c4   : > { %v12006_v9 = vadd.f32 %v3090_v61, %v2908_v24  ;;  %v2919_v49 = vadd.f32 %v9535_v46, %v11943_v39  ;;  %v9567_v58 = vpop.f32.mrf.mxu1 }
 0x1c5   : > { %v2910_v33 = vpop.f32.mrf.mxu0 }
 0x1c6   : > { %v12009_v56 = vadd.f32 %v9567_v58, %v2919_v49  ;;  %v2911_v15 = vadd.f32 %v2910_v33, %v11949_v18  ;;  %v3093_v52 = vpop.f32.mrf.mxu1 }
 0x1c7   : > { %v9538_v51 = vpop.f32.mrf.mxu0 }
 0x1c8   : > { %v12012_v44 = vadd.f32 %v3093_v52, %v2911_v15  ;;  %v2932_v26 = vadd.f32 %v9538_v51, %v11956_v37  ;;  %v9570_v4 = vpop.f32.mrf.mxu1 }
 0x1c9   : > { %v2923_v3 = vpop.f32.mrf.mxu0 }
 0x1ca   : > { %v12015_v25 = vadd.f32 %v9570_v4, %v2932_v26  ;;  %v2924_v54 = vadd.f32 %v2923_v3, %v11962_v19  ;;  %v3106_v27 = vpop.f32.mrf.mxu1 }
 0x1cb   : > { %v9539_v39 = vpop.f32.mrf.mxu0 }
 0x1cc   : > { %v12018_v7 = vadd.f32 %v3106_v27, %v2924_v54  ;;  %v9571_v1 = vpop.f32.mrf.mxu1 }
 0x1cd   : > { %v2926_v42 = vpop.f32.mrf.mxu0 }
 0x1ce   : > { %v2927_v18 = vadd.f32 %v2926_v42, %v11974_v10  ;;  %v3109_v17 = vpop.f32.mrf.mxu1 }
 0x1cf   : > { %v9590_v11 = vpop.f32.mrf.mxu0 }
 0x1d0   : > { %v12021_v57 = vadd.f32 %v3109_v17, %v2927_v18  ;;  %v9622_v23 = vpop.f32.mrf.mxu1 }
 0x1d1   : > { %v3253_v37 = vpop.f32.mrf.mxu0 }
 0x1d2   : > { %13201 = vst [vmem:[#allocation10_spill] sm:$0xff] %v12021_v57  ;;  %v12023_v38 = vpop.f32.mrf.mxu1  ;;  %v3317_v57 = vadd.f32 %v9590_v11, %v11980_v41 }
 0x1d3   : > { %v9591_v48 = vpop.f32.mrf.mxu0 }
 0x1d4   : > { %v12025_v2 = vpop.f32.mrf.mxu1 }
 0x1d5   : > { %v3256_v19 = vpop.f32.mrf.mxu0 }
 0x1d6   : > { %v12027_v8 = vpop.f32.mrf.mxu1  ;;  %v3316_v41 = vadd.f32 %v3256_v19, %v11992_v60 }
 0x1d7   : > { %v12029_v32 = vpop.f32.mrf.mxu0 }
 0x1d8   : > { %v12031_v29 = vpop.f32.mrf.mxu1 }
 0x1d9   : > { %v12033_v31 = vpop.f32.mrf.mxu0 }
 0x1da   : > { %v12035_v10 = vpop.f32.mrf.mxu1 }
 0x1db   : > { %v9595_v63 = vpop.f32.mrf.mxu0 }
 0x1dc   : > { %v3322_v30 = vadd.f32 %v9595_v63, %v3127_v59  ;;  %v9627_v12 = vpop.f32.mrf.mxu1 }
 0x1dd   : > { %v12037_v53 = vpop.f32.mrf.mxu0 }
 0x1de   : > { %v12039_v6 = vadd.f32 %v9627_v12, %v3322_v30  ;;  %v12041_v20 = vpop.f32.mrf.mxu1  ;;  %v3320_v60 = vadd.f32 %v12037_v53, %v12002_v13 }
 0x1df   : > { %v9598_v45 = vpop.f32.mrf.mxu0 }
 0x1e0   : > { %v3325_v55 = vadd.f32 %v9598_v45, %v3130_v40  ;;  %v9630_v21 = vpop.f32.mrf.mxu1  ;;  %v3569_v13 = vadd.f32 %v12041_v20, %v3320_v60 }
 0x1e1   : > { %v3285_v47 = vpop.f32.mrf.mxu0 }
 0x1e2   : > { %v12043_v5 = vadd.f32 %v9630_v21, %v3325_v55  ;;  %v12045_v50 = vpop.f32.mrf.mxu1 }
 0x1e3   : > { %v12047_v43 = vpop.f32.mrf.mxu0 }
 0x1e4   : > { %v12049_v22 = vpop.f32.mrf.mxu1 }
 0x1e5   : > { %v12051_v59 = vpop.f32.mrf.mxu0 }
 0x1e6   : > { %v12053_v24 = vpop.f32.mrf.mxu1 }
 0x1e7   : > { %v12055_v61 = vpop.f32.mrf.mxu0 }
 0x1e8   : > { %v12057_v46 = vpop.f32.mrf.mxu1 }
 0x1e9   : > { %v12059_v49 = vpop.f32.mrf.mxu0 }
 0x1ea   : > { %v12061_v40 = vpop.f32.mrf.mxu1 }
 0x1eb   : > { %13202 = vst [vmem:[#allocation13_spill] sm:$0xff] %v12061_v40  ;;  %v9603_v58 = vpop.f32.mrf.mxu0  ;;  %v3566_v40 = vadd.f32 %v9622_v23, %v3317_v57  ;;  %v3321_v57 = vadd.f32 %v12029_v32, %v11995_v35 }
 0x1ec   : > { %v9635_v33 = vpop.f32.mrf.mxu1 }
 0x1ed   : > { %v12063_v15 = vpop.f32.mrf.mxu0 }
 0x1ee   : > { %13203 = vst [vmem:[#allocation17_spill] sm:$0xff] %v12063_v15  ;;  %v12065_v52 = vpop.f32.mrf.mxu1 }
 0x1ef   : > { %13204 = vst [vmem:[#allocation19_spill] sm:$0xff] %v12065_v52  ;;  %v9654_v51 = vpop.f32.mrf.mxu0 }
 0x1f0   : > { %v9686_v26 = vpop.f32.mrf.mxu1  ;;  %v3764_v11 = vadd.f32 %v9654_v51, %v3566_v40 }
 0x1f1   : > { %v3700_v4 = vpop.f32.mrf.mxu0 }
 0x1f2   : > { %v3886_v3 = vpop.f32.mrf.mxu1 }
 0x1f3   : > { %v9655_v54 = vpop.f32.mrf.mxu0 }
 0x1f4   : > { %v9687_v27 = vpop.f32.mrf.mxu1 }
 0x1f5   : > { %v3703_v39 = vpop.f32.mrf.mxu0 }
 0x1f6   : > { %v3889_v1 = vpop.f32.mrf.mxu1 }
 0x1f7   : > { %v9658_v42 = vpop.f32.mrf.mxu0 }
 0x1f8   : > { %v12067_v18 = vpop.f32.mrf.mxu1 }
 0x1f9   : > { %v12069_v17 = vpop.f32.mrf.mxu0 }
 0x1fa   : > { %v12071_v63 = vpop.f32.mrf.mxu1 }
 0x1fb   : > { %13205 = vst [vmem:[#allocation18_spill] sm:$0xff] %v12071_v63  ;;  %v12073_v30 = vpop.f32.mrf.mxu0 }
 0x1fc   : > { %v12075_v12 = vpop.f32.mrf.mxu1 }
 0x1fd   : > { %13206 = vst [vmem:[#allocation12_spill] sm:$0xff] %v12075_v12  ;;  %v12077_v45 = vpop.f32.mrf.mxu0  ;;  %v3315_v12 = vadd.f32 %v3253_v37, %v11984_v0 }
 0x1fe   : > { %v12079_v55 = vpop.f32.mrf.mxu1 }
 0x1ff   : > { %13207 = vst [vmem:[#allocation21_spill] sm:$0xff] %v12079_v55  ;;  %v12081_v21 = vpop.f32.mrf.mxu0 }
 0x200   : > { %v12083_v58 = vpop.f32.mrf.mxu1 }
 0x201   : > { %13208 = vst [vmem:[#allocation20_spill] sm:$0xff] %v12083_v58  ;;  %v12085_v33 = vpop.f32.mrf.mxu0  ;;  %v3318_v58 = vadd.f32 %v9591_v48, %v11989_v16  ;;  %v3319_v16 = vadd.f32 %v12033_v31, %v11998_v14  ;;  %v3950_v48 = vadd.f32 %v9686_v26, %v3764_v11  ;;  %v3570_v14 = vadd.f32 %v12031_v29, %v3321_v57  ;;  %v13215_v57 = vld [vmem:[#allocation13_spill] sm:$0xff] }
 0x202   : > { %13209 = vst [vmem:[#allocation14_spill] sm:$0xff] %v12085_v33  ;;  %v12087_v52 = vpop.f32.mrf.mxu1  ;;  %v3329_v29 = vadd.f32 %v12055_v61, %v12015_v25  ;;  %v3767_v25 = vadd.f32 %v12077_v45, %v3569_v13 }
 0x203   : > { %13210 = vst [vmem:[#allocation11_spill] sm:$0xff] %v12087_v52  ;;  %v12089_v15 = vpop.f32.mrf.mxu0  ;;  %v3567_v0 = vadd.f32 %v12025_v2, %v3318_v58  ;;  %v3323_v2 = vadd.f32 %v3285_v47, %v12006_v9  ;;  %v3568_v31 = vadd.f32 %v12035_v10, %v3319_v16  ;;  %v3324_v47 = vadd.f32 %v12051_v59, %v12012_v44 }
 0x204   : > { %13211 = vst [vmem:[#allocation15_spill] sm:$0xff] %v12089_v15  ;;  %v12092_v36 = vpop.f32.mrf.mxu1  ;;  %v3564_v15 = vadd.f32 %v12023_v38, %v3315_v12  ;;  %v3565_v38 = vadd.f32 %v12027_v8, %v3316_v41  ;;  %v3326_v8 = vadd.f32 %v12047_v43, %v12009_v56  ;;  %v3327_v58 = vadd.f32 %v12059_v49, %v12018_v7 }
 0x205   : > { %13212 = vst [vmem:[#allocation24_spill] sm:$0xff] %v12092_v36  ;;  %v12094_v28 = vpop.f32.mrf.mxu0  ;;  %v3765_v19 = vadd.f32 %v9655_v54, %v3567_v0  ;;  %v3572_v9 = vadd.f32 %v12045_v50, %v3323_v2  ;;  %v3766_v50 = vadd.f32 %v12069_v17, %v3568_v31  ;;  %v3769_v44 = vadd.f32 %v12073_v30, %v12039_v6 }
 0x206   : > { %13213 = vst [vmem:[#allocation22_spill] sm:$0xff] %v12094_v28  ;;  %v12097_v63 = vpop.f32.mrf.mxu1  ;;  %v3762_v37 = vadd.f32 %v3700_v4, %v3564_v15  ;;  %v3763_v51 = vadd.f32 %v3703_v39, %v3565_v38  ;;  %v3573_v11 = vadd.f32 %v12053_v24, %v3324_v47  ;;  %v3772_v6 = vadd.f32 %v12081_v21, %v12043_v5  ;;  %v13216_v38 = vld [vmem:[#allocation18_spill] sm:$0xff] }
 0x207   : > { %13214 = vst [vmem:[#allocation23_spill] sm:$0xff] %v12097_v63  ;;  %v12099_v55 = vpop.f32.mrf.mxu0  ;;  %v3951_v53 = vadd.f32 %v9687_v27, %v3765_v19  ;;  %v3575_v27 = vadd.f32 %v12049_v22, %v3326_v8  ;;  %v3578_v22 = vadd.f32 %v12057_v46, %v3329_v29  ;;  %v3576_v16 = vadd.f32 %v13215_v57, %v3327_v58  ;;  %v13218_v19 = vld [vmem:[#allocation12_spill] sm:$0xff] }
 0x208   : > { %v12102_v33 = vpop.f32.mrf.mxu1  ;;  %v3948_v15 = vadd.f32 %v3886_v3, %v3762_v37  ;;  %v3768_v3 = vadd.f32 %v9658_v42, %v3570_v14  ;;  %v3949_v39 = vadd.f32 %v3889_v1, %v3763_v51  ;;  %v3952_v24 = vadd.f32 %v13216_v38, %v3766_v50 }
 0x209   : > { %v12104_v52 = vpop.f32.mrf.mxu0  ;;  %v13217_v60 = vld [vmem:[#allocation14_spill] sm:$0xff]  ;;  %v3955_v2 = vadd.f32 %v13218_v19, %v3769_v44 }
 0x20a   : > { %v12108_v36 = vpop.f32.mrf.mxu1  ;;  %v3954_v0 = vadd.f32 %v12067_v18, %v3768_v3  ;;  %v3770_v46 = vadd.f32 %v13217_v60, %v3572_v9  ;;  %v13222_v47 = vld [vmem:[#allocation11_spill] sm:$0xff] }
 0x20b   : > { %v9667_v28 = vpop.f32.mrf.mxu0 }
 0x20c   : > { %v9699_v63 = vpop.f32.mrf.mxu1  ;;  %v3956_v29 = vadd.f32 %v13222_v47, %v3770_v46  ;;  %v3774_v46 = vadd.f32 %v12104_v52, %v3576_v16  ;;  %v13230_v16 = vld [vmem:[#allocation19_spill] sm:$0xff] }
 0x20d   : > { %v12115_v23 = vpop.f32.mrf.mxu0 }
 0x20e   : > { %v12120_v28 = vpop.f32.mrf.mxu1 }
 0x20f   : > { %v9718_v40 = vpop.f32.mrf.mxu0 }
 0x210   : > { %v4154_v35 = vadd.f32 %v9718_v40, %v3950_v48  ;;  %v9750_v32 = vpop.f32.mrf.mxu1  ;;  %v13219_v40 = vld [vmem:[#allocation21_spill] sm:$0xff] }
 0x211   : > { %v4090_v4 = vpop.f32.mrf.mxu0 }
 0x212   : > { %v4341_v26 = vadd.f32 %v9750_v32, %v4154_v35  ;;  %v4152_v54 = vadd.f32 %v4090_v4, %v3948_v15  ;;  %v4277_v63 = vpop.f32.mrf.mxu1  ;;  %v3953_v15 = vadd.f32 %v13219_v40, %v3767_v25  ;;  %v13220_v4 = vld [vmem:[#allocation20_spill] sm:$0xff] }
 0x213   : > { %v9719_v10 = vpop.f32.mrf.mxu0  ;;  %v3958_v13 = vadd.f32 %v13220_v4, %v3772_v6 }
 0x214   : > { %v4363_v56 = vmul.f32 %v11843_v62, %v4341_v26  ;;  %v4339_v43 = vadd.f32 %v4277_v63, %v4152_v54  ;;  %v4155_v12 = vadd.f32 %v9719_v10, %v3951_v53  ;;  %v9751_v20 = vpop.f32.mrf.mxu1 }
 0x215   : > { %v4093_v59 = vpop.f32.mrf.mxu0 }
 0x216   : > { %v4361_v61 = vmul.f32 %v11843_v62, %v4339_v43  ;;  %v4342_v1 = vadd.f32 %v9751_v20, %v4155_v12  ;;  %v4153_v42 = vadd.f32 %v4093_v59, %v3949_v39  ;;  %v4280_v41 = vpop.f32.mrf.mxu1  ;;  %v4385_v7 = vadd.f32 %v11857_v34, %v4363_v56  ;;  %v13223_v43 = vld [vmem:[#allocation15_spill] sm:$0xff]  ;;  %v13224_v20 = vld [vmem:[#allocation22_spill] sm:$0xff] }
 0x217   : > { %v9722_v49 = vpop.f32.mrf.mxu0  ;;  %v3773_v12 = vadd.f32 %v13223_v43, %v3575_v27  ;;  %v3771_v58 = vadd.f32 %v13224_v20, %v3573_v11  ;;  %v13227_v11 = vld [vmem:[#allocation17_spill] sm:$0xff] }
 0x218   : > { %v4383_v17 = vadd.f32 %v11857_v34, %v4361_v61  ;;  %v4364_v30 = vmul.f32 %v11843_v62, %v4342_v1  ;;  %v4340_v45 = vadd.f32 %v4280_v41, %v4153_v42  ;;  %v9754_v37 = vpop.f32.mrf.mxu1  ;;  %v4158_v48 = vadd.f32 %v9722_v49, %v3954_v0 }
 0x219   : > { %v4106_v18 = vpop.f32.mrf.mxu0  ;;  %v4400_v35 = vmax.f32 %v4385_v7, 0.0 }
 0x21a   : > { %v4398_v51 = vmax.f32 %v4383_v17, 0.0  ;;  %v4362_v5 = vmul.f32 %v11843_v62, %v4340_v45  ;;  %v4293_v21 = vpop.f32.mrf.mxu1  ;;  %v4386_v32 = vadd.f32 %v11857_v34, %v4364_v30  ;;  %v4345_v14 = vadd.f32 %v9754_v37, %v4158_v48  ;;  %v13226_v30 = vld [vmem:[#allocation10_spill] sm:$0xff] }
 0x21b   : > { %v4156_v31 = vadd.f32 %v4106_v18, %v3952_v24  ;;  %v9723_v8 = vpop.f32.mrf.mxu0  ;;  %v4415_v61 = vsel %vm2376_vm6, %v4400_v35, 0.0  ;;  %v3328_v45 = vadd.f32 %v13227_v11, %v13226_v30  ;;  %v3776_v37 = vadd.f32 %v12099_v55, %v3578_v22  ;;  %v13228_v24 = vld [vmem:[#allocation24_spill] sm:$0xff] }
 0x21c   : > { %v4413_v26 = vsel %vm2371_vm7, %v4398_v51, 0.0  ;;  %v4384_v54 = vadd.f32 %v11857_v34, %v4362_v5  ;;  %v4159_v63 = vadd.f32 %v9723_v8, %v3955_v2  ;;  %v9755_v9 = vpop.f32.mrf.mxu1  ;;  %v4367_v10 = vmul.f32 %v11843_v62, %v4345_v14  ;;  %v13229_v2 = vld [vmem:[#allocation23_spill] sm:$0xff] }
 0x21d   : > { %v8541_v3 = vpack.c.bf16 %v4413_v26, %v4413_v26  ;;  %v4343_v39 = vadd.f32 %v4293_v21, %v4156_v31  ;;  %v4109_v56 = vpop.f32.mrf.mxu0  ;;  %v4401_v1 = vmax.f32 %v4386_v32, 0.0  ;;  %v3959_v60 = vadd.f32 %v13228_v24, %v3773_v12 }
 0x21e   : > { %v4399_v50 = vmax.f32 %v4384_v54, 0.0  ;;  %v4157_v44 = vadd.f32 %v4109_v56, %v3953_v15  ;;  %v4296_v59 = vpop.f32.mrf.mxu1  ;;  %v4346_v41 = vadd.f32 %v9755_v9, %v4159_v63  ;;  %v4389_v49 = vadd.f32 %v11857_v34, %v4367_v10 }
 0x21f   : > { %4494 = vst [vmem:[#allocation2 + $0x3c] sm:$0xf] %v8541_v3  ;;  %v4365_v42 = vmul.f32 %v11843_v62, %v4343_v39  ;;  %v9726_v0 = vpop.f32.mrf.mxu0  ;;  %v3957_v40 = vadd.f32 %v13229_v2, %v3771_v58  ;;  %v4416_v55 = vsel %vm2371_vm7, %v4401_v1, 0.0  ;;  %v3577_v14 = vadd.f32 %v13230_v16, %v3328_v45 }
 0x220   : > { %v8594_v7 = vpack.c.bf16 %v4415_v61, %v4399_v50  ;;  %v4344_v6 = vadd.f32 %v4296_v59, %v4157_v44  ;;  %v4162_v17 = vadd.f32 %v9726_v0, %v3958_v13  ;;  %v9758_v27 = vpop.f32.mrf.mxu1  ;;  %v4368_v51 = vmul.f32 %v11843_v62, %v4346_v41 }
 0x221   : > { %v4387_v57 = vadd.f32 %v11857_v34, %v4365_v42  ;;  %v4122_v38 = vpop.f32.mrf.mxu0  ;;  %v4404_v22 = vmax.f32 %v4389_v49, 0.0  ;;  %v3962_v31 = vadd.f32 %v12102_v33, %v3776_v37  ;;  %v3960_v26 = vadd.f32 %v12108_v36, %v3774_v46 }
 0x222   : > { %8632 = vst [vmem:[#allocation2 + $0x40] sm:$0xff] %v8594_v7   ;;  %v4366_v48 = vmul.f32 %v11843_v62, %v4344_v6  ;;  %v4160_v18 = vadd.f32 %v4122_v38, %v3956_v29  ;;  %v4309_v19 = vpop.f32.mrf.mxu1  ;;  %v4349_v5 = vadd.f32 %v9758_v27, %v4162_v17  ;;  %v3775_v29 = vadd.f32 %v12115_v23, %v3577_v14 }
 0x223   : > { %v4402_v15 = vmax.f32 %v4387_v57, 0.0  ;;  %v9727_v21 = vpop.f32.mrf.mxu0  ;;  %v4390_v3 = vadd.f32 %v11857_v34, %v4368_v51  ;;  %v4419_v33 = vsel %vm2371_vm7, %v4404_v22, 0.0 }
 0x224   : > { %v4388_v35 = vadd.f32 %v11857_v34, %v4366_v48  ;;  %v4347_v32 = vadd.f32 %v4309_v19, %v4160_v18  ;;  %v9759_v52 = vpop.f32.mrf.mxu1  ;;  %v4163_v4 = vadd.f32 %v9727_v21, %v3959_v60  ;;  %v4371_v10 = vmul.f32 %v11843_v62, %v4349_v5 }
 0x225   : > { %v8599_v8 = vpack.c.bf16 %v4402_v15, %v4416_v55  ;;  %v4125_v13 = vpop.f32.mrf.mxu0  ;;  %v3961_v41 = vadd.f32 %v12120_v28, %v3775_v29  ;;  %v4405_v0 = vmax.f32 %v4390_v3, 0.0 }
 0x226   : > { %v4403_v54 = vmax.f32 %v4388_v35, 0.0  ;;  %v4369_v63 = vmul.f32 %v11843_v62, %v4347_v32  ;;  %v4161_v9 = vadd.f32 %v4125_v13, %v3957_v40  ;;  %v4312_v47 = vpop.f32.mrf.mxu1  ;;  %v4350_v39 = vadd.f32 %v9759_v52, %v4163_v4 }
 0x227   : > { %8633 = vst [vmem:[#allocation2 + $0x48] sm:$0xff] %v8599_v8   ;;  %v9730_v56 = vpop.f32.mrf.mxu0  ;;  %v4393_v7 = vadd.f32 %v11857_v34, %v4371_v10 }
 0x228   : > { %v4418_v36 = vsel %vm2376_vm6, %v4403_v54, 0.0  ;;  %v4391_v43 = vadd.f32 %v11857_v34, %v4369_v63  ;;  %v4348_v12 = vadd.f32 %v4312_v47, %v4161_v9  ;;  %v9762_v20 = vpop.f32.mrf.mxu1  ;;  %v4372_v23 = vmul.f32 %v11843_v62, %v4350_v39 }
 0x229   : > { %v8604_v58 = vpack.c.bf16 %v4419_v33, %v4418_v36  ;;  %v4166_v50 = vadd.f32 %v9730_v56, %v3962_v31  ;;  %v4138_v44 = vpop.f32.mrf.mxu0  ;;  %v4408_v46 = vmax.f32 %v4393_v7, 0.0 }
 0x22a   : > { %v4406_v59 = vmax.f32 %v4391_v43, 0.0  ;;  %v4370_v61 = vmul.f32 %v11843_v62, %v4348_v12  ;;  %v4164_v1 = vadd.f32 %v4138_v44, %v3960_v26  ;;  %v4325_v42 = vpop.f32.mrf.mxu1  ;;  %v4394_v27 = vadd.f32 %v11857_v34, %v4372_v23 }
 0x22b   : > { %8634 = vst [vmem:[#allocation2 + $0x50] sm:$0xff] %v8604_v58   ;;  %v4353_v49 = vadd.f32 %v9762_v20, %v4166_v50  ;;  %v9731_v6 = vpop.f32.mrf.mxu0 }
 0x22c   : > { %v4421_v17 = vsel %vm2376_vm6, %v4406_v59, 0.0  ;;  %v4392_v30 = vadd.f32 %v11857_v34, %v4370_v61  ;;  %v4351_v11 = vadd.f32 %v4325_v42, %v4164_v1  ;;  %v9763_v45 = vpop.f32.mrf.mxu1  ;;  %v4409_v19 = vmax.f32 %v4394_v27, 0.0 }
 0x22d   : > { %v8609_v37 = vpack.c.bf16 %v4421_v17, %v4405_v0  ;;  %v4375_v57 = vmul.f32 %v11843_v62, %v4353_v49  ;;  %v4141_v38 = vpop.f32.mrf.mxu0 }
 0x22e   : > { %v4407_v28 = vmax.f32 %v4392_v30, 0.0  ;;  %v4373_v24 = vmul.f32 %v11843_v62, %v4351_v11  ;;  %v4165_v60 = vadd.f32 %v4141_v38, %v3961_v41  ;;  %v4328_v18 = vpop.f32.mrf.mxu1  ;;  %v4424_v22 = vsel %vm2376_vm6, %v4409_v19, 0.0 }
 0x22f   : > { %8635 = vst [vmem:[#allocation2 + $0x58] sm:$0xff] %v8609_v37   ;;  %v4397_v48 = vadd.f32 %v11857_v34, %v4375_v57 }
 0x230   : > { %v4422_v2 = vsel %vm2371_vm7, %v4407_v28, 0.0  ;;  %v4395_v40 = vadd.f32 %v11857_v34, %v4373_v24  ;;  %v4352_v15 = vadd.f32 %v4328_v18, %v4165_v60 }
 0x231   : > { %v8614_v51 = vpack.c.bf16 %v4408_v46, %v4422_v2  ;;  %v4412_v55 = vmax.f32 %v4397_v48, 0.0 }
 0x232   : > { %v4410_v5 = vmax.f32 %v4395_v40, 0.0  ;;  %v4374_v21 = vmul.f32 %v11843_v62, %v4352_v15 }
 0x233   : > { %8636 = vst [vmem:[#allocation2 + $0x60] sm:$0xff] %v8614_v51   ;;  %v4427_v14 = vsel %vm2376_vm6, %v4412_v55, 0.0 }
 0x234   : > { %v4425_v35 = vsel %vm2371_vm7, %v4410_v5, 0.0  ;;  %v4396_v32 = vadd.f32 %v11857_v34, %v4374_v21 }
 0x235   : > { %v8619_v52 = vpack.c.bf16 %v4425_v35, %v4424_v22 }
 0x236   : > { %v4411_v16 = vmax.f32 %v4396_v32, 0.0  ;;  %4512 = sbr.rel (%p8324_p5) target bundleno = 574 (0x23e), region = 64 }
 0x237   : > { %8637 = vst [vmem:[#allocation2 + $0x68] sm:$0xff] %v8619_v52  }
 0x238   : > { %v8624_v31 = vpack.c.bf16 %v4427_v14, %v4411_v16 }
 0x23a   : > { %8638 = vst [vmem:[#allocation2 + $0x70] sm:$0xff] %v8624_v31  }
 0x23b   : > { %v10915_v62 = vmov 0  }
 0x23c   : > { %4513 = vst [vmem:[#allocation2] sm:$0xf] %v10915_v62  ;;  %4514 = vst [vmem:[#allocation2 + $0x4] sm:$0xf] %v10915_v62 }
 0x23d   : > { %4515 = vst [vmem:[#allocation2 + $0x8] sm:$0xf] %v10915_v62 }
 0x23e PF: > { %p8325_p13 = scmp.ne.s32.totalorder %s10893_s27, 1 }
 0x240   : > { %4519 = sbr.rel (%p8325_p13) target bundleno = 584 (0x248), region = 68 }
 0x245   : > { %v10916_v34 = vmov 0  }
 0x246   : > { %4521 = vst [vmem:[#allocation2 + $0x6c] sm:$0xf] %v10916_v34  ;;  %4522 = vst [vmem:[#allocation2 + $0x70] sm:$0xf] %v10916_v34 }
 0x247   : > { %4523 = vst [vmem:[#allocation2 + $0x74] sm:$0xf] %v10916_v34 }
 0x248 PF: > { %v10630_v53 = vld [vmem:[#allocation5 + $0x78] sm:$0xff]   ;;  %v10632_v8 = vld [vmem:[#allocation5 + $0x70] sm:$0xff]   ;;  %v10634_v13 = vld [vmem:[#allocation5 + $0x68] sm:$0xff]   ;;  %vm10918_vm8 = vmmov 0   ;;  %vm6394_vm9 = vcmask 31744  }
 0x249   : > { %v10631_v25 = vld [vmem:[#allocation5 + $0x38] sm:$0xff]   ;;  %9764 = vmatprep.subr.bf16.mxu0 %v10630_v53  ;;  %v10633_v4 = vld [vmem:[#allocation5 + $0x30] sm:$0xff]   ;;  %v10635_v26 = vld [vmem:[#allocation5 + $0x28] sm:$0xff]  }
 0x24a   : > { %9796 = vmatprep.subr.bf16.mxu1 %v10631_v25  ;;  %9765 = vmatpush3.bf16.msra.mxu0 %v10630_v53  ;;  %v10636_v54 = vld [vmem:[#allocation5 + $0x60] sm:$0xff]   ;;  %v10638_v9 = vld [vmem:[#allocation5 + $0x58] sm:$0xff]   ;;  %v10640_v29 = vld [vmem:[#allocation5 + $0x50] sm:$0xff]  }
 0x24b   : > { %9797 = vmatpush3.bf16.msra.mxu1 %v10631_v25  ;;  %9766 = vmatprep.subr.bf16.mxu0 %v10632_v8  ;;  %v10637_v63 = vld [vmem:[#allocation5 + $0x20] sm:$0xff]   ;;  %v10639_v47 = vld [vmem:[#allocation5 + $0x18] sm:$0xff]   ;;  %v10641_v3 = vld [vmem:[#allocation5 + $0x10] sm:$0xff]  }
 0x24c   : > { %9798 = vmatprep.subr.bf16.mxu1 %v10633_v4  ;;  %v4526_v10 = vld [vmem:[#allocation2 + $0x8] sm:$0xf]  ;;  %v12217_v39 = vld [vmem:[#allocation2 + $0xc] sm:$0xf]  ;;  %v12219_v56 = vld [vmem:[#allocation2] sm:$0xff]  }
 0x24d   : > { %v12221_v33 = vld [vmem:[#allocation2 + $0x10] sm:$0xf]  ;;  %v12224_v36 = vcombine.low %v4526_v10, %v12217_v39  ;;  %v12226_v43 = vld [vmem:[#allocation2 + $0x14] sm:$0xf]  ;;  %v4619_v12 = vshrl.u32 %v12219_v56, 16  ;;  %v4621_v20 = vshll.u32 %v12219_v56, 16  ;;  %9812 = vmatprep.mubr.bf16.mxu1 %v12219_v56 }
 0x24e   : > { %9767 = vmatpush3.bf16.msra.mxu0 %v10632_v8  ;;  %v12233_v58 = vcombine.low %v12221_v33, %v12226_v43  ;;  %v10642_v23 = vld [vmem:[#allocation5 + $0x48] sm:$0xff]   ;;  %v10644_v61 = vld [vmem:[#allocation5 + $0x40] sm:$0xff]   ;;  %v10649_v24 = vld [vmem:[#allocation5 + $0xb8] sm:$0xff]  }
 0x24f   : > { %9799 = vmatpush3.bf16.msra.mxu1 %v10633_v4  ;;  %9768 = vmatprep.subr.bf16.mxu0 %v10634_v13  ;;  %v4626_v50 = vshll.u32 %v12224_v36, 16  ;;  %v10643_v44 = vld [vmem:[#allocation5 + $0x8] sm:$0xff]   ;;  %v4623_v59 = vrot.slane %v4621_v20, 1  ;;  %v10645_v42 = vld [vmem:[#allocation5] sm:$0xff]   ;;  %v4630_v0 = vshrl.u32 %v12224_v36, 16  ;;  %v10650_v46 = vld [vmem:[#allocation5 + $0xf8] sm:$0xff]  }
 0x250   : > { %9800 = vmatprep.subr.bf16.mxu1 %v10635_v26  ;;  %v4634_v7 = vshll.u32 %v12233_v58, 16  ;;  %v12238_v49 = vld [vmem:[#allocation2 + $0x18] sm:$0xf]  ;;  %v12240_v6 = vld [vmem:[#allocation2 + $0x1c] sm:$0xf]  ;;  %v4638_v45 = vshrl.u32 %v12233_v58, 16 }
 0x251   : > { %v4628_v1 = vrot.slane %v4626_v50, 1  ;;  %v4624_v41 = vor.u32 %v4623_v59, %v4619_v12  ;;  %v12244_v17 = vcombine.low %v12238_v49, %v12240_v6  ;;  %v12246_v27 = vld [vmem:[#allocation2 + $0x20] sm:$0xf]  ;;  %v12248_v30 = vld [vmem:[#allocation2 + $0x24] sm:$0xf]  ;;  %v10651_v19 = vld [vmem:[#allocation5 + $0xb0] sm:$0xff]  }
 0x252   : > { %9769 = vmatpush3.bf16.msra.mxu0 %v10634_v13  ;;  %v12255_v57 = vcombine.low %v12246_v27, %v12248_v30  ;;  %v4636_v28 = vrot.slane %v4634_v7, 1  ;;  %v12257_v60 = vld [vmem:[#allocation2 + $0x28] sm:$0xf]  ;;  %v12260_v18 = vld [vmem:[#allocation2 + $0x2c] sm:$0xf]  ;;  %v10655_v53 = vld [vmem:[#allocation5 + $0xa8] sm:$0xff]  }
 0x253   : > { %9801 = vmatpush3.bf16.msra.mxu1 %v10635_v26  ;;  %9770 = vmatprep.subr.bf16.mxu0 %v10636_v54  ;;  %v4629_v11 = vsel %vm509_vm0, %v4624_v41, %v4628_v1  ;;  %v4642_v37 = vshll.u32 %v12244_v17, 16  ;;  %v4632_v38 = vor.u32 %v4630_v0, %v4628_v1  ;;  %v4646_v48 = vshrl.u32 %v12244_v17, 16  ;;  %v12268_v21 = vld [vmem:[#allocation2 + $0x30] sm:$0xf]  ;;  %v12270_v55 = vld [vmem:[#allocation2 + $0x34] sm:$0xf] }
 0x254   : > { %9802 = vmatprep.subr.bf16.mxu1 %v10637_v63  ;;  %9780 = vmatprep.mubr.bf16.mxu0 %v4629_v11  ;;  %v4640_v2 = vor.u32 %v4638_v45, %v4636_v28  ;;  %v4650_v15 = vshll.u32 %v12255_v57, 16  ;;  %v12265_v51 = vcombine.low %v12257_v60, %v12260_v18  ;;  %v10652_v22 = vld [vmem:[#allocation5 + $0xf0] sm:$0xff]   ;;  %v4654_v16 = vshrl.u32 %v12255_v57, 16  ;;  %v12275_v14 = vld [vmem:[#allocation2 + $0x38] sm:$0xf]  ;;  %v10656_v25 = vld [vmem:[#allocation5 + $0xe8] sm:$0xff]  }
 0x255   : > { %v4644_v40 = vrot.slane %v4642_v37, 1  ;;  %v4637_v5 = vsel %vm509_vm0, %v4632_v38, %v4636_v28  ;;  %v12280_v62 = vcombine.low %v12268_v21, %v12270_v55  ;;  %v12282_v34 = vld [vmem:[#allocation2 + $0x3c] sm:$0xf]  ;;  %v10662_v50 = vld [vmem:[#allocation5 + $0xd8] sm:$0xff]   ;;  %v10663_v1 = vld [vmem:[#allocation5 + $0x90] sm:$0xff]   ;;  %v4993_v37 = vrot.slane %v12219_v56, 1 }
 0x256   : > { %9771 = vmatpush3.bf16.msra.mxu0 %v10636_v54  ;;  %v4658_v35 = vshll.u32 %v12265_v51, 16  ;;  %v4652_v52 = vrot.slane %v4650_v15, 1  ;;  %v12287_v13 = vcombine.low %v12275_v14, %v12282_v34  ;;  %v10657_v54 = vld [vmem:[#allocation5 + $0xa0] sm:$0xff]   ;;  %v10667_v7 = vld [vmem:[#allocation5 + $0x88] sm:$0xff]   ;;  %v4994_v38 = vrot.slane %v12224_v36, 1 }
 0x257   : > { %9803 = vmatpush3.bf16.msra.mxu1 %v10637_v63  ;;  %9772 = vmatprep.subr.bf16.mxu0 %v10638_v9  ;;  %v4645_v32 = vsel %vm509_vm0, %v4640_v2, %v4644_v40  ;;  %v4648_v31 = vor.u32 %v4646_v48, %v4644_v40  ;;  %v4662_v63 = vshrl.u32 %v12265_v51, 16  ;;  %v10668_v11 = vld [vmem:[#allocation5 + $0xc8] sm:$0xff]   ;;  %v8342_v28 = vcombine.low %v12275_v14, %v12275_v14  ;;  %v10674_v2 = vld [vmem:[#allocation5 + $0x178] sm:$0xff]  }
 0x258   : > { %9804 = vmatprep.subr.bf16.mxu1 %v10639_v47  ;;  %v4660_v8 = vrot.slane %v4658_v35, 1  ;;  %v4656_v4 = vor.u32 %v4654_v16, %v4652_v52  ;;  %v4674_v10 = vshll.u32 %v12287_v13, 16  ;;  %v4678_v0 = vshrl.u32 %v12287_v13, 16  ;;  %v10682_v16 = vld [vmem:[#allocation5 + $0x160] sm:$0xff]  }
 0x259   : > { %v12290_v26 = vsel %vm509_vm0, %v4648_v31, %v4652_v52  ;;  %v4995_v48 = vsel %vm895_vm1, %v4993_v37, %v4994_v38  ;;  %v4996_v56 = vrot.slane %v12233_v58, 1  ;;  %v4998_v40 = vrot.slane %v12244_v17, 1 }
 0x25a   : > { %9773 = vmatpush3.bf16.msra.mxu0 %v10638_v9  ;;  %v4666_v9 = vshll.u32 %v12280_v62, 16  ;;  %v4664_v12 = vor.u32 %v4662_v63, %v4660_v8  ;;  %v4676_v59 = vrot.slane %v4674_v10, 1  ;;  %v5000_v35 = vrot.slane %v12255_v57, 1  ;;  %v10687_v63 = vld [vmem:[#allocation5 + $0x110] sm:$0xff]  }
 0x25b   : > { %9805 = vmatpush3.bf16.msra.mxu1 %v10639_v47  ;;  %9774 = vmatprep.subr.bf16.mxu0 %v10640_v29  ;;  %v10658_v47 = vld [vmem:[#allocation5 + $0xe0] sm:$0xff]   ;;  %v4997_v15 = vsel %vm895_vm1, %v4994_v38, %v4996_v56 }
 0x25c   : > { %9806 = vmatprep.subr.bf16.mxu1 %v10641_v3  ;;  %v4668_v20 = vrot.slane %v4666_v9, 1  ;;  %v12314_v45 = vor.u32 %v4678_v0, %v4676_v59  ;;  %v12344_v52 = vsel %vm895_vm1, %v4998_v40, %v5000_v35  ;;  %v10688_v9 = vld [vmem:[#allocation5 + $0x150] sm:$0xff]  }
 0x25e   : > { %9775 = vmatpush3.bf16.msra.mxu0 %v10640_v29  ;;  %v12296_v29 = vsel %vm509_vm0, %v4656_v4, %v4660_v8  ;;  %v12363_v8 = vrot.slane %v12287_v13, 1  ;;  %v12371_v4 = vcombine.low %v12270_v55, %v12275_v14 }
 0x25f   : > { %9807 = vmatpush3.bf16.msra.mxu1 %v10641_v3  ;;  %9776 = vmatprep.subr.bf16.mxu0 %v10642_v23  ;;  %v4670_v3 = vshrl.u32 %v12280_v62, 16 }
 0x260   : > { %9808 = vmatprep.subr.bf16.mxu1 %v10643_v44 }
 0x262   : > { %9777 = vmatpush3.bf16.msra.mxu0 %v10642_v23  ;;  %v10661_v23 = vld [vmem:[#allocation5 + $0x98] sm:$0xff]  }
 0x263   : > { %9809 = vmatpush3.bf16.msra.mxu1 %v10643_v44  ;;  %9778 = vmatprep.subr.bf16.mxu0 %v10644_v61  ;;  %v4672_v44 = vor.u32 %v4670_v3, %v4668_v20 }
 0x264   : > { %9810 = vmatprep.subr.bf16.mxu1 %v10645_v42 }
 0x265   : > { %v12308_v41 = vsel %vm509_vm0, %v4672_v44, %v4676_v59 }
 0x266   : > { %9779 = vmatpush3.bf16.msra.mxu0 %v10644_v61  ;;  %v12304_v61 = vsel %vm509_vm0, %v4664_v12, %v4668_v20  ;;  %v12387_v12 = vld [vmem:[#allocation2 + $0x44] sm:$0xf] }
 0x267   : > { %9811 = vmatpush3.bf16.msra.mxu1 %v10645_v42  ;;  %9828 = vmatprep.subr.bf16.mxu0 %v10649_v24  ;;  %v10664_v42 = vld [vmem:[#allocation5 + $0xd0] sm:$0xff]   ;;  %v10694_v20 = vld [vmem:[#allocation5 + $0x108] sm:$0xff]  }
 0x268   : > { %9860 = vmatprep.subr.bf16.mxu1 %v10650_v46 }
 0x269   : > { %9781 = vmatmul.mubr.bf16.vlgmr.msra.gmra.mxu0 %v4637_v5  ;;  %v4999_v5 = vsel %vm895_vm1, %v4996_v56, %v4998_v40  ;;  %v10698_v56 = vld [vmem:[#allocation5 + $0x1b8] sm:$0xff]  }
 0x26a   : > { %9813 = vmatmul.mubr.bf16.vlgmr.msra.gmra.mxu1 %v12224_v36  ;;  %9829 = vmatpush3.bf16.msra.mxu0 %v10649_v24  ;;  %v10669_v24 = vld [vmem:[#allocation5 + $0x80] sm:$0xff]   ;;  %v10673_v36 = vld [vmem:[#allocation5 + $0x138] sm:$0xff]  }
 0x26b   : > { %9861 = vmatpush3.bf16.msra.mxu1 %v10650_v46  ;;  %9830 = vmatprep.subr.bf16.mxu0 %v10651_v19  ;;  %v10670_v46 = vld [vmem:[#allocation5 + $0xc0] sm:$0xff]  }
 0x26c   : > { %9862 = vmatprep.subr.bf16.mxu1 %v10652_v22  ;;  %9784 = vmatprep.mubr.bf16.mxu0 %v4645_v32  ;;  %v5002_v32 = vrot.slane %v12265_v51, 1 }
 0x26d   : > { %9816 = vmatprep.mubr.bf16.mxu1 %v12233_v58  ;;  %v10676_v58 = vld [vmem:[#allocation5 + $0x170] sm:$0xff]  }
 0x26e   : > { %9831 = vmatpush3.bf16.msra.mxu0 %v10651_v19  ;;  %v12324_v19 = vcombine.low %v12217_v39, %v12221_v33  ;;  %v12332_v39 = vcombine.low %v12226_v43, %v12238_v49  ;;  %v10675_v33 = vld [vmem:[#allocation5 + $0x130] sm:$0xff]   ;;  %v10679_v43 = vld [vmem:[#allocation5 + $0x128] sm:$0xff]   ;;  %v12352_v31 = vsel %vm895_vm1, %v5000_v35, %v5002_v32 }
 0x26f   : > { %9863 = vmatpush3.bf16.msra.mxu1 %v10652_v22  ;;  %9832 = vmatprep.subr.bf16.mxu0 %v10655_v53  ;;  %v12337_v22 = vcombine.low %v12240_v6, %v12246_v27  ;;  %v10680_v49 = vld [vmem:[#allocation5 + $0x168] sm:$0xff]   ;;  %v12348_v6 = vcombine.low %v12248_v30, %v12257_v60  ;;  %v10681_v27 = vld [vmem:[#allocation5 + $0x120] sm:$0xff]   ;;  %v5004_v30 = vrot.slane %v12280_v62, 1  ;;  %v10685_v60 = vld [vmem:[#allocation5 + $0x118] sm:$0xff]  }
 0x270   : > { %9864 = vmatprep.subr.bf16.mxu1 %v10656_v25  ;;  %v5372_v55 = vshrl.u32 %v12324_v19, 16  ;;  %v5383_v44 = vshrl.u32 %v12332_v39, 16  ;;  %v5608_v59 = vrot.slane %v12324_v19, 1  ;;  %v12408_v35 = vld [vmem:[#allocation2 + $0x48] sm:$0xf] }
 0x271   : > { %9785 = vmatmul.mubr.bf16.gmra.mxu0 %v12290_v26  ;;  %v12379_v3 = vsel %vm895_vm1, %v5004_v30, %v12363_v8  ;;  %v5387_v0 = vshll.u32 %v12337_v22, 16  ;;  %v5391_v37 = vshrl.u32 %v12337_v22, 16 }
 0x272   : > { %9817 = vmatmul.mubr.bf16.gmra.mxu1 %v12244_v17  ;;  %9833 = vmatpush3.bf16.msra.mxu0 %v10655_v53  ;;  %v12356_v53 = vcombine.low %v12260_v18, %v12268_v21  ;;  %v5374_v18 = vshll.u32 %v12324_v19, 16  ;;  %v12367_v21 = vsel %vm895_vm1, %v5002_v32, %v5004_v30 }
 0x273   : > { %9865 = vmatpush3.bf16.msra.mxu1 %v10656_v25  ;;  %9834 = vmatprep.subr.bf16.mxu0 %v10657_v54  ;;  %v10686_v25 = vld [vmem:[#allocation5 + $0x158] sm:$0xff]  }
 0x274   : > { %9866 = vmatprep.subr.bf16.mxu1 %v10658_v47  ;;  %9788 = vmatprep.mubr.bf16.mxu0 %v12296_v29  ;;  %v5376_v14 = vrot.slane %v5374_v18, 1  ;;  %v10702_v18 = vld [vmem:[#allocation5 + $0x1a8] sm:$0xff]  }
 0x275   : > { %9820 = vmatprep.mubr.bf16.mxu1 %v12255_v57 }
 0x276   : > { %9835 = vmatpush3.bf16.msra.mxu0 %v10657_v54  ;;  %v12373_v54 = vld [vmem:[#allocation2 + $0x40] sm:$0xf] }
 0x277   : > { %9867 = vmatpush3.bf16.msra.mxu1 %v10658_v47  ;;  %9836 = vmatprep.subr.bf16.mxu0 %v10661_v23  ;;  %v5379_v47 = vshll.u32 %v12332_v39, 16  ;;  %v12383_v10 = vcombine.low %v12282_v34, %v12373_v54  ;;  %v5377_v34 = vor.u32 %v5376_v14, %v5372_v55  ;;  %v5415_v55 = vshrl.u32 %v12371_v4, 16 }
 0x278   : > { %9868 = vmatprep.subr.bf16.mxu1 %v10662_v50 }
 0x279   : > { %9789 = vmatmul.mubr.bf16.gmra.mxu0 %v12304_v61  ;;  %v5419_v14 = vshll.u32 %v12383_v10, 16 }
 0x27a   : > { %9821 = vmatmul.mubr.bf16.gmra.mxu1 %v12265_v51  ;;  %9837 = vmatpush3.bf16.msra.mxu0 %v10661_v23  ;;  %v10695_v23 = vld [vmem:[#allocation5 + $0x148] sm:$0xff]  }
 0x27b   : > { %9869 = vmatpush3.bf16.msra.mxu1 %v10662_v50  ;;  %9838 = vmatprep.subr.bf16.mxu0 %v10663_v1  ;;  %v5381_v50 = vrot.slane %v5379_v47, 1  ;;  %v5617_v47 = vrot.slane %v12371_v4, 1 }
 0x27c   : > { %9870 = vmatprep.subr.bf16.mxu1 %v10664_v42  ;;  %9792 = vmatprep.mubr.bf16.mxu0 %v12308_v41 }
 0x27d   : > { %9824 = vmatprep.mubr.bf16.mxu1 %v12280_v62  ;;  %v5382_v38 = vsel %vm509_vm0, %v5377_v34, %v5381_v50 }
 0x27e   : > { %9839 = vmatpush3.bf16.msra.mxu0 %v10663_v1  ;;  %v8366_v1 = vcombine.low %v12387_v12, %v12387_v12 }
 0x27f   : > { %9871 = vmatpush3.bf16.msra.mxu1 %v10664_v42  ;;  %9840 = vmatprep.subr.bf16.mxu0 %v10667_v7  ;;  %v5609_v42 = vrot.slane %v12332_v39, 1 }
 0x280   : > { %9872 = vmatprep.subr.bf16.mxu1 %v10668_v11 }
 0x281   : > { %9793 = vmatmul.mubr.bf16.gmra.mxu0 %v12314_v45 }
 0x282   : > { %9825 = vmatmul.mubr.bf16.gmra.mxu1 %v8342_v28  ;;  %9841 = vmatpush3.bf16.msra.mxu0 %v10667_v7  ;;  %v10696_v7 = vld [vmem:[#allocation5 + $0x100] sm:$0xff]   ;;  %v5395_v28 = vshll.u32 %v12348_v6, 16 }
 0x283   : > { %9873 = vmatpush3.bf16.msra.mxu1 %v10668_v11  ;;  %9842 = vmatprep.subr.bf16.mxu0 %v10669_v24  ;;  %v10697_v11 = vld [vmem:[#allocation5 + $0x140] sm:$0xff]  }
 0x284   : > { %9874 = vmatprep.subr.bf16.mxu1 %v10670_v46  ;;  %9844 = vmatprep.mubr.bf16.mxu0 %v4995_v48  ;;  %v5389_v48 = vrot.slane %v5387_v0, 1  ;;  %v5397_v40 = vrot.slane %v5395_v28, 1  ;;  %v12438_v28 = vld [vmem:[#allocation2 + $0x54] sm:$0xf] }
 0x285   : > { %9876 = vmatprep.mubr.bf16.mxu1 %v12324_v19  ;;  %v5611_v19 = vrot.slane %v12337_v22, 1 }
 0x286   : > { %9843 = vmatpush3.bf16.msra.mxu0 %v10669_v24  ;;  %v5385_v24 = vor.u32 %v5383_v44, %v5381_v50  ;;  %v12422_v50 = vld [vmem:[#allocation2 + $0x48] sm:$0xf]  ;;  %v12426_v44 = vld [vmem:[#allocation2 + $0x4c] sm:$0xf] }
 0x287   : > { %9875 = vmatpush3.bf16.msra.mxu1 %v10670_v46  ;;  %9892 = vmatprep.subr.bf16.mxu0 %v10673_v36  ;;  %v5610_v46 = vsel %vm895_vm1, %v5608_v59, %v5609_v42  ;;  %v10705_v59 = vld [vmem:[#allocation5 + $0x1e0] sm:$0xff]   ;;  %v12432_v0 = vcombine.low %v12422_v50, %v12426_v44 }
 0x288   : > { %9924 = vmatprep.subr.bf16.mxu1 %v10674_v2 }
 0x289   : > { %9845 = vmatmul.mubr.bf16.vlgmr.msra.gmra.mxu0 %v4997_v15  ;;  %v5613_v15 = vrot.slane %v12348_v6, 1 }
 0x28a   : > { %9877 = vmatmul.mubr.bf16.vlgmr.msra.gmra.mxu1 %v12332_v39  ;;  %9893 = vmatpush3.bf16.msra.mxu0 %v10673_v36  ;;  %v10699_v36 = vld [vmem:[#allocation5 + $0x1f8] sm:$0xff]   ;;  %v5399_v39 = vshrl.u32 %v12348_v6, 16 }
 0x28b   : > { %9925 = vmatpush3.bf16.msra.mxu1 %v10674_v2  ;;  %9894 = vmatprep.subr.bf16.mxu0 %v10675_v33  ;;  %v5393_v2 = vor.u32 %v5391_v37, %v5389_v48 }
 0x28c   : > { %9926 = vmatprep.subr.bf16.mxu1 %v10676_v58  ;;  %9848 = vmatprep.mubr.bf16.mxu0 %v4999_v5  ;;  %v5612_v5 = vsel %vm895_vm1, %v5609_v42, %v5611_v19 }
 0x28d   : > { %9880 = vmatprep.mubr.bf16.mxu1 %v12337_v22  ;;  %v10700_v22 = vld [vmem:[#allocation5 + $0x1b0] sm:$0xff]   ;;  %v5398_v32 = vsel %vm509_vm0, %v5393_v2, %v5397_v40 }
 0x28e   : > { %9895 = vmatpush3.bf16.msra.mxu0 %v10675_v33  ;;  %v5403_v33 = vshll.u32 %v12356_v53, 16 }
 0x28f   : > { %9927 = vmatpush3.bf16.msra.mxu1 %v10676_v58  ;;  %9896 = vmatprep.subr.bf16.mxu0 %v10679_v43  ;;  %v5390_v58 = vsel %vm509_vm0, %v5385_v24, %v5389_v48  ;;  %v5619_v24 = vrot.slane %v12383_v10, 1 }
 0x290   : > { %9928 = vmatprep.subr.bf16.mxu1 %v10680_v49  ;;  %v5405_v30 = vrot.slane %v5403_v33, 1 }
 0x291   : > { %9849 = vmatmul.mubr.bf16.gmra.mxu0 %v12344_v52 }
 0x292   : > { %9881 = vmatmul.mubr.bf16.gmra.mxu1 %v12348_v6  ;;  %9897 = vmatpush3.bf16.msra.mxu0 %v10679_v43  ;;  %v10701_v43 = vld [vmem:[#allocation5 + $0x1f0] sm:$0xff]   ;;  %v5407_v6 = vshrl.u32 %v12356_v53, 16 }
 0x293   : > { %9929 = vmatpush3.bf16.msra.mxu1 %v10680_v49  ;;  %9898 = vmatprep.subr.bf16.mxu0 %v10681_v27  ;;  %v5411_v49 = vshll.u32 %v12371_v4, 16 }
 0x294   : > { %9930 = vmatprep.subr.bf16.mxu1 %v10682_v16  ;;  %9852 = vmatprep.mubr.bf16.mxu0 %v12352_v31 }
 0x295   : > { %9884 = vmatprep.mubr.bf16.mxu1 %v12356_v53 }
 0x296   : > { %9899 = vmatpush3.bf16.msra.mxu0 %v10681_v27  ;;  %v5614_v27 = vsel %vm895_vm1, %v5611_v19, %v5613_v15  ;;  %v10707_v19 = vld [vmem:[#allocation5 + $0x1d8] sm:$0xff]  }
 0x297   : > { %9931 = vmatpush3.bf16.msra.mxu1 %v10682_v16  ;;  %9900 = vmatprep.subr.bf16.mxu0 %v10685_v60  ;;  %v5401_v16 = vor.u32 %v5399_v39, %v5397_v40  ;;  %v10708_v40 = vld [vmem:[#allocation5 + $0x190] sm:$0xff]  }
 0x298   : > { %9932 = vmatprep.subr.bf16.mxu1 %v10686_v25  ;;  %v10709_v39 = vld [vmem:[#allocation5 + $0x1d0] sm:$0xff]  }
 0x299   : > { %9853 = vmatmul.mubr.bf16.gmra.mxu0 %v12367_v21  ;;  %v5406_v34 = vsel %vm509_vm0, %v5401_v16, %v5405_v30 }
 0x29a   : > { %9885 = vmatmul.mubr.bf16.gmra.mxu1 %v12371_v4  ;;  %9901 = vmatpush3.bf16.msra.mxu0 %v10685_v60  ;;  %v12416_v60 = vcombine.low %v12387_v12, %v12408_v35  ;;  %v5423_v4 = vshrl.u32 %v12383_v10, 16 }
 0x29b   : > { %9933 = vmatpush3.bf16.msra.mxu1 %v10686_v25  ;;  %9902 = vmatprep.subr.bf16.mxu0 %v10687_v63  ;;  %v5615_v25 = vrot.slane %v12356_v53, 1 }
 0x29c   : > { %9934 = vmatprep.subr.bf16.mxu1 %v10688_v9  ;;  %9856 = vmatprep.mubr.bf16.mxu0 %v12379_v3  ;;  %v5427_v42 = vshll.u32 %v12416_v60, 16  ;;  %v5431_v33 = vshrl.u32 %v12416_v60, 16 }
 0x29d   : > { %9888 = vmatprep.mubr.bf16.mxu1 %v12383_v10  ;;  %v5616_v53 = vsel %vm895_vm1, %v5613_v15, %v5615_v25  ;;  %v5618_v37 = vsel %vm895_vm1, %v5615_v25, %v5617_v47  ;;  %v5621_v15 = vrot.slane %v12416_v60, 1  ;;  %v5620_v10 = vsel %vm895_vm1, %v5617_v47, %v5619_v24  ;;  %v10711_v60 = vld [vmem:[#allocation5 + $0x1c8] sm:$0xff]  }
 0x29e   : > { %9903 = vmatpush3.bf16.msra.mxu0 %v10687_v63  ;;  %v10703_v63 = vld [vmem:[#allocation5 + $0x1e8] sm:$0xff]  }
 0x29f   : > { %9935 = vmatpush3.bf16.msra.mxu1 %v10688_v9  ;;  %9904 = vmatprep.subr.bf16.mxu0 %v10694_v20  ;;  %v5413_v9 = vrot.slane %v5411_v49, 1  ;;  %v7089_v49 = vshll.u32 %v12432_v0, 16 }
 0x2a0   : > { %9936 = vmatprep.subr.bf16.mxu1 %v10695_v23 }
 0x2a1   : > { %9857 = vmatmul.mubr.bf16.gmra.mxu0 %v12363_v8  ;;  %v7091_v16 = vrot.slane %v7089_v49, 1  ;;  %v10722_v49 = vld [vmem:[#allocation5 + $0x218] sm:$0xff]  }
 0x2a2   : > { %9889 = vmatmul.mubr.bf16.gmra.mxu1 %v8366_v1  ;;  %9905 = vmatpush3.bf16.msra.mxu0 %v10694_v20  ;;  %v10704_v20 = vld [vmem:[#allocation5 + $0x1a0] sm:$0xff]   ;;  %v5421_v1 = vrot.slane %v5419_v14, 1 }
 0x2a3   : > { %9937 = vmatpush3.bf16.msra.mxu1 %v10695_v23  ;;  %9906 = vmatprep.subr.bf16.mxu0 %v10696_v7  ;;  %v5409_v23 = vor.u32 %v5407_v6, %v5405_v30 }
 0x2a4   : > { %9938 = vmatprep.subr.bf16.mxu1 %v10697_v11  ;;  %9908 = vmatprep.mubr.bf16.mxu0 %v5382_v38  ;;  %v5417_v38 = vor.u32 %v5415_v55, %v5413_v9  ;;  %v10712_v55 = vld [vmem:[#allocation5 + $0x180] sm:$0xff]  }
 0x2a5   : > { %9940 = vmatprep.mubr.bf16.mxu1 %v5610_v46  ;;  %v10706_v46 = vld [vmem:[#allocation5 + $0x198] sm:$0xff]  }
 0x2a6   : > { %9907 = vmatpush3.bf16.msra.mxu0 %v10696_v7  ;;  %v5414_v7 = vsel %vm509_vm0, %v5409_v23, %v5413_v9  ;;  %v5422_v2 = vsel %vm509_vm0, %v5417_v38, %v5421_v1  ;;  %v10713_v23 = vld [vmem:[#allocation5 + $0x1c0] sm:$0xff]  }
 0x2a7   : > { %9939 = vmatpush3.bf16.msra.mxu1 %v10697_v11  ;;  %9956 = vmatprep.subr.bf16.mxu0 %v10698_v56  ;;  %v12435_v11 = vld [vmem:[#allocation2 + $0x50] sm:$0xf] }
 0x2a8   : > { %9988 = vmatprep.subr.bf16.mxu1 %v10699_v36  ;;  %v12443_v48 = vcombine.low %v12435_v11, %v12438_v28 }
 0x2a9   : > { %9909 = vmatmul.mubr.bf16.vlgmr.msra.gmra.mxu0 %v5390_v58  ;;  %v12449_v58 = vld [vmem:[#allocation2 + $0x58] sm:$0xf] }
 0x2aa   : > { %9941 = vmatmul.mubr.bf16.vlgmr.msra.gmra.mxu1 %v5612_v5  ;;  %9957 = vmatpush3.bf16.msra.mxu0 %v10698_v56  ;;  %v5425_v56 = vor.u32 %v5423_v4, %v5421_v1  ;;  %v12451_v5 = vld [vmem:[#allocation2 + $0x5c] sm:$0xf]  ;;  %v7094_v6 = vshll.u32 %v12443_v48, 16  ;;  %v7098_v9 = vshrl.u32 %v12443_v48, 16  ;;  %v12472_v1 = vcombine.low %v12373_v54, %v12387_v12  ;;  %v10714_v4 = vld [vmem:[#allocation5 + $0x238] sm:$0xff]  }
 0x2ab   : > { %9989 = vmatpush3.bf16.msra.mxu1 %v10699_v36  ;;  %9958 = vmatprep.subr.bf16.mxu0 %v10700_v22  ;;  %v5429_v36 = vrot.slane %v5427_v42, 1  ;;  %v12460_v30 = vcombine.low %v12449_v58, %v12451_v5  ;;  %v10917_v54 = vmov 0.0   ;;  %v12481_v12 = vld [vmem:[#allocation2 + $0x50] ss:$0 sps:$4 sm:$0xff]  }
 0x2ac   : > { %9990 = vmatprep.subr.bf16.mxu1 %v10701_v43  ;;  %9912 = vmatprep.mubr.bf16.mxu0 %v5398_v32  ;;  %v5622_v32 = vsel %vm895_vm1, %v5619_v24, %v5621_v15  ;;  %v7096_v25 = vrot.slane %v7094_v6, 1  ;;  %v5958_v38 = vshll.u32 %v12472_v1, 16 }
 0x2ad   : > { %9944 = vmatprep.mubr.bf16.mxu1 %v5614_v27  ;;  %v10710_v27 = vld [vmem:[#allocation5 + $0x188] sm:$0xff]   ;;  %v7102_v47 = vshll.u32 %v12460_v30, 16 }
 0x2ae   : > { %9959 = vmatpush3.bf16.msra.mxu0 %v10700_v22  ;;  %v5430_v22 = vsel %vm509_vm0, %v5425_v56, %v5429_v36  ;;  %v6415_v56 = vld [vmem:[#allocation2 + $0x64] sm:$0xf] }
 0x2af   : > { %9991 = vmatpush3.bf16.msra.mxu1 %v10701_v43  ;;  %9960 = vmatprep.subr.bf16.mxu0 %v10702_v18  ;;  %v7087_v43 = vshrl.u32 %v12432_v0, 16 }
 0x2b0   : > { %9992 = vmatprep.subr.bf16.mxu1 %v10703_v63 }
 0x2b1   : > { %9913 = vmatmul.mubr.bf16.gmra.mxu0 %v5406_v34  ;;  %v7104_v34 = vrot.slane %v7102_v47, 1 }
 0x2b2   : > { %9945 = vmatmul.mubr.bf16.gmra.mxu1 %v5616_v53  ;;  %9961 = vmatpush3.bf16.msra.mxu0 %v10702_v18  ;;  %v5433_v18 = vor.u32 %v5431_v33, %v5429_v36  ;;  %v4543_v53 = vld [vmem:[#allocation2 + $0x4c] sm:$0xf]  ;;  %v5960_v36 = vrot.slane %v5958_v38, 1 }
 0x2b3   : > { %9993 = vmatpush3.bf16.msra.mxu1 %v10703_v63  ;;  %9962 = vmatprep.subr.bf16.mxu0 %v10704_v20  ;;  %v7092_v63 = vor.u32 %v7091_v16, %v7087_v43  ;;  %v12477_v42 = vcombine.low %v12408_v35, %v4543_v53  ;;  %v10718_v35 = vld [vmem:[#allocation5 + $0x228] sm:$0xff]   ;;  %v10723_v16 = vld [vmem:[#allocation5 + $0x58] sm:$0xff]  }
 0x2b4   : > { %9994 = vmatprep.subr.bf16.mxu1 %v10705_v59  ;;  %9916 = vmatprep.mubr.bf16.mxu0 %v5414_v7  ;;  %v10715_v7 = vld [vmem:[#allocation5 + $0x78] sm:$0xff]   ;;  %v5961_v43 = vsel %vm509_vm0, %v12314_v45, %v5960_v36  ;;  %v10724_v45 = vld [vmem:[#allocation5 + $0x210] sm:$0xff]  }
 0x2b5   : > { %9948 = vmatprep.mubr.bf16.mxu1 %v5618_v37  ;;  %v12465_v14 = vsel %vm509_vm0, %v7092_v63, %v7096_v25  ;;  %v10716_v37 = vld [vmem:[#allocation5 + $0x230] sm:$0xff]   ;;  %v5966_v24 = vshll.u32 %v12477_v42, 16  ;;  %v7269_v63 = vrot.slane %v12432_v0, 1 }
 0x2b6   : > { %9963 = vmatpush3.bf16.msra.mxu0 %v10704_v20  ;;  %v7100_v20 = vor.u32 %v7098_v9, %v7096_v25  ;;  %v6407_v25 = vld [vmem:[#allocation2 + $0x44] sm:$0xf] }
 0x2b7   : > { %9995 = vmatpush3.bf16.msra.mxu1 %v10705_v59  ;;  %9964 = vmatprep.subr.bf16.mxu0 %v10706_v46  ;;  %v5968_v33 = vrot.slane %v5966_v24, 1  ;;  %v10730_v24 = vld [vmem:[#allocation5 + $0x40] sm:$0xff]  }
 0x2b8   : > { %9996 = vmatprep.subr.bf16.mxu1 %v10707_v19  ;;  %v12468_v59 = vsel %vm509_vm0, %v7100_v20, %v7104_v34  ;;  %v10725_v20 = vld [vmem:[#allocation5 + $0x50] sm:$0xff]  }
 0x2b9   : > { %9917 = vmatmul.mubr.bf16.gmra.mxu0 %v5422_v2 }
 0x2ba   : > { %9949 = vmatmul.mubr.bf16.gmra.mxu1 %v5620_v10  ;;  %9965 = vmatpush3.bf16.msra.mxu0 %v10706_v46  ;;  %v12487_v46 = vld [vmem:[#allocation2 + $0x60] sm:$0xf] }
 0x2bb   : > { %9997 = vmatpush3.bf16.msra.mxu1 %v10707_v19  ;;  %9966 = vmatprep.subr.bf16.mxu0 %v10708_v40  ;;  %v5974_v19 = vshll.u32 %v12481_v12, 16  ;;  %v12495_v2 = vcombine.low %v12487_v46, %v6415_v56  ;;  %v12542_v56 = vcombine.low %v12426_v44, %v12435_v11 }
 0x2bc   : > { %9998 = vmatprep.subr.bf16.mxu1 %v10709_v39  ;;  %9920 = vmatprep.mubr.bf16.mxu0 %v5430_v22  ;;  %v5970_v22 = vshrl.u32 %v12477_v42, 16 }
 0x2bd   : > { %9952 = vmatprep.mubr.bf16.mxu1 %v5622_v32  ;;  %v6493_v44 = vshll.u32 %v12542_v56, 16  ;;  %v7274_v11 = vrot.slane %v12495_v2, 1 }
 0x2be   : > { %9967 = vmatpush3.bf16.msra.mxu0 %v10708_v40  ;;  %v10720_v40 = vld [vmem:[#allocation5 + $0x220] sm:$0xff]  }
 0x2bf   : > { %9999 = vmatpush3.bf16.msra.mxu1 %v10709_v39  ;;  %9968 = vmatprep.subr.bf16.mxu0 %v10710_v27  ;;  %v7110_v39 = vshll.u32 %v12495_v2, 16 }
 0x2c0   : > { %10000 = vmatprep.subr.bf16.mxu1 %v10711_v60 }
 0x2c1   : > { %9921 = vmatmul.mubr.bf16.gmra.mxu0 %v5433_v18  ;;  %v12505_v32 = vrot.slane %v7110_v39, 1 }
 0x2c2   : > { %9953 = vmatmul.mubr.bf16.gmra.mxu1 %v5621_v15  ;;  %9969 = vmatpush3.bf16.msra.mxu0 %v10710_v27  ;;  %v5978_v15 = vshrl.u32 %v12481_v12, 16  ;;  %v12509_v27 = vld [vmem:[#allocation2 + $0x3c] sm:$0xff]  }
 0x2c3   : > { %10001 = vmatpush3.bf16.msra.mxu1 %v10711_v60  ;;  %9970 = vmatprep.subr.bf16.mxu0 %v10712_v55  ;;  %v5972_v60 = vor.u32 %v5970_v22, %v5968_v33  ;;  %v6478_v38 = vshrl.u32 %v12509_v27, 16  ;;  %v10738_v22 = vld [vmem:[#allocation5 + $0x28] sm:$0xff]  }
 0x2c4   : > { %10002 = vmatprep.subr.bf16.mxu1 %v10713_v23  ;;  %9972 = vmatprep.mubr.bf16.mxu0 %v12244_v17  ;;  %v10717_v17 = vld [vmem:[#allocation5 + $0x70] sm:$0xff]  }
 0x2c5   : > { %10004 = vmatprep.mubr.bf16.mxu1 %v12290_v26  ;;  %v5962_v26 = vshrl.u32 %v12472_v1, 16 }
 0x2c6   : > { %9971 = vmatpush3.bf16.msra.mxu0 %v10712_v55  ;;  %v6480_v55 = vshll.u32 %v12509_v27, 16 }
 0x2c7   : > { %10003 = vmatpush3.bf16.msra.mxu1 %v10713_v23  ;;  %10020 = vmatprep.subr.bf16.mxu0 %v10714_v4  ;;  %v5964_v6 = vor.u32 %v5962_v26, %v5960_v36  ;;  %v10727_v23 = vld [vmem:[#allocation5 + $0x208] sm:$0xff]   ;;  %v7272_v26 = vrot.slane %v12460_v30, 1 }
 0x2c8   : > { %10052 = vmatprep.subr.bf16.mxu1 %v10917_v54 }
 0x2c9   : > { %9973 = vmatmul.mubr.bf16.vlgmr.msra.gmra.mxu0 %v12255_v57  ;;  %v7106_v57 = vshrl.u32 %v12460_v30, 16  ;;  %v5969_v18 = vsel %vm509_vm0, %v5964_v6, %v5968_v33  ;;  %v12563_v33 = vcombine.low %v12438_v28, %v12449_v58  ;;  %v6497_v28 = vshrl.u32 %v12542_v56, 16 }
 0x2ca   : > { %10005 = vmatmul.mubr.bf16.vlgmr.msra.gmra.mxu1 %v12296_v29  ;;  %10021 = vmatpush3.bf16.msra.mxu0 %v10714_v4  ;;  %v10719_v29 = vld [vmem:[#allocation5 + $0x68] sm:$0xff]   ;;  %v6154_v6 = vrot.slane %v12477_v42, 1 }
 0x2cb   : > { %10053 = vmatpush3.bf16.msra.mxu1 %v10715_v7  ;;  %10022 = vmatprep.subr.bf16.mxu0 %v10716_v37  ;;  %v7108_v10 = vor.u32 %v7106_v57, %v7104_v34  ;;  %v12524_v34 = vcombine.low %v6407_v25, %v12422_v50  ;;  %v10728_v7 = vld [vmem:[#allocation5 + $0x48] sm:$0xff]   ;;  %v6501_v58 = vshll.u32 %v12563_v33, 16 }
 0x2cc   : > { %10054 = vmatprep.subr.bf16.mxu1 %v10917_v54  ;;  %9976 = vmatprep.mubr.bf16.mxu0 %v12265_v51  ;;  %v5976_v51 = vrot.slane %v5974_v19, 1 }
 0x2cd   : > { %10008 = vmatprep.mubr.bf16.mxu1 %v12304_v61  ;;  %v10721_v61 = vld [vmem:[#allocation5 + $0x60] sm:$0xff]   ;;  %v6485_v50 = vshll.u32 %v12524_v34, 16 }
 0x2ce   : > { %10023 = vmatpush3.bf16.msra.mxu0 %v10716_v37  ;;  %v5977_v4 = vsel %vm509_vm0, %v5972_v60, %v5976_v51  ;;  %v10729_v37 = vld [vmem:[#allocation5 + $0x200] sm:$0xff]   ;;  %v12582_v60 = vcombine.low %v12451_v5, %v12487_v46  ;;  %v6505_v46 = vshrl.u32 %v12563_v33, 16 }
 0x2cf   : > { %10055 = vmatpush3.bf16.msra.mxu1 %v10717_v17  ;;  %10024 = vmatprep.subr.bf16.mxu0 %v10718_v35  ;;  %v6482_v17 = vrot.slane %v6480_v55, 1  ;;  %v6487_v19 = vrot.slane %v6485_v50, 1  ;;  %v10751_v50 = vld [vmem:[#allocation5 + $0x80] sm:$0xff]  }
 0x2d0   : > { %10056 = vmatprep.subr.bf16.mxu1 %v10917_v54 }
 0x2d1   : > { %9977 = vmatmul.mubr.bf16.gmra.mxu0 %v12280_v62  ;;  %v5980_v62 = vor.u32 %v5978_v15, %v5976_v51  ;;  %v6483_v57 = vor.u32 %v6482_v17, %v6478_v38  ;;  %v6489_v15 = vshrl.u32 %v12524_v34, 16  ;;  %v10735_v51 = vld [vmem:[#allocation5 + $0x30] sm:$0xff]   ;;  %v6513_v38 = vshrl.u32 %v12582_v60, 16 }
 0x2d2   : > { %10009 = vmatmul.mubr.bf16.gmra.mxu1 %v12308_v41  ;;  %10025 = vmatpush3.bf16.msra.mxu0 %v10718_v35  ;;  %v12513_v41 = vsel %vm509_vm0, %v7108_v10, %v12505_v32  ;;  %v10736_v10 = vld [vmem:[#allocation5 + $0xb0] sm:$0xff]  }
 0x2d3   : > { %10057 = vmatpush3.bf16.msra.mxu1 %v10719_v29  ;;  %10026 = vmatprep.subr.bf16.mxu0 %v10720_v40  ;;  %v5985_v47 = vsel %vm11357_vm4, %v5980_v62, 0  ;;  %v10733_v29 = vld [vmem:[#allocation5 + $0x38] sm:$0xff]   ;;  %v6488_v36 = vsel %vm509_vm0, %v6483_v57, %v6487_v19  ;;  %v6491_v39 = vor.u32 %v6489_v15, %v6487_v19  ;;  %v6778_v19 = vrot.slane %v12524_v34, 1  ;;  %v10754_v57 = vld [vmem:[#allocation5 + $0xf0] sm:$0xff]  }
 0x2d4   : > { %10058 = vmatprep.subr.bf16.mxu1 %v10917_v54  ;;  %9980 = vmatprep.mubr.bf16.mxu0 %v12287_v13  ;;  %v7270_v13 = vrot.slane %v12443_v48, 1  ;;  %v6780_v15 = vrot.slane %v12542_v56, 1 }
 0x2d5   : > { %10012 = vmatprep.mubr.bf16.mxu1 %v5961_v43 }
 0x2d6   : > { %10027 = vmatpush3.bf16.msra.mxu0 %v10720_v40  ;;  %v12527_v53 = vsel %vm895_vm1, %v7269_v63, %v7270_v13  ;;  %v12538_v35 = vsel %vm895_vm1, %v7270_v13, %v7272_v26  ;;  %v10734_v40 = vld [vmem:[#allocation5 + $0xb8] sm:$0xff]   ;;  %v6509_v63 = vshll.u32 %v12582_v60, 16 }
 0x2d7   : > { %10059 = vmatpush3.bf16.msra.mxu1 %v10721_v61  ;;  %10028 = vmatprep.subr.bf16.mxu0 %v10722_v49  ;;  %v6495_v61 = vrot.slane %v6493_v44, 1  ;;  %v10758_v44 = vld [vmem:[#allocation5 + $0xe0] sm:$0xff]  }
 0x2d8   : > { %10060 = vmatprep.subr.bf16.mxu1 %v10917_v54  ;;  %v6511_v55 = vrot.slane %v6509_v63, 1  ;;  %v10770_v63 = vld [vmem:[#allocation5 + $0x178] sm:$0xff]  }
 0x2d9   : > { %9981 = vmatmul.mubr.bf16.gmra.mxu0 %v12472_v1  ;;  %v6496_v43 = vsel %vm509_vm0, %v6491_v39, %v6495_v61  ;;  %v6499_v62 = vor.u32 %v6497_v28, %v6495_v61  ;;  %v6782_v39 = vrot.slane %v12563_v33, 1  ;;  %v10759_v61 = vld [vmem:[#allocation5 + $0x120] sm:$0xff]   ;;  %v10765_v28 = vld [vmem:[#allocation5 + $0x110] sm:$0xff]  }
 0x2da   : > { %10013 = vmatmul.mubr.bf16.gmra.mxu1 %v5969_v18  ;;  %10029 = vmatpush3.bf16.msra.mxu0 %v10722_v49  ;;  %v10739_v49 = vld [vmem:[#allocation5 + $0xa8] sm:$0xff]   ;;  %v10745_v18 = vld [vmem:[#allocation5 + $0x98] sm:$0xff]   ;;  %v12613_v17 = vor.u32 %v6513_v38, %v6511_v55 }
 0x2db   : > { %10061 = vmatpush3.bf16.msra.mxu1 %v10723_v16  ;;  %10030 = vmatprep.subr.bf16.mxu0 %v10724_v45  ;;  %v6503_v16 = vrot.slane %v6501_v58, 1  ;;  %v10766_v58 = vld [vmem:[#allocation5 + $0xc0] sm:$0xff]  }
 0x2dc   : > { %10062 = vmatprep.subr.bf16.mxu1 %v10917_v54  ;;  %9984 = vmatprep.mubr.bf16.mxu0 %v12477_v42  ;;  %v10743_v42 = vld [vmem:[#allocation5 + $0x18] sm:$0xff]  }
 0x2dd   : > { %10016 = vmatprep.mubr.bf16.mxu1 %v5977_v4  ;;  %v6504_v25 = vsel %vm509_vm0, %v6499_v62, %v6503_v16 }
 0x2de   : > { %10031 = vmatpush3.bf16.msra.mxu0 %v10724_v45  ;;  %v10742_v45 = vld [vmem:[#allocation5 + $0xa0] sm:$0xff]  }
 0x2df   : > { %10063 = vmatpush3.bf16.msra.mxu1 %v10725_v20  ;;  %10032 = vmatprep.subr.bf16.mxu0 %v10727_v23  ;;  %v10748_v20 = vld [vmem:[#allocation5 + $0x90] sm:$0xff]  }
 0x2e0   : > { %10064 = vmatprep.subr.bf16.mxu1 %v10917_v54 }
 0x2e1   : > { %9985 = vmatmul.mubr.bf16.gmra.mxu0 %v12481_v12 }
 0x2e2   : > { %10017 = vmatmul.mubr.bf16.gmra.mxu1 %v5985_v47  ;;  %10033 = vmatpush3.bf16.msra.mxu0 %v10727_v23  ;;  %v6507_v47 = vor.u32 %v6505_v46, %v6503_v16  ;;  %v10747_v23 = vld [vmem:[#allocation5 + $0x8] sm:$0xff]  }
 0x2e3   : > { %10065 = vmatpush3.bf16.msra.mxu1 %v10728_v7  ;;  %10034 = vmatprep.subr.bf16.mxu0 %v10729_v37  ;;  %v10750_v7 = vld [vmem:[#allocation5 + $0x88] sm:$0xff]  }
 0x2e4   : > { %10066 = vmatprep.subr.bf16.mxu1 %v10917_v54  ;;  %10036 = vmatprep.mubr.bf16.mxu0 %v12344_v52  ;;  %v12558_v52 = vsel %vm895_vm1, %v7272_v26, %v7274_v11  ;;  %v12600_v4 = vsel %vm509_vm0, %v6507_v47, %v6511_v55  ;;  %v10752_v26 = vld [vmem:[#allocation5 + $0xf8] sm:$0xff]  }
 0x2e5   : > { %10068 = vmatprep.mubr.msk.bf16.mxu1 %vm10918_vm8, %v10917_v54 }
 0x2e6   : > { %10035 = vmatpush3.bf16.msra.mxu0 %v10729_v37  ;;  %v10749_v37 = vld [vmem:[#allocation5] sm:$0xff]  }
 0x2e7   : > { %10067 = vmatpush3.bf16.msra.mxu1 %v10730_v24  ;;  %10088 = vmatprep.subr.bf16.mxu0 %v10917_v54  ;;  %v6777_v24 = vrot.slane %v12509_v27, 1 }
 0x2e8   : > { %10124 = vmatprep.subr.bf16.mxu1 %v10917_v54 }
 0x2e9   : > { %10037 = vmatmul.mubr.bf16.vlgmr.msra.gmra.mxu0 %v12352_v31  ;;  %v6152_v31 = vrot.slane %v12472_v1, 1  ;;  %v10740_v1 = vld [vmem:[#allocation5 + $0x20] sm:$0xff]  }
 0x2ea   : > { %10069 = vmatmul.mubr.bf16.vlgmr.msra.gmra.mxu1 %v6488_v36  ;;  %10089 = vmatpush3.bf16.msra.mxu0 %v10733_v29  ;;  %v6779_v29 = vsel %vm895_vm1, %v6777_v24, %v6778_v19  ;;  %v10753_v36 = vld [vmem:[#allocation5 + $0x138] sm:$0xff]  }
 0x2eb   : > { %10125 = vmatpush3.bf16.msra.mxu1 %v10734_v40  ;;  %10090 = vmatprep.subr.bf16.mxu0 %v10917_v54  ;;  %v10756_v40 = vld [vmem:[#allocation5 + $0xe8] sm:$0xff]  }
 0x2ec   : > { %10126 = vmatprep.subr.bf16.mxu1 %v10917_v54  ;;  %10040 = vmatprep.mubr.bf16.mxu0 %v12367_v21  ;;  %v6153_v21 = vsel %vm895_vm1, %v12363_v8, %v6152_v31  ;;  %v6156_v8 = vrot.slane %v12481_v12, 1  ;;  %v10744_v12 = vld [vmem:[#allocation5 + $0x10] sm:$0xff]  }
 0x2ed   : > { %10072 = vmatprep.mubr.msk.bf16.mxu1 %vm10918_vm8, %v10917_v54 }
 0x2ee   : > { %10091 = vmatpush3.bf16.msra.mxu0 %v10735_v51  ;;  %v6157_v13 = vsel %vm895_vm1, %v6154_v6, %v6156_v8  ;;  %v10757_v51 = vld [vmem:[#allocation5 + $0x128] sm:$0xff]  }
 0x2ef   : > { %10127 = vmatpush3.bf16.msra.mxu1 %v10736_v10  ;;  %10092 = vmatprep.subr.bf16.mxu0 %v10917_v54  ;;  %v10760_v10 = vld [vmem:[#allocation5 + $0xd8] sm:$0xff]  }
 0x2f0   : > { %10128 = vmatprep.subr.bf16.mxu1 %v10917_v54 }
 0x2f1   : > { %10041 = vmatmul.mubr.bf16.gmra.mxu0 %v12379_v3  ;;  %v6155_v3 = vsel %vm895_vm1, %v6152_v31, %v6154_v6  ;;  %v10761_v31 = vld [vmem:[#allocation5 + $0xd0] sm:$0xff]   ;;  %v10767_v6 = vld [vmem:[#allocation5 + $0x108] sm:$0xff]  }
 0x2f2   : > { %10073 = vmatmul.mubr.bf16.gmra.mxu1 %v6496_v43  ;;  %10093 = vmatpush3.bf16.msra.mxu0 %v10738_v22  ;;  %v10762_v22 = vld [vmem:[#allocation5 + $0x118] sm:$0xff]   ;;  %v10764_v43 = vld [vmem:[#allocation5 + $0xc8] sm:$0xff]  }
 0x2f3   : > { %10129 = vmatpush3.bf16.msra.mxu1 %v10739_v49  ;;  %10094 = vmatprep.subr.bf16.mxu0 %v10917_v54  ;;  %v12656_v49 = vrot.slane %v12582_v60, 1 }
 0x2f4   : > { %10044 = vmatprep.mubr.bf16.mxu0 %v6153_v21  ;;  %10076 = vmatprep.mubr.msk.bf16.mxu1 %vm10918_vm8, %v10917_v54  ;;  %v8435_v21 = vcombine.low %v12451_v5, %v12451_v5 }
 0x2f5   : > { %10130 = vmatprep.subr.bf16.mxu1 %v10917_v54 }
 0x2f6   : > { %10095 = vmatpush3.bf16.msra.mxu0 %v10740_v1  ;;  %v12664_v1 = vsel %vm895_vm1, %v6782_v39, %v12656_v49 }
 0x2f7   : > { %10096 = vmatprep.subr.bf16.mxu0 %v10917_v54  ;;  %10131 = vmatpush3.bf16.msra.mxu1 %v10742_v45  ;;  %v10769_v45 = vld [vmem:[#allocation5 + $0x100] sm:$0xff]  }
 0x2f8   : > { %10132 = vmatprep.subr.bf16.mxu1 %v10917_v54 }
 0x2f9   : > { %10045 = vmatmul.mubr.bf16.gmra.mxu0 %v6155_v3 }
 0x2fa   : > { %10077 = vmatmul.mubr.bf16.gmra.mxu1 %v6504_v25  ;;  %10097 = vmatpush3.bf16.msra.mxu0 %v10743_v42 }
 0x2fb   : > { %10098 = vmatprep.subr.bf16.mxu0 %v10917_v54  ;;  %10133 = vmatpush3.bf16.msra.mxu1 %v10745_v18 }
 0x2fc   : > { %10048 = vmatprep.mubr.bf16.mxu0 %v6157_v13  ;;  %10080 = vmatprep.mubr.msk.bf16.mxu1 %vm10918_vm8, %v10917_v54 }
 0x2fd   : > { %10134 = vmatprep.subr.bf16.mxu1 %v10917_v54 }
 0x2fe   : > { %10099 = vmatpush3.bf16.msra.mxu0 %v10744_v12 }
 0x2ff   : > { %10100 = vmatprep.subr.bf16.mxu0 %v10917_v54  ;;  %10135 = vmatpush3.bf16.msra.mxu1 %v10748_v20 }
 0x300   : > { %10136 = vmatprep.subr.bf16.mxu1 %v10917_v54 }
 0x301   : > { %10049 = vmatmul.mubr.msk.bf16.gmra.mxu0 %vm2127_vm5, %v6156_v8 }
 0x302   : > { %10081 = vmatmul.mubr.bf16.gmra.mxu1 %v12600_v4  ;;  %10101 = vmatpush3.bf16.msra.mxu0 %v10747_v23 }
 0x303   : > { %10102 = vmatprep.subr.bf16.mxu0 %v10917_v54  ;;  %10084 = vmatprep.mubr.msk.bf16.mxu1 %vm10918_vm8, %v10917_v54 }
 0x304   : > { %10104 = vmatprep.mubr.msk.bf16.mxu0 %vm10918_vm8, %v10917_v54  ;;  %10137 = vmatpush3.bf16.msra.mxu1 %v10750_v7  ;;  %v10773_v7 = vld [vmem:[#allocation5 + $0x170] sm:$0xff]  }
 0x305   : > { %10138 = vmatprep.subr.bf16.mxu1 %v10917_v54 }
 0x306   : > { %10103 = vmatpush3.bf16.msra.mxu0 %v10749_v37 }
 0x307   : > { %10160 = vmatprep.subr.bf16.mxu0 %v10917_v54 }
 0x308   : > { %10139 = vmatpush3.bf16.msra.mxu1 %v10751_v50 }
 0x309   : > { %10105 = vmatmul.mubr.bf16.vlgmr.msra.gmra.mxu0 %v12509_v27  ;;  %10196 = vmatprep.subr.bf16.mxu1 %v10917_v54  ;;  %v10755_v27 = vld [vmem:[#allocation5 + $0x130] sm:$0xff]  }
 0x30a   : > { %10085 = vmatmul.mubr.bf16.gmra.mxu1 %v12613_v17  ;;  %10108 = vmatprep.mubr.msk.bf16.mxu0 %vm10918_vm8, %v10917_v54 }
 0x30b   : > { %10140 = vmatprep.mubr.msk.bf16.mxu1 %vm10918_vm8, %v10917_v54  ;;  %10161 = vmatpush3.bf16.msra.mxu0 %v10752_v26 }
 0x30c   : > { %10162 = vmatprep.subr.bf16.mxu0 %v10917_v54 }
 0x30f   : > { %10163 = vmatpush3.bf16.msra.mxu0 %v10754_v57 }
 0x310   : > { %10164 = vmatprep.subr.bf16.mxu0 %v10917_v54 }
 0x311   : > { %10109 = vmatmul.mubr.bf16.gmra.mxu0 %v12524_v34  ;;  %v6781_v34 = vsel %vm895_vm1, %v6778_v19, %v6780_v15  ;;  %v10772_v19 = vld [vmem:[#allocation5 + $0x1b8] sm:$0xff]  }
 0x312   : > { %10141 = vmatmul.mubr.bf16.vlgmr.msra.gmra.mxu1 %v6779_v29  ;;  %10112 = vmatprep.mubr.msk.bf16.mxu0 %vm10918_vm8, %v10917_v54  ;;  %v10776_v29 = vld [vmem:[#allocation5 + $0x168] sm:$0xff]  }
 0x313   : > { %10197 = vmatpush3.bf16.msra.mxu1 %v10753_v36  ;;  %10144 = vmatprep.mubr.msk.bf16.mxu1 %vm10918_vm8, %v10917_v54 }
 0x314   : > { %10198 = vmatprep.subr.bf16.mxu1 %v10917_v54  ;;  %10165 = vmatpush3.bf16.msra.mxu0 %v10756_v40 }
 0x315   : > { %10166 = vmatprep.subr.bf16.mxu0 %v10917_v54 }
 0x317   : > { %10199 = vmatpush3.bf16.msra.mxu1 %v10755_v27 }
 0x318   : > { %10200 = vmatprep.subr.bf16.mxu1 %v10917_v54  ;;  %10167 = vmatpush3.bf16.msra.mxu0 %v10758_v44  ;;  %v10774_v44 = vld [vmem:[#allocation5 + $0x1b0] sm:$0xff]  }
 0x319   : > { %10113 = vmatmul.mubr.bf16.gmra.mxu0 %v12542_v56  ;;  %10168 = vmatprep.subr.bf16.mxu0 %v10917_v54  ;;  %v6783_v56 = vsel %vm895_vm1, %v6780_v15, %v6782_v39  ;;  %v10777_v39 = vld [vmem:[#allocation5 + $0x1a8] sm:$0xff]  }
 0x31a   : > { %10145 = vmatmul.mubr.bf16.gmra.mxu1 %v6781_v34  ;;  %10116 = vmatprep.mubr.msk.bf16.mxu0 %vm10918_vm8, %v10917_v54 }
 0x31b   : > { %10201 = vmatpush3.bf16.msra.mxu1 %v10757_v51  ;;  %10148 = vmatprep.mubr.msk.bf16.mxu1 %vm10918_vm8, %v10917_v54  ;;  %v10778_v51 = vld [vmem:[#allocation5 + $0x160] sm:$0xff]  }
 0x31c   : > { %10202 = vmatprep.subr.bf16.mxu1 %v10917_v54  ;;  %10169 = vmatpush3.bf16.msra.mxu0 %v10760_v10 }
 0x31d   : > { %10170 = vmatprep.subr.bf16.mxu0 %v10917_v54 }
 0x31f   : > { %10203 = vmatpush3.bf16.msra.mxu1 %v10759_v61 }
 0x320   : > { %10204 = vmatprep.subr.bf16.mxu1 %v10917_v54  ;;  %10171 = vmatpush3.bf16.msra.mxu0 %v10761_v31  ;;  %v10781_v31 = vld [vmem:[#allocation5 + $0x158] sm:$0xff]  }
 0x321   : > { %10117 = vmatmul.mubr.bf16.gmra.mxu0 %v12563_v33  ;;  %10172 = vmatprep.subr.bf16.mxu0 %v10917_v54 }
 0x322   : > { %10149 = vmatmul.mubr.bf16.gmra.mxu1 %v6783_v56  ;;  %10120 = vmatprep.mubr.msk.bf16.mxu0 %vm10918_vm8, %v10917_v54  ;;  %v12706_v56 = vld [vmem:[#allocation2 + $0x68] sm:$0xf] }
 0x323   : > { %10205 = vmatpush3.bf16.msra.mxu1 %v10762_v22  ;;  %10152 = vmatprep.mubr.msk.bf16.mxu1 %vm10918_vm8, %v10917_v54  ;;  %v12708_v22 = vld [vmem:[#allocation2 + $0x6c] sm:$0xf] }
 0x324   : > { %10173 = vmatpush3.bf16.msra.mxu0 %v10764_v43  ;;  %10206 = vmatprep.subr.bf16.mxu1 %v10917_v54 }
 0x325   : > { %10174 = vmatprep.subr.bf16.mxu0 %v10917_v54 }
 0x327   : > { %10207 = vmatpush3.bf16.msra.mxu1 %v10765_v28 }
 0x328   : > { %10175 = vmatpush3.bf16.msra.mxu0 %v10766_v58  ;;  %10208 = vmatprep.subr.bf16.mxu1 %v10917_v54 }
 0x329   : > { %v9782_v62 = vpop.f32.mrf.mxu0  ;;  %10121 = vmatmul.mubr.bf16.gmra.mxu0 %v8435_v21  ;;  %10232 = vmatprep.subr.bf16.mxu0 %v10917_v54 }
 0x32a   : > { %v9814_v16 = vpop.f32.mrf.mxu1  ;;  %10153 = vmatmul.mubr.bf16.gmra.mxu1 %v12664_v1  ;;  %10176 = vmatprep.mubr.msk.bf16.mxu0 %vm10918_vm8, %v10917_v54  ;;  %v12721_v62 = vcombine.low %v12706_v56, %v12708_v22 }
 0x32b   : > { %v4771_v5 = vpop.f32.mrf.mxu0  ;;  %10156 = vmatprep.mubr.msk.bf16.mxu1 %vm10918_vm8, %v10917_v54  ;;  %10209 = vmatpush3.bf16.msra.mxu1 %v10767_v6  ;;  %v10780_v6 = vld [vmem:[#allocation5 + $0x1a0] sm:$0xff]  }
 0x32c   : > { %v4919_v8 = vpop.f32.mrf.mxu1  ;;  %10210 = vmatprep.subr.bf16.mxu1 %v10917_v54 }
 0x32d   : > { %v12674_v3 = vadd.f32 %v4919_v8, %v4771_v5  ;;  %v9783_v42 = vpop.f32.mrf.mxu0 }
 0x32e   : > { %v9815_v25 = vpop.f32.mrf.mxu1 }
 0x32f   : > { %v12676_v18 = vadd.f32 %v9815_v25, %v9783_v42  ;;  %v4774_v46 = vpop.f32.mrf.mxu0  ;;  %10211 = vmatpush3.bf16.msra.mxu1 %v10769_v45  ;;  %v10783_v42 = vld [vmem:[#allocation5 + $0x198] sm:$0xff]   ;;  %v7114_v25 = vshrl.u32 %v12495_v2, 16 }
 0x330   : > { %v4922_v13 = vpop.f32.mrf.mxu1  ;;  %10268 = vmatprep.subr.bf16.mxu1 %v10917_v54 }
 0x331   : > { %v12679_v12 = vadd.f32 %v4922_v13, %v4774_v46  ;;  %v9786_v47 = vpop.f32.mrf.mxu0  ;;  %10177 = vmatmul.mubr.bf16.vlgmr.msra.gmra.mxu0 %v12432_v0  ;;  %v7118_v46 = vshll.u32 %v12721_v62, 16  ;;  %v10786_v13 = vld [vmem:[#allocation5 + $0x148] sm:$0xff]  }
 0x332   : > { %v9818_v55 = vpop.f32.mrf.mxu1  ;;  %10157 = vmatmul.mubr.bf16.gmra.mxu1 %v12656_v49  ;;  %10180 = vmatprep.mubr.msk.bf16.mxu0 %vm10918_vm8, %v10917_v54 }
 0x333   : > { %v12685_v20 = vadd.f32 %v9818_v55, %v9786_v47  ;;  %v4786_v23 = vpop.f32.mrf.mxu0  ;;  %10212 = vmatprep.mubr.msk.bf16.mxu1 %vm10918_vm8, %v10917_v54  ;;  %10233 = vmatpush3.bf16.msra.mxu0 %v10770_v63 }
 0x334   : > { %v4934_v37 = vpop.f32.mrf.mxu1  ;;  %10234 = vmatprep.subr.bf16.mxu0 %v10917_v54 }
 0x335   : > { %v12690_v38 = vadd.f32 %v4934_v37, %v4786_v23  ;;  %v9787_v0 = vpop.f32.mrf.mxu0  ;;  %v7116_v37 = vor.u32 %v7114_v25, %v12505_v32 }
 0x336   : > { %v9819_v50 = vpop.f32.mrf.mxu1 }
 0x337   : > { %v12692_v26 = vadd.f32 %v9819_v50, %v9787_v0  ;;  %v4789_v24 = vpop.f32.mrf.mxu0  ;;  %10235 = vmatpush3.bf16.msra.mxu0 %v10773_v7  ;;  %v7120_v0 = vrot.slane %v7118_v46, 1  ;;  %v10787_v50 = vld [vmem:[#allocation5 + $0x190] sm:$0xff]  }
 0x338   : > { %v4937_v57 = vpop.f32.mrf.mxu1  ;;  %10236 = vmatprep.subr.bf16.mxu0 %v10917_v54 }
 0x339   : > { %v9790_v36 = vpop.f32.mrf.mxu0  ;;  %10181 = vmatmul.mubr.bf16.gmra.mxu0 %v12443_v48  ;;  %v10788_v57 = vld [vmem:[#allocation5 + $0x140] sm:$0xff]  }
 0x33a   : > { %v9822_v40 = vpop.f32.mrf.mxu1  ;;  %10213 = vmatmul.mubr.bf16.vlgmr.msra.gmra.mxu1 %v12465_v14  ;;  %10184 = vmatprep.mubr.msk.bf16.mxu0 %vm10918_vm8, %v10917_v54 }
 0x33b   : > { %v12699_v27 = vadd.f32 %v9822_v40, %v9790_v36  ;;  %10269 = vmatpush3.bf16.msra.mxu1 %v10772_v19  ;;  %v4801_v15 = vpop.f32.mrf.mxu0  ;;  %10216 = vmatprep.mubr.msk.bf16.mxu1 %vm10918_vm8, %v10917_v54 }
 0x33c   : > { %v4949_v34 = vpop.f32.mrf.mxu1  ;;  %10270 = vmatprep.subr.bf16.mxu1 %v10917_v54  ;;  %10237 = vmatpush3.bf16.msra.mxu0 %v10776_v29  ;;  %v8456_v29 = vcombine.low %v12706_v56, %v12706_v56 }
 0x33d   : > { %v9791_v48 = vpop.f32.mrf.mxu0  ;;  %10238 = vmatprep.subr.bf16.mxu0 %v10917_v54 }
 0x33e   : > { %v9823_v14 = vpop.f32.mrf.mxu1 }
 0x33f   : > { %v4803_v10 = vpop.f32.mrf.mxu0  ;;  %10271 = vmatpush3.bf16.msra.mxu1 %v10774_v44  ;;  %v7121_v44 = vsel %vm509_vm0, %v7116_v37, %v7120_v0 }
 0x340   : > { %v4951_v61 = vpop.f32.mrf.mxu1  ;;  %10272 = vmatprep.subr.bf16.mxu1 %v10917_v54  ;;  %10239 = vmatpush3.bf16.msra.mxu0 %v10778_v51 }
 0x341   : > { %v12710_v43 = vadd.f32 %v4951_v61, %v4803_v10  ;;  %v9794_v28 = vpop.f32.mrf.mxu0  ;;  %10185 = vmatmul.mubr.bf16.gmra.mxu0 %v12460_v30  ;;  %10240 = vmatprep.subr.bf16.mxu0 %v10917_v54  ;;  %v10782_v30 = vld [vmem:[#allocation5 + $0x150] sm:$0xff]   ;;  %v7122_v61 = vshrl.u32 %v12721_v62, 16 }
 0x342   : > { %v9826_v58 = vpop.f32.mrf.mxu1  ;;  %10217 = vmatmul.mubr.bf16.gmra.mxu1 %v12468_v59  ;;  %10188 = vmatprep.mubr.msk.bf16.mxu0 %vm10918_vm8, %v10917_v54 }
 0x343   : > { %v4815_v21 = vpop.f32.mrf.mxu0  ;;  %10273 = vmatpush3.bf16.msra.mxu1 %v10777_v39  ;;  %10220 = vmatprep.mubr.msk.bf16.mxu1 %vm10918_vm8, %v10917_v54 }
 0x344   : > { %v4963_v16 = vpop.f32.mrf.mxu1  ;;  %10274 = vmatprep.subr.bf16.mxu1 %v10917_v54  ;;  %10241 = vmatpush3.bf16.msra.mxu0 %v10781_v31  ;;  %v10790_v31 = vld [vmem:[#allocation5 + $0x180] sm:$0xff]  }
 0x345   : > { %v12724_v5 = vadd.f32 %v4963_v16, %v4815_v21  ;;  %v9795_v59 = vpop.f32.mrf.mxu0  ;;  %10242 = vmatprep.subr.bf16.mxu0 %v10917_v54 }
 0x346   : > { %v9827_v45 = vpop.f32.mrf.mxu1  ;;  %v7124_v59 = vor.u32 %v7122_v61, %v7120_v0 }
 0x347   : > { %v4818_v8 = vpop.f32.mrf.mxu0  ;;  %10275 = vmatpush3.bf16.msra.mxu1 %v10780_v6 }
 0x348   : > { %v4966_v63 = vpop.f32.mrf.mxu1  ;;  %10276 = vmatprep.subr.bf16.mxu1 %v10917_v54  ;;  %10243 = vmatpush3.bf16.msra.mxu0 %v10782_v30 }
 0x349   : > { %v12730_v47 = vadd.f32 %v4966_v63, %v4818_v8  ;;  %v9846_v55 = vpop.f32.mrf.mxu0  ;;  %10189 = vmatmul.mubr.bf16.gmra.mxu0 %v12495_v2  ;;  %10244 = vmatprep.subr.bf16.mxu0 %v10917_v54  ;;  %v10791_v8 = vld [vmem:[#allocation5 + $0x1f8] sm:$0xff]  }
 0x34a   : > { %v9878_v23 = vpop.f32.mrf.mxu1  ;;  %10221 = vmatmul.mubr.bf16.gmra.mxu1 %v12513_v41  ;;  %10192 = vmatprep.mubr.msk.bf16.mxu0 %vm10918_vm8, %v10917_v54 }
 0x34b   : > { %v5098_v7 = vpop.f32.mrf.mxu0  ;;  %10277 = vmatpush3.bf16.msra.mxu1 %v10783_v42  ;;  %10224 = vmatprep.mubr.msk.bf16.mxu1 %vm10918_vm8, %v10917_v54 }
 0x34c   : > { %v5155_v24 = vadd.f32 %v5098_v7, %v12674_v3  ;;  %v5284_v19 = vpop.f32.mrf.mxu1  ;;  %10245 = vmatpush3.bf16.msra.mxu0 %v10786_v13  ;;  %10278 = vmatprep.subr.bf16.mxu1 %v10917_v54  ;;  %v10789_v3 = vld [vmem:[#allocation5 + $0x188] sm:$0xff]   ;;  %v10793_v13 = vld [vmem:[#allocation5 + $0x1f0] sm:$0xff]  }
 0x34d   : > { %v9847_v41 = vpop.f32.mrf.mxu0  ;;  %10246 = vmatprep.subr.bf16.mxu0 %v10917_v54 }
 0x34e   : > { %v12745_v36 = vadd.f32 %v5284_v19, %v5155_v24  ;;  %v5157_v40 = vadd.f32 %v9847_v41, %v12676_v18  ;;  %v9879_v32 = vpop.f32.mrf.mxu1  ;;  %v10795_v24 = vld [vmem:[#allocation5 + $0x1e8] sm:$0xff]  }
 0x34f   : > { %v5101_v15 = vpop.f32.mrf.mxu0  ;;  %10279 = vmatpush3.bf16.msra.mxu1 %v10787_v50 }
 0x350   : > { %v12749_v34 = vadd.f32 %v9879_v32, %v5157_v40  ;;  %v5156_v51 = vadd.f32 %v5101_v15, %v12679_v12  ;;  %v5287_v48 = vpop.f32.mrf.mxu1  ;;  %10247 = vmatpush3.bf16.msra.mxu0 %v10788_v57  ;;  %10280 = vmatprep.subr.bf16.mxu1 %v10917_v54  ;;  %v10794_v40 = vld [vmem:[#allocation5 + $0x230] sm:$0xff]  }
 0x351   : > { %v9850_v14 = vpop.f32.mrf.mxu0  ;;  %10193 = vmatmul.mubr.bf16.gmra.mxu0 %v8456_v29  ;;  %10304 = vmatprep.subr.bf16.mxu0 %v10917_v54 }
 0x352   : > { %v12754_v10 = vadd.f32 %v5287_v48, %v5156_v51  ;;  %v5159_v18 = vadd.f32 %v9850_v14, %v12685_v20  ;;  %v9882_v39 = vpop.f32.mrf.mxu1  ;;  %10225 = vmatmul.mubr.bf16.gmra.mxu1 %v7121_v44  ;;  %10248 = vmatprep.mubr.msk.bf16.mxu0 %vm10918_vm8, %v10917_v54  ;;  %v10796_v51 = vld [vmem:[#allocation5 + $0x228] sm:$0xff]  }
 0x353   : > { %v5113_v12 = vpop.f32.mrf.mxu0  ;;  %10228 = vmatprep.mubr.msk.bf16.mxu1 %vm10918_vm8, %v10917_v54  ;;  %10281 = vmatpush3.bf16.msra.mxu1 %v10789_v3 }
 0x354   : > { %v12762_v28 = vadd.f32 %v9882_v39, %v5159_v18  ;;  %v5158_v58 = vadd.f32 %v5113_v12, %v12690_v38  ;;  %v5299_v21 = vpop.f32.mrf.mxu1  ;;  %10282 = vmatprep.subr.bf16.mxu1 %v10917_v54 }
 0x355   : > { %v9851_v20 = vpop.f32.mrf.mxu0 }
 0x356   : > { %v12766_v6 = vadd.f32 %v5299_v21, %v5158_v58  ;;  %v5160_v16 = vadd.f32 %v9851_v20, %v12692_v26  ;;  %v9883_v30 = vpop.f32.mrf.mxu1  ;;  %v10801_v58 = vld [vmem:[#allocation5 + $0x1d0] sm:$0xff]   ;;  %v10810_v20 = vld [vmem:[#allocation2 + $0x64] sm:$0xf] }
 0x357   : > { %v5116_v45 = vpop.f32.mrf.mxu0  ;;  %10283 = vmatpush3.bf16.msra.mxu1 %v10790_v31  ;;  %v10799_v31 = vld [vmem:[#allocation5 + $0x220] sm:$0xff]  }
 0x358   : > { %v12769_v42 = vadd.f32 %v9883_v30, %v5160_v16  ;;  %v5302_v25 = vpop.f32.mrf.mxu1  ;;  %10340 = vmatprep.subr.bf16.mxu1 %v10917_v54  ;;  %v12822_v16 = vcombine.low %v10810_v20, %v12706_v56  ;;  %v6418_v56 = vld [vmem:[#allocation2 + $0x70] sm:$0xf] }
 0x359   : > { %v9854_v46 = vpop.f32.mrf.mxu0  ;;  %10249 = vmatmul.mubr.bf16.vlgmr.msra.gmra.mxu0 %v12527_v53 }
 0x35a   : > { %v5162_v38 = vadd.f32 %v9854_v46, %v12699_v27  ;;  %v9886_v63 = vpop.f32.mrf.mxu1  ;;  %10229 = vmatmul.mubr.bf16.gmra.mxu1 %v7124_v59  ;;  %10252 = vmatprep.mubr.msk.bf16.mxu0 %vm10918_vm8, %v10917_v54  ;;  %v10792_v27 = vld [vmem:[#allocation5 + $0x238] sm:$0xff]   ;;  %v10805_v46 = vld [vmem:[#allocation5 + $0x210] sm:$0xff]  }
 0x35b   : > { %v5128_v26 = vpop.f32.mrf.mxu0  ;;  %10284 = vmatprep.mubr.msk.bf16.mxu1 %vm10918_vm8, %v10917_v54  ;;  %10305 = vmatpush3.bf16.msra.mxu0 %v10791_v8  ;;  %v10802_v59 = vld [vmem:[#allocation5 + $0x218] sm:$0xff]   ;;  %v10804_v8 = vld [vmem:[#allocation5 + $0x1c8] sm:$0xff]  }
 0x35c   : > { %v12778_v55 = vadd.f32 %v9886_v63, %v5162_v38  ;;  %v5314_v23 = vpop.f32.mrf.mxu1  ;;  %10306 = vmatprep.subr.bf16.mxu0 %v10917_v54  ;;  %v10806_v63 = vld [vmem:[#allocation5 + $0x1c0] sm:$0xff]  }
 0x35d   : > { %v9855_v7 = vpop.f32.mrf.mxu0  ;;  %v12850_v23 = vcombine.low %v12708_v22, %v6418_v56  ;;  %v10809_v22 = vld [vmem:[#allocation5 + $0x200] sm:$0xff]  }
 0x35e   : > { %v9887_v53 = vpop.f32.mrf.mxu1 }
 0x35f   : > { %v5130_v37 = vpop.f32.mrf.mxu0  ;;  %10307 = vmatpush3.bf16.msra.mxu0 %v10793_v13  ;;  %v10807_v53 = vld [vmem:[#allocation5 + $0x208] sm:$0xff]  }
 0x360   : > { %v5161_v0 = vadd.f32 %v5130_v37, %v12710_v43  ;;  %v5316_v50 = vpop.f32.mrf.mxu1  ;;  %10308 = vmatprep.subr.bf16.mxu0 %v10917_v54 }
 0x361   : > { %v9858_v19 = vpop.f32.mrf.mxu0  ;;  %10253 = vmatmul.mubr.bf16.gmra.mxu0 %v12538_v35  ;;  %v10797_v35 = vld [vmem:[#allocation5 + $0x1e0] sm:$0xff]  }
 0x362   : > { %v12784_v57 = vadd.f32 %v5316_v50, %v5161_v0  ;;  %v9890_v41 = vpop.f32.mrf.mxu1  ;;  %10285 = vmatmul.mubr.bf16.vlgmr.msra.gmra.mxu1 %v12563_v33  ;;  %10256 = vmatprep.mubr.msk.bf16.mxu0 %vm10918_vm8, %v10917_v54 }
 0x363   : > { %10341 = vmatpush3.bf16.msra.mxu1 %v10792_v27  ;;  %v5142_v29 = vpop.f32.mrf.mxu0  ;;  %10288 = vmatprep.mubr.msk.bf16.mxu1 %vm10918_vm8, %v10917_v54 }
 0x364   : > { %v5163_v43 = vadd.f32 %v5142_v29, %v12724_v5  ;;  %v5328_v32 = vpop.f32.mrf.mxu1  ;;  %10342 = vmatprep.subr.bf16.mxu1 %v10917_v54  ;;  %10309 = vmatpush3.bf16.msra.mxu0 %v10795_v24  ;;  %v10800_v5 = vld [vmem:[#allocation5 + $0x1d8] sm:$0xff]  }
 0x365   : > { %v9859_v15 = vpop.f32.mrf.mxu0  ;;  %10310 = vmatprep.subr.bf16.mxu0 %v10917_v54  ;;  %v12863_v29 = vld [vmem:[#allocation2 + $0x74] ss:$0 sps:$4 sm:$0xff]  }
 0x366   : > { %v12794_v33 = vadd.f32 %v5328_v32, %v5163_v43  ;;  %v9891_v44 = vpop.f32.mrf.mxu1 }
 0x367   : > { %v5145_v3 = vpop.f32.mrf.mxu0  ;;  %10343 = vmatpush3.bf16.msra.mxu1 %v10794_v40  ;;  %v7557_v40 = vshll.u32 %v12822_v16, 16 }
 0x368   : > { %v5164_v48 = vadd.f32 %v5145_v3, %v12730_v47  ;;  %v5331_v14 = vpop.f32.mrf.mxu1  ;;  %10344 = vmatprep.subr.bf16.mxu1 %v10917_v54  ;;  %10311 = vmatpush3.bf16.msra.mxu0 %v10797_v35  ;;  %v7276_v47 = vrot.slane %v12721_v62, 1 }
 0x369   : > { %v9910_v18 = vpop.f32.mrf.mxu0  ;;  %10257 = vmatmul.mubr.bf16.gmra.mxu0 %v12558_v52  ;;  %10312 = vmatprep.subr.bf16.mxu0 %v10917_v54  ;;  %v7559_v44 = vrot.slane %v7557_v40, 1 }
 0x36a   : > { %v12800_v39 = vadd.f32 %v5331_v14, %v5164_v48  ;;  %v9942_v61 = vpop.f32.mrf.mxu1  ;;  %10289 = vmatmul.mubr.bf16.gmra.mxu1 %v12582_v60  ;;  %10260 = vmatprep.mubr.msk.bf16.mxu0 %vm10918_vm8, %v10917_v54  ;;  %v7277_v62 = vsel %vm895_vm1, %v7274_v11, %v7276_v47  ;;  %v7565_v18 = vshll.u32 %v12850_v23, 16 }
 0x36b   : > { %v12806_v12 = vpop.f32.mrf.mxu0  ;;  %10345 = vmatpush3.bf16.msra.mxu1 %v10796_v51  ;;  %10292 = vmatprep.mubr.msk.bf16.mxu1 %vm10918_vm8, %v10917_v54 }
 0x36c   : > { %v12810_v52 = vpop.f32.mrf.mxu1  ;;  %10346 = vmatprep.subr.bf16.mxu1 %v10917_v54  ;;  %10313 = vmatpush3.bf16.msra.mxu0 %v10800_v5  ;;  %v7560_v5 = vsel %vm509_vm0, %v12613_v17, %v7559_v44  ;;  %v7567_v20 = vrot.slane %v7565_v18, 1  ;;  %v7724_v17 = vrot.slane %v12822_v16, 1 }
 0x36d   : > { %v12813_v21 = vpop.f32.mrf.mxu0  ;;  %10314 = vmatprep.subr.bf16.mxu0 %v10917_v54 }
 0x36e   : > { %v12816_v60 = vpop.f32.mrf.mxu1 }
 0x36f   : > { %v12824_v30 = vpop.f32.mrf.mxu0  ;;  %10347 = vmatpush3.bf16.msra.mxu1 %v10799_v31 }
 0x370   : > { %v12826_v45 = vpop.f32.mrf.mxu1  ;;  %10348 = vmatprep.subr.bf16.mxu1 %v10917_v54  ;;  %10315 = vmatpush3.bf16.msra.mxu0 %v10801_v58 }
 0x371   : > { %v12829_v25 = vpop.f32.mrf.mxu0  ;;  %10261 = vmatmul.mubr.bf16.gmra.mxu0 %v7277_v62  ;;  %10316 = vmatprep.subr.bf16.mxu0 %v10917_v54 }
 0x372   : > { %v12832_v2 = vpop.f32.mrf.mxu1  ;;  %10293 = vmatmul.mubr.bf16.gmra.mxu1 %v12822_v16  ;;  %10264 = vmatprep.mubr.msk.bf16.mxu0 %vm10918_vm8, %v10917_v54 }
 0x373   : > { %v12837_v11 = vpop.f32.mrf.mxu0  ;;  %10349 = vmatpush3.bf16.msra.mxu1 %v10802_v59  ;;  %10296 = vmatprep.mubr.msk.bf16.mxu1 %vm10918_vm8, %v10917_v54 }
 0x374   : > { %v12841_v38 = vpop.f32.mrf.mxu1  ;;  %10317 = vmatpush3.bf16.msra.mxu0 %v10804_v8  ;;  %10350 = vmatprep.subr.bf16.mxu1 %v10917_v54 }
 0x375   : > { %v12844_v26 = vpop.f32.mrf.mxu0  ;;  %10318 = vmatprep.subr.bf16.mxu0 %v10917_v54 }
 0x376   : > { %v12847_v13 = vpop.f32.mrf.mxu1 }
 0x377   : > { %v5542_v7 = vpop.f32.mrf.mxu0  ;;  %10351 = vmatpush3.bf16.msra.mxu1 %v10805_v46 }
 0x378   : > { %v5731_v37 = vpop.f32.mrf.mxu1  ;;  %10319 = vmatpush3.bf16.msra.mxu0 %v10806_v63  ;;  %10352 = vmatprep.subr.bf16.mxu1 %v10917_v54  ;;  %v7573_v7 = vshll.u32 %v12863_v29, 16 }
 0x379   : > { %v12853_v27 = vpop.f32.mrf.mxu0  ;;  %10265 = vmatmul.mubr.bf16.gmra.mxu0 %v7276_v47  ;;  %v7725_v37 = vsel %vm895_vm1, %v12656_v49, %v7724_v17  ;;  %v7726_v49 = vrot.slane %v12850_v23, 1 }
 0x37a   : > { %v12855_v0 = vpop.f32.mrf.mxu1  ;;  %10297 = vmatmul.mubr.bf16.gmra.mxu1 %v12850_v23  ;;  %10320 = vmatprep.mubr.msk.bf16.mxu0 %vm10918_vm8, %v10917_v54 }
 0x37b   : > { %v5554_v50 = vpop.f32.mrf.mxu0  ;;  %10300 = vmatprep.mubr.msk.bf16.mxu1 %vm10918_vm8, %v10917_v54  ;;  %10353 = vmatpush3.bf16.msra.mxu1 %v10807_v53 }
 0x37c   : > { %v5743_v24 = vpop.f32.mrf.mxu1  ;;  %10354 = vmatprep.subr.bf16.mxu1 %v10917_v54 }
 0x37d   : > { %v9919_v19 = vpop.f32.mrf.mxu0 }
 0x37e   : > { %v9951_v41 = vpop.f32.mrf.mxu1  ;;  %v7575_v19 = vrot.slane %v7573_v7, 1 }
 0x37f   : > { %v12866_v43 = vpop.f32.mrf.mxu0  ;;  %10355 = vmatpush3.bf16.msra.mxu1 %v10809_v22 }
 0x380   : > { %v12868_v32 = vpop.f32.mrf.mxu1 }
 0x381   : > { %v9922_v35 = vpop.f32.mrf.mxu0  ;;  %10321 = vmatmul.mubr.bf16.vlgmr.msra.gmra.mxu0 %v12600_v4  ;;  %v7561_v4 = vshrl.u32 %v12822_v16, 16 }
 0x382   : > { %v9954_v15 = vpop.f32.mrf.mxu1  ;;  %10301 = vmatmul.mubr.bf16.gmra.mxu1 %v12863_v29  ;;  %10324 = vmatprep.mubr.msk.bf16.mxu0 %vm10918_vm8, %v10917_v54 }
 0x383   : > { %v12874_v3 = vpop.f32.mrf.mxu0  ;;  %10356 = vmatprep.mubr.msk.bf16.mxu1 %vm10918_vm8, %v10917_v54  ;;  %v7563_v62 = vor.u32 %v7561_v4, %v7559_v44 }
 0x384   : > { %v12878_v51 = vpop.f32.mrf.mxu1 }
 0x385   : > { %v9923_v48 = vpop.f32.mrf.mxu0  ;;  %v7568_v63 = vsel %vm509_vm0, %v7563_v62, %v7567_v20  ;;  %v7728_v62 = vrot.slane %v12863_v29, 1 }
 0x386   : > { %v9955_v14 = vpop.f32.mrf.mxu1  ;;  %v7577_v48 = vshrl.u32 %v12863_v29, 16  ;;  %v5583_v29 = vadd.f32 %v12813_v21, %v12749_v34  ;;  %v5585_v34 = vadd.f32 %v12829_v25, %v12762_v28 }
 0x387   : > { %v12884_v61 = vpop.f32.mrf.mxu0 }
 0x388   : > { %v12886_v47 = vpop.f32.mrf.mxu1 }
 0x389   : > { %v9974_v31 = vpop.f32.mrf.mxu0  ;;  %10325 = vmatmul.mubr.bf16.gmra.mxu0 %v7560_v5  ;;  %v7727_v5 = vsel %vm895_vm1, %v7724_v17, %v7726_v49 }
 0x38a   : > { %v10006_v58 = vpop.f32.mrf.mxu1  ;;  %10357 = vmatmul.mubr.bf16.vlgmr.msra.gmra.mxu1 %v12664_v1  ;;  %10328 = vmatprep.mubr.msk.bf16.mxu0 %vm10918_vm8, %v10917_v54  ;;  %v7569_v1 = vshrl.u32 %v12850_v23, 16  ;;  %v7579_v23 = vor.u32 %v7577_v48, %v7575_v19 }
 0x38b   : > { %v5890_v59 = vpop.f32.mrf.mxu0  ;;  %10360 = vmatprep.mubr.msk.bf16.mxu1 %vm10918_vm8, %v10917_v54 }
 0x38c   : > { %v12894_v8 = vpop.f32.mrf.mxu1  ;;  %v7571_v24 = vor.u32 %v7569_v1, %v7567_v20  ;;  %v7584_v1 = vsel %vm11357_vm4, %v7579_v23, 0 }
 0x38d   : > { %v9975_v56 = vpop.f32.mrf.mxu0 }
 0x38e   : > { %v12896_v46 = vpop.f32.mrf.mxu1  ;;  %v7576_v44 = vsel %vm509_vm0, %v7571_v24, %v7575_v19  ;;  %v5581_v24 = vadd.f32 %v12806_v12, %v12745_v36 }
 0x38f   : > { %v5893_v53 = vpop.f32.mrf.mxu0 }
 0x390   : > { %v12903_v50 = vpop.f32.mrf.mxu1  ;;  %v5770_v9 = vadd.f32 %v12810_v52, %v5581_v24  ;;  %v5586_v52 = vadd.f32 %v12844_v26, %v12769_v42 }
 0x391   : > { %v12905_v22 = vpop.f32.mrf.mxu0  ;;  %10329 = vmatmul.mubr.bf16.gmra.mxu0 %v7568_v63 }
 0x392   : > { %v12907_v16 = vpop.f32.mrf.mxu1  ;;  %10361 = vmatmul.mubr.bf16.gmra.mxu1 %v7725_v37  ;;  %10332 = vmatprep.mubr.msk.bf16.mxu0 %vm10918_vm8, %v10917_v54  ;;  %v7729_v37 = vsel %vm895_vm1, %v7726_v49, %v7728_v62  ;;  %v5582_v49 = vadd.f32 %v12824_v30, %v12754_v10  ;;  %v5947_v21 = vadd.f32 %v5890_v59, %v5770_v9  ;;  %v6366_v9 = vld [vmem:[%s11051_s22 + $0x10] sm:$0xff] }
 0x393   : > { %v12911_v41 = vpop.f32.mrf.mxu0  ;;  %10364 = vmatprep.mubr.msk.bf16.mxu1 %vm10918_vm8, %v10917_v54  ;;  %v5584_v10 = vadd.f32 %v12837_v11, %v12766_v6 }
 0x394   : > { %v12916_v40 = vpop.f32.mrf.mxu1  ;;  %v6142_v28 = vadd.f32 %v12894_v8, %v5947_v21  ;;  %v5775_v8 = vadd.f32 %v12847_v13, %v5586_v52 }
 0x395   : > { %v12918_v35 = vpop.f32.mrf.mxu0  ;;  %v5773_v26 = vadd.f32 %v12841_v38, %v5584_v10 }
 0x396   : > { %v12920_v15 = vpop.f32.mrf.mxu1  ;;  %v5952_v13 = vadd.f32 %v12918_v35, %v5775_v8 }
 0x397   : > { %v5908_v14 = vpop.f32.mrf.mxu0  ;;  %v5950_v38 = vadd.f32 %v12911_v41, %v5773_v26 }
 0x398   : > { %v6103_v4 = vpop.f32.mrf.mxu1 }
 0x399   : > { %v12925_v18 = vpop.f32.mrf.mxu0  ;;  %10333 = vmatmul.mubr.bf16.gmra.mxu0 %v7576_v44  ;;  %v6145_v21 = vadd.f32 %v12916_v40, %v5950_v38 }
 0x39a   : > { %v12927_v31 = vpop.f32.mrf.mxu1  ;;  %10365 = vmatmul.mubr.bf16.gmra.mxu1 %v7727_v5  ;;  %10336 = vmatprep.mubr.msk.bf16.mxu0 %vm10918_vm8, %v10917_v54  ;;  %v5772_v5 = vadd.f32 %v12816_v60, %v5583_v29  ;;  %v5774_v60 = vadd.f32 %v12832_v2, %v5585_v34  ;;  %v5587_v34 = vadd.f32 %v12866_v43, %v12784_v57 }
 0x39b   : > { %v5920_v58 = vpop.f32.mrf.mxu0  ;;  %10368 = vmatprep.mubr.msk.bf16.mxu1 %vm10918_vm8, %v10917_v54 }
 0x39c   : > { %v6115_v20 = vpop.f32.mrf.mxu1  ;;  %v5771_v58 = vadd.f32 %v12826_v45, %v5582_v49  ;;  %v5951_v42 = vadd.f32 %v12905_v22, %v5774_v60 }
 0x39d   : > { %v9983_v63 = vpop.f32.mrf.mxu0 }
 0x39e   : > { %v10015_v17 = vpop.f32.mrf.mxu1  ;;  %v5948_v25 = vadd.f32 %v5893_v53, %v5771_v58  ;;  %v5588_v53 = vadd.f32 %v12853_v27, %v12778_v55  ;;  %v6146_v27 = vadd.f32 %v12907_v16, %v5951_v42  ;;  %v6365_v58 = vld [vmem:[%s11051_s22 + $0x8] sm:$0xff]  ;;  %v5776_v42 = vadd.f32 %v12868_v32, %v5587_v34 }
 0x39f   : > { %v12936_v7 = vpop.f32.mrf.mxu0  ;;  %v6369_v32 = vld [vmem:[%s11051_s22 + $0x28] sm:$0xff] }
 0x3a0   : > { %v12941_v19 = vpop.f32.mrf.mxu1 }
 0x3a1   : > { %v9986_v44 = vpop.f32.mrf.mxu0  ;;  %10337 = vmatmul.mubr.bf16.gmra.mxu0 %v7584_v1 }
 0x3a2   : > { %v10018_v48 = vpop.f32.mrf.mxu1  ;;  %10369 = vmatmul.mubr.bf16.gmra.mxu1 %v7729_v37  ;;  %v6364_v37 = vld [vmem:[%s11051_s22] sm:$0xff] }
 0x3a3   : > { %v12945_v14 = vpop.f32.mrf.mxu0  ;;  %10372 = vmatprep.mubr.msk.bf16.mxu1 %vm10918_vm8, %v10917_v54  ;;  %v5949_v54 = vadd.f32 %v9975_v56, %v5772_v5  ;;  %v12974_v56 = vld [vmem:[%s13151_s5] ss:$0 sm:$0xff]  ;;  %v5777_v48 = vadd.f32 %v12855_v0, %v5588_v53 }
 0x3a4   : > { %v12952_v36 = vpop.f32.mrf.mxu1 }
 0x3a5   : > { %v9987_v12 = vpop.f32.mrf.mxu0  ;;  %v6144_v6 = vadd.f32 %v12896_v46, %v5949_v54  ;;  %v6143_v46 = vadd.f32 %v12903_v50, %v5948_v25  ;;  %v5954_v0 = vadd.f32 %v12925_v18, %v5777_v48  ;;  %v6368_v25 = vld [vmem:[%s11051_s22 + $0x20] sm:$0xff] }
 0x3a6   : > { %v10019_v4 = vpop.f32.mrf.mxu1 }
 0x3a7   : > { %v12957_v23 = vpop.f32.mrf.mxu0  ;;  %v6147_v4 = vadd.f32 %v12920_v15, %v5952_v13  ;;  %v6149_v8 = vadd.f32 %v12927_v31, %v5954_v0 }
 0x3a8   : > { %v12960_v20 = vpop.f32.mrf.mxu1 }
 0x3a9   : > { %v10038_v30 = vpop.f32.mrf.mxu0 }
 0x3aa   : > { %v12968_v59 = vpop.f32.mrf.mxu1  ;;  %10373 = vmatmul.mubr.msk.bf16.gmra.mxu1 %vm2127_vm5, %v7728_v62  ;;  %v12985_v62 = vld [vmem:[%s13152_s6] ss:$0 sm:$0xff] }
 0x3ab   : > { %v6263_v45 = vpop.f32.mrf.mxu0 }
 0x3ac   : > { %v6320_v11 = vadd.f32 %v6263_v45, %v6142_v28  ;;  %v10070_v2 = vpop.f32.mrf.mxu1 }
 0x3ad   : > { %v10039_v63 = vpop.f32.mrf.mxu0 }
 0x3ae   : > { %v6337_v22 = vmul.f32 %v12974_v56, %v6320_v11  ;;  %v6322_v17 = vadd.f32 %v10039_v63, %v6144_v6  ;;  %v12989_v1 = vpop.f32.mrf.mxu1  ;;  %v5589_v11 = vadd.f32 %v12874_v3, %v12794_v33  ;;  %v5953_v33 = vadd.f32 %v12936_v7, %v5776_v42 }
 0x3af   : > { %v6266_v55 = vpop.f32.mrf.mxu0 }
 0x3b0   : > { %v6354_v24 = vadd.f32 %v12985_v62, %v6337_v22  ;;  %v6339_v44 = vmul.f32 %v12974_v56, %v6322_v17  ;;  %v6321_v29 = vadd.f32 %v6266_v55, %v6143_v46  ;;  %v10071_v50 = vpop.f32.mrf.mxu1  ;;  %v6367_v46 = vld [vmem:[%s11051_s22 + $0x18] sm:$0xff] }
 0x3b1   : > { %v10042_v49 = vpop.f32.mrf.mxu0 }
 0x3b2   : > { %v6374_v12 = vadd.f32 %v6364_v37, %v6354_v24  ;;  %v6356_v41 = vadd.f32 %v12985_v62, %v6339_v44  ;;  %v6338_v35 = vmul.f32 %v12974_v56, %v6321_v29  ;;  %v6324_v5 = vadd.f32 %v10042_v49, %v6146_v27  ;;  %v6611_v16 = vpop.f32.mrf.mxu1  ;;  %v6371_v49 = vld [vmem:[%s11051_s22 + $0x38] sm:$0xff] }
 0x3b3   : > { %v6278_v54 = vpop.f32.mrf.mxu0  ;;  %v5778_v44 = vadd.f32 %v12878_v51, %v5589_v11  ;;  %v5590_v29 = vadd.f32 %v12884_v61, %v12800_v39 }
 0x3b4   : > { %v6384_v10 = vmax.f32 %v6374_v12, 0.0  ;;  %v6376_v52 = vadd.f32 %v6366_v9, %v6356_v41  ;;  %v6355_v30 = vadd.f32 %v12985_v62, %v6338_v35  ;;  %v6341_v60 = vmul.f32 %v12974_v56, %v6324_v5  ;;  %v10074_v28 = vpop.f32.mrf.mxu1 }
 0x3b5   : > { %v6323_v45 = vadd.f32 %v6278_v54, %v6145_v21  ;;  %v10043_v57 = vpop.f32.mrf.mxu0  ;;  %v6148_v41 = vadd.f32 %v12941_v19, %v5953_v33  ;;  %v5955_v35 = vadd.f32 %v12945_v14, %v5778_v44  ;;  %v5779_v61 = vadd.f32 %v12886_v47, %v5590_v29 }
 0x3b6   : > { %6395 = vst.msk [vmem:[%s11056_s25] sm:$0xff] %vm6394_vm9, %v6384_v10  ;;  %v6386_v43 = vmax.f32 %v6376_v52, 0.0  ;;  %v6375_v40 = vadd.f32 %v6365_v58, %v6355_v30  ;;  %v6358_v15 = vadd.f32 %v12985_v62, %v6341_v60  ;;  %v6325_v18 = vadd.f32 %v10043_v57, %v6147_v4  ;;  %v13013_v6 = vpop.f32.mrf.mxu1  ;;  %v6370_v52 = vld [vmem:[%s11051_s22 + $0x30] sm:$0xff] }
 0x3b7   : > { %v6340_v2 = vmul.f32 %v12974_v56, %v6323_v45  ;;  %v6281_v26 = vpop.f32.mrf.mxu0  ;;  %v6150_v19 = vadd.f32 %v12952_v36, %v5955_v35  ;;  %v5956_v14 = vadd.f32 %v12957_v23, %v5779_v61 }
 0x3b8   : > { %6397 = vst.msk [vmem:[%s11056_s25 + $0x10] sm:$0xff] %vm6394_vm9, %v6386_v43  ;;  %v6385_v53 = vmax.f32 %v6375_v40, 0.0  ;;  %v6378_v63 = vadd.f32 %v6368_v25, %v6358_v15  ;;  %v6342_v22 = vmul.f32 %v12974_v56, %v6325_v18  ;;  %v10075_v17 = vpop.f32.mrf.mxu1  ;;  %v6372_v43 = vld [vmem:[%s11051_s22 + $0x40] sm:$0xff] }
 0x3b9   : > { %v6357_v38 = vadd.f32 %v12985_v62, %v6340_v2  ;;  %v10046_v13 = vpop.f32.mrf.mxu0  ;;  %v6151_v45 = vadd.f32 %v12960_v20, %v5956_v14 }
 0x3ba   : > { %6396 = vst.msk [vmem:[%s11056_s25 + $0x8] sm:$0xff] %vm6394_vm9, %v6385_v53  ;;  %v6388_v3 = vmax.f32 %v6378_v63, 0.0  ;;  %v6359_v31 = vadd.f32 %v12985_v62, %v6342_v22  ;;  %v6327_v37 = vadd.f32 %v10046_v13, %v6149_v8  ;;  %v13030_v55 = vpop.f32.mrf.mxu1  ;;  %v6373_v63 = vld [vmem:[%s11051_s22 + $0x48] sm:$0xff] }
 0x3bb   : > { %v6377_v27 = vadd.f32 %v6367_v46, %v6357_v38  ;;  %v6293_v24 = vpop.f32.mrf.mxu0 }
 0x3bc   : > { %6399 = vst.msk [vmem:[%s11056_s25 + $0x20] sm:$0xff] %vm6394_vm9, %v6388_v3  ;;  %v6379_v7 = vadd.f32 %v6369_v32, %v6359_v31  ;;  %v6344_v50 = vmul.f32 %v12974_v56, %v6327_v37  ;;  %v10078_v48 = vpop.f32.mrf.mxu1 }
 0x3bd   : > { %v6387_v9 = vmax.f32 %v6377_v27, 0.0  ;;  %v10047_v12 = vpop.f32.mrf.mxu0 }
 0x3be   : > { %v6389_v5 = vmax.f32 %v6379_v7, 0.0  ;;  %v6361_v51 = vadd.f32 %v12985_v62, %v6344_v50  ;;  %v6621_v16 = vpop.f32.mrf.mxu1 }
 0x3bf   : > { %6398 = vst.msk [vmem:[%s11056_s25 + $0x18] sm:$0xff] %vm6394_vm9, %v6387_v9  ;;  %v6295_v39 = vpop.f32.mrf.mxu0 }
 0x3c0   : > { %6400 = vst.msk [vmem:[%s11056_s25 + $0x28] sm:$0xff] %vm6394_vm9, %v6389_v5  ;;  %v6381_v34 = vadd.f32 %v6371_v49, %v6361_v51  ;;  %v6326_v21 = vadd.f32 %v6295_v39, %v6148_v41  ;;  %v10079_v4 = vpop.f32.mrf.mxu1 }
 0x3c1   : > { %v10050_v0 = vpop.f32.mrf.mxu0 }
 0x3c2   : > { %v6391_v58 = vmax.f32 %v6381_v34, 0.0  ;;  %v6343_v54 = vmul.f32 %v12974_v56, %v6326_v21  ;;  %v6625_v10 = vpop.f32.mrf.mxu1 }
 0x3c3   : > { %v6307_v30 = vpop.f32.mrf.mxu0 }
 0x3c4   : > { %6402 = vst.msk [vmem:[%s11056_s25 + $0x38] sm:$0xff] %vm6394_vm9, %v6391_v58  ;;  %v6360_v47 = vadd.f32 %v12985_v62, %v6343_v54  ;;  %v6328_v60 = vadd.f32 %v6307_v30, %v6150_v19  ;;  %v10082_v28 = vpop.f32.mrf.mxu1 }
 0x3c5   : > { %v10051_v25 = vpop.f32.mrf.mxu0 }
 0x3c6   : > { %v6380_v36 = vadd.f32 %v6370_v52, %v6360_v47  ;;  %v6345_v23 = vmul.f32 %v12974_v56, %v6328_v60  ;;  %v6628_v57 = vpop.f32.mrf.mxu1 }
 0x3c7   : > { %v6310_v40 = vpop.f32.mrf.mxu0 }
 0x3c8   : > { %v6390_v15 = vmax.f32 %v6380_v36, 0.0  ;;  %v6362_v18 = vadd.f32 %v12985_v62, %v6345_v23  ;;  %v6329_v42 = vadd.f32 %v6310_v40, %v6151_v45  ;;  %v10083_v11 = vpop.f32.mrf.mxu1 }
 0x3c9   : > { %v6726_v2 = vpop.f32.mrf.mxu0 }
 0x3ca   : > { %6401 = vst.msk [vmem:[%s11056_s25 + $0x30] sm:$0xff] %vm6394_vm9, %v6390_v15  ;;  %v6382_v26 = vadd.f32 %v6372_v43, %v6362_v18  ;;  %v6346_v8 = vmul.f32 %v12974_v56, %v6329_v42  ;;  %v6633_v20 = vpop.f32.mrf.mxu1  ;;  %v6727_v53 = vadd.f32 %v6726_v2, %v12968_v59 }
 0x3cb   : > { %v10106_v46 = vpop.f32.mrf.mxu0 }
 0x3cc   : > { %v6392_v22 = vmax.f32 %v6382_v26, 0.0  ;;  %v6363_v17 = vadd.f32 %v12985_v62, %v6346_v8  ;;  %v10086_v38 = vpop.f32.mrf.mxu1 }
 0x3cd   : > { %v6729_v32 = vpop.f32.mrf.mxu0 }
 0x3ce   : > { %6403 = vst.msk [vmem:[%s11056_s25 + $0x40] sm:$0xff] %vm6394_vm9, %v6392_v22  ;;  %v6383_v13 = vadd.f32 %v6373_v63, %v6363_v17  ;;  %v6635_v33 = vpop.f32.mrf.mxu1  ;;  %v6730_v3 = vadd.f32 %v6729_v32, %v12989_v1 }
 0x3cf   : > { %v10107_v31 = vpop.f32.mrf.mxu0 }
 0x3d0   : > { %v6393_v37 = vmax.f32 %v6383_v13, 0.0  ;;  %v10087_v27 = vpop.f32.mrf.mxu1 }
 0x3d1   : > { %v6734_v24 = vpop.f32.mrf.mxu0 }
 0x3d2   : > { %6404 = vst.msk [vmem:[%s11056_s25 + $0x48] sm:$0xff] %vm6394_vm9, %v6393_v37  ;;  %v6873_v59 = vpop.f32.mrf.mxu1 }
 0x3d3   : > { %v6908_v44 = vadd.f32 %v6873_v59, %v6727_v53  ;;  %v10110_v29 = vpop.f32.mrf.mxu0 }
 0x3d4   : > { %v10142_v7 = vpop.f32.mrf.mxu1 }
 0x3d5   : > { %v6736_v50 = vpop.f32.mrf.mxu0 }
 0x3d6   : > { %v6737_v48 = vadd.f32 %v6736_v50, %v13013_v6  ;;  %v6876_v9 = vpop.f32.mrf.mxu1 }
 0x3d7   : > { %v6909_v49 = vadd.f32 %v6876_v9, %v6730_v3  ;;  %v10111_v12 = vpop.f32.mrf.mxu0 }
 0x3d8   : > { %v10143_v41 = vpop.f32.mrf.mxu1 }
 0x3d9   : > { %v6741_v35 = vpop.f32.mrf.mxu0 }
 0x3da   : > { %v6742_v1 = vadd.f32 %v6741_v35, %v13030_v55  ;;  %v6881_v5 = vpop.f32.mrf.mxu1 }
 0x3db   : > { %v10114_v51 = vpop.f32.mrf.mxu0 }
 0x3dc   : > { %v10146_v16 = vpop.f32.mrf.mxu1 }
 0x3dd   : > { %v6744_v39 = vpop.f32.mrf.mxu0 }
 0x3de   : > { %v6883_v61 = vpop.f32.mrf.mxu1 }
 0x3df   : > { %v6910_v34 = vadd.f32 %v6883_v61, %v6737_v48  ;;  %v10115_v21 = vpop.f32.mrf.mxu0 }
 0x3e0   : > { %v10147_v4 = vpop.f32.mrf.mxu1 }
 0x3e1   : > { %v6748_v0 = vpop.f32.mrf.mxu0 }
 0x3e2   : > { %v6749_v19 = vadd.f32 %v6748_v0, %v6625_v10  ;;  %v6888_v14 = vpop.f32.mrf.mxu1 }
 0x3e3   : > { %v6911_v58 = vadd.f32 %v6888_v14, %v6742_v1  ;;  %v10118_v6 = vpop.f32.mrf.mxu0 }
 0x3e4   : > { %v10150_v54 = vpop.f32.mrf.mxu1 }
 0x3e5   : > { %v6751_v52 = vpop.f32.mrf.mxu0 }
 0x3e6   : > { %v6752_v30 = vadd.f32 %v6751_v52, %v6628_v57  ;;  %v6891_v47 = vpop.f32.mrf.mxu1 }
 0x3e7   : > { %v10119_v60 = vpop.f32.mrf.mxu0 }
 0x3e8   : > { %v10151_v28 = vpop.f32.mrf.mxu1 }
 0x3e9   : > { %v6756_v55 = vpop.f32.mrf.mxu0 }
 0x3ea   : > { %v6895_v25 = vpop.f32.mrf.mxu1 }
 0x3eb   : > { %v6912_v45 = vadd.f32 %v6895_v25, %v6749_v19  ;;  %v10122_v36 = vpop.f32.mrf.mxu0 }
 0x3ec   : > { %v10154_v23 = vpop.f32.mrf.mxu1 }
 0x3ed   : > { %v6758_v43 = vpop.f32.mrf.mxu0 }
 0x3ee   : > { %v6898_v40 = vpop.f32.mrf.mxu1 }
 0x3ef   : > { %v6913_v15 = vadd.f32 %v6898_v40, %v6752_v30  ;;  %v10123_v18 = vpop.f32.mrf.mxu0 }
 0x3f0   : > { %v10155_v42 = vpop.f32.mrf.mxu1 }
 0x3f1   : > { %v7026_v10 = vpop.f32.mrf.mxu0 }
 0x3f2   : > { %v6903_v11 = vpop.f32.mrf.mxu1  ;;  %v7061_v2 = vadd.f32 %v7026_v10, %v6908_v44 }
 0x3f3   : > { %v10178_v26 = vpop.f32.mrf.mxu0 }
 0x3f4   : > { %v10158_v8 = vpop.f32.mrf.mxu1 }
 0x3f5   : > { %v7029_v20 = vpop.f32.mrf.mxu0 }
 0x3f6   : > { %v6905_v57 = vpop.f32.mrf.mxu1  ;;  %v7062_v53 = vadd.f32 %v7029_v20, %v6909_v49 }
 0x3f7   : > { %v10179_v63 = vpop.f32.mrf.mxu0 }
 0x3f8   : > { %v10159_v46 = vpop.f32.mrf.mxu1 }
 0x3f9   : > { %v7034_v22 = vpop.f32.mrf.mxu0 }
 0x3fa   : > { %v7212_v17 = vpop.f32.mrf.mxu1 }
 0x3fb   : > { %v13071_v38 = vadd.f32 %v7212_v17, %v7061_v2  ;;  %v10182_v32 = vpop.f32.mrf.mxu0 }
 0x3fc   : > { %v10214_v13 = vpop.f32.mrf.mxu1 }
 0x3fd   : > { %v7036_v33 = vpop.f32.mrf.mxu0 }
 0x3fe   : > { %v7063_v3 = vadd.f32 %v7036_v33, %v6910_v34  ;;  %v7215_v31 = vpop.f32.mrf.mxu1 }
 0x3ff   : > { %v13073_v37 = vadd.f32 %v7215_v31, %v7062_v53  ;;  %v10183_v27 = vpop.f32.mrf.mxu0 }
 0x400   : > { %v10215_v24 = vpop.f32.mrf.mxu1 }
 0x401   : > { %v7041_v59 = vpop.f32.mrf.mxu0 }
 0x402   : > { %v7064_v44 = vadd.f32 %v7041_v59, %v6911_v58  ;;  %v7220_v29 = vpop.f32.mrf.mxu1 }
 0x403   : > { %v10186_v7 = vpop.f32.mrf.mxu0 }
 0x404   : > { %v10218_v50 = vpop.f32.mrf.mxu1 }
 0x405   : > { %v7044_v48 = vpop.f32.mrf.mxu0 }
 0x406   : > { %v7222_v9 = vpop.f32.mrf.mxu1 }
 0x407   : > { %v13075_v49 = vadd.f32 %v7222_v9, %v7063_v3  ;;  %v10187_v12 = vpop.f32.mrf.mxu0 }
 0x408   : > { %v10219_v41 = vpop.f32.mrf.mxu1 }
 0x409   : > { %v7048_v35 = vpop.f32.mrf.mxu0 }
 0x40a   : > { %v7065_v1 = vadd.f32 %v7048_v35, %v6912_v45  ;;  %v7227_v5 = vpop.f32.mrf.mxu1 }
 0x40b   : > { %v13077_v51 = vadd.f32 %v7227_v5, %v7064_v44  ;;  %v10190_v16 = vpop.f32.mrf.mxu0 }
 0x40c   : > { %v10222_v39 = vpop.f32.mrf.mxu1 }
 0x40d   : > { %v7051_v61 = vpop.f32.mrf.mxu0 }
 0x40e   : > { %v7066_v34 = vadd.f32 %v7051_v61, %v6913_v15  ;;  %v7230_v21 = vpop.f32.mrf.mxu1 }
 0x40f   : > { %v10191_v4 = vpop.f32.mrf.mxu0 }
 0x410   : > { %v10223_v0 = vpop.f32.mrf.mxu1 }
 0x411   : > { %v7056_v19 = vpop.f32.mrf.mxu0 }
 0x412   : > { %v7234_v14 = vpop.f32.mrf.mxu1 }
 0x413   : > { %v13079_v58 = vadd.f32 %v7234_v14, %v7065_v1  ;;  %v10194_v6 = vpop.f32.mrf.mxu0 }
 0x414   : > { %v10226_v54 = vpop.f32.mrf.mxu1 }
 0x415   : > { %v7058_v52 = vpop.f32.mrf.mxu0 }
 0x416   : > { %v7237_v30 = vpop.f32.mrf.mxu1 }
 0x417   : > { %v13081_v47 = vadd.f32 %v7237_v30, %v7066_v34  ;;  %v10195_v60 = vpop.f32.mrf.mxu0 }
 0x418   : > { %v10227_v28 = vpop.f32.mrf.mxu1 }
 0x419   : > { %v7365_v55 = vpop.f32.mrf.mxu0 }
 0x41a   : > { %v7242_v25 = vpop.f32.mrf.mxu1  ;;  %v7400_v34 = vadd.f32 %v7365_v55, %v13071_v38  ;;  %v8512_v55 = vld [vmem:[%s11051_s22 + $0x50] sm:$0xff] }
 0x41b   : > { %v10250_v45 = vpop.f32.mrf.mxu0 }
 0x41c   : > { %v10230_v36 = vpop.f32.mrf.mxu1 }
 0x41d   : > { %v7368_v23 = vpop.f32.mrf.mxu0 }
 0x41e   : > { %v7244_v43 = vpop.f32.mrf.mxu1  ;;  %v7401_v6 = vadd.f32 %v7368_v23, %v13073_v37 }
 0x41f   : > { %v10251_v40 = vpop.f32.mrf.mxu0 }
 0x420   : > { %v10231_v15 = vpop.f32.mrf.mxu1 }
 0x421   : > { %v7373_v18 = vpop.f32.mrf.mxu0 }
 0x422   : > { %v7515_v42 = vpop.f32.mrf.mxu1 }
 0x423   : > { %v10254_v10 = vpop.f32.mrf.mxu0  ;;  %v7550_v0 = vadd.f32 %v7515_v42, %v7400_v34 }
 0x424   : > { %v10286_v11 = vpop.f32.mrf.mxu1 }
 0x425   : > { %v7375_v2 = vpop.f32.mrf.mxu0 }
 0x426   : > { %v7518_v26 = vpop.f32.mrf.mxu1  ;;  %v7402_v23 = vadd.f32 %v7375_v2, %v13075_v49 }
 0x427   : > { %v10255_v8 = vpop.f32.mrf.mxu0  ;;  %v7551_v60 = vadd.f32 %v7518_v26, %v7401_v6 }
 0x428   : > { %v10287_v20 = vpop.f32.mrf.mxu1  ;;  %v8513_v8 = vld [vmem:[%s11051_s22 + $0x58] sm:$0xff] }
 0x429   : > { %v7380_v57 = vpop.f32.mrf.mxu0 }
 0x42a   : > { %v7523_v53 = vpop.f32.mrf.mxu1 }
 0x42b   : > { %v10258_v63 = vpop.f32.mrf.mxu0 }
 0x42c   : > { %v10290_v46 = vpop.f32.mrf.mxu1 }
 0x42d   : > { %v7383_v22 = vpop.f32.mrf.mxu0 }
 0x42e   : > { %v7525_v17 = vpop.f32.mrf.mxu1 }
 0x42f   : > { %v10259_v32 = vpop.f32.mrf.mxu0  ;;  %v7552_v53 = vadd.f32 %v7525_v17, %v7402_v23  ;;  %v8517_v23 = vld [vmem:[%s11051_s22 + $0x78] sm:$0xff] }
 0x430   : > { %v10291_v13 = vpop.f32.mrf.mxu1 }
 0x431   : > { %v13083_v33 = vpop.f32.mrf.mxu0  ;;  %v7403_v13 = vadd.f32 %v7380_v57, %v13077_v51 }
 0x432   : > { %v7530_v3 = vpop.f32.mrf.mxu1 }
 0x433   : > { %v10262_v31 = vpop.f32.mrf.mxu0 }
 0x434   : > { %v10294_v27 = vpop.f32.mrf.mxu1 }
 0x435   : > { %v13085_v24 = vpop.f32.mrf.mxu0 }
 0x436   : > { %v7533_v59 = vpop.f32.mrf.mxu1 }
 0x437   : > { %v10263_v44 = vpop.f32.mrf.mxu0  ;;  %v7553_v59 = vadd.f32 %v7530_v3, %v7403_v13  ;;  %v7404_v3 = vadd.f32 %v13083_v33, %v13079_v58 }
 0x438   : > { %v10295_v29 = vpop.f32.mrf.mxu1 }
 0x439   : > { %v7395_v7 = vpop.f32.mrf.mxu0 }
 0x43a   : > { %v13087_v50 = vpop.f32.mrf.mxu1 }
 0x43b   : > { %v10266_v48 = vpop.f32.mrf.mxu0 }
 0x43c   : > { %v10298_v9 = vpop.f32.mrf.mxu1 }
 0x43d   : > { %v7397_v12 = vpop.f32.mrf.mxu0 }
 0x43e   : > { %v13089_v41 = vpop.f32.mrf.mxu1 }
 0x43f   : > { %v10267_v35 = vpop.f32.mrf.mxu0 }
 0x440   : > { %v10299_v1 = vpop.f32.mrf.mxu1  ;;  %v8514_v35 = vld [vmem:[%s11051_s22 + $0x60] sm:$0xff] }
 0x441   : > { %v7683_v5 = vpop.f32.mrf.mxu0 }
 0x442   : > { %v7545_v16 = vpop.f32.mrf.mxu1  ;;  %v7718_v54 = vadd.f32 %v7683_v5, %v7550_v0  ;;  %v7554_v0 = vadd.f32 %v13087_v50, %v7404_v3 }
 0x443   : > { %v10322_v39 = vpop.f32.mrf.mxu0 }
 0x444   : > { %v10302_v61 = vpop.f32.mrf.mxu1 }
 0x445   : > { %v7686_v21 = vpop.f32.mrf.mxu0 }
 0x446   : > { %v7547_v4 = vpop.f32.mrf.mxu1  ;;  %v7719_v36 = vadd.f32 %v7686_v21, %v7551_v60  ;;  %v8515_v21 = vld [vmem:[%s11051_s22 + $0x68] sm:$0xff] }
 0x447   : > { %v10323_v19 = vpop.f32.mrf.mxu0 }
 0x448   : > { %v10303_v14 = vpop.f32.mrf.mxu1 }
 0x449   : > { %v7691_v52 = vpop.f32.mrf.mxu0 }
 0x44a   : > { %v7834_v30 = vpop.f32.mrf.mxu1  ;;  %v7405_v52 = vadd.f32 %v13085_v24, %v13081_v47  ;;  %v8516_v24 = vld [vmem:[%s11051_s22 + $0x70] sm:$0xff] }
 0x44b   : > { %v7869_v28 = vadd.f32 %v7834_v30, %v7718_v54  ;;  %v10326_v25 = vpop.f32.mrf.mxu0 }
 0x44c   : > { %v10358_v45 = vpop.f32.mrf.mxu1 }
 0x44d   : > { %v7882_v43 = vmul.f32 %v12974_v56, %v7869_v28  ;;  %v7693_v38 = vpop.f32.mrf.mxu0  ;;  %v7555_v28 = vadd.f32 %v13089_v41, %v7405_v52 }
 0x44e   : > { %v7837_v40 = vpop.f32.mrf.mxu1  ;;  %v7720_v31 = vadd.f32 %v7693_v38, %v7552_v53 }
 0x44f   : > { %v7895_v15 = vadd.f32 %v12985_v62, %v7882_v43  ;;  %v7870_v18 = vadd.f32 %v7837_v40, %v7719_v36  ;;  %v10327_v42 = vpop.f32.mrf.mxu0 }
 0x450   : > { %v10359_v37 = vpop.f32.mrf.mxu1 }
 0x451   : > { %v7908_v10 = vadd.f32 %v8512_v55, %v7895_v15  ;;  %v7883_v11 = vmul.f32 %v12974_v56, %v7870_v18  ;;  %v7698_v26 = vpop.f32.mrf.mxu0 }
 0x452   : > { %v7842_v20 = vpop.f32.mrf.mxu1  ;;  %v7721_v48 = vadd.f32 %v7698_v26, %v7553_v59 }
 0x453   : > { %v7914_v63 = vmax.f32 %v7908_v10, 0.0  ;;  %v7896_v46 = vadd.f32 %v12985_v62, %v7883_v11  ;;  %v10330_v22 = vpop.f32.mrf.mxu0 }
 0x454   : > { %v10362_v32 = vpop.f32.mrf.mxu1 }
 0x455   : > { %8518 = vst.msk [vmem:[%s11056_s25 + $0x50] sm:$0xff] %vm6394_vm9, %v7914_v63  ;;  %v7909_v49 = vadd.f32 %v8513_v8, %v7896_v46  ;;  %v7701_v2 = vpop.f32.mrf.mxu0 }
 0x456   : > { %v7844_v27 = vpop.f32.mrf.mxu1 }
 0x457   : > { %v7915_v44 = vmax.f32 %v7909_v49, 0.0  ;;  %v7871_v29 = vadd.f32 %v7844_v27, %v7720_v31  ;;  %v10331_v7 = vpop.f32.mrf.mxu0 }
 0x458   : > { %v10363_v17 = vpop.f32.mrf.mxu1 }
 0x459   : > { %8519 = vst.msk [vmem:[%s11056_s25 + $0x58] sm:$0xff] %vm6394_vm9, %v7915_v44  ;;  %v7884_v9 = vmul.f32 %v12974_v56, %v7871_v29  ;;  %v7705_v12 = vpop.f32.mrf.mxu0 }
 0x45a   : > { %v7849_v51 = vpop.f32.mrf.mxu1  ;;  %v7722_v58 = vadd.f32 %v7705_v12, %v7554_v0 }
 0x45b   : > { %v7897_v57 = vadd.f32 %v12985_v62, %v7884_v9  ;;  %v7872_v1 = vadd.f32 %v7849_v51, %v7721_v48  ;;  %v10334_v5 = vpop.f32.mrf.mxu0 }
 0x45c   : > { %v10366_v16 = vpop.f32.mrf.mxu1 }
 0x45d   : > { %v7910_v39 = vadd.f32 %v8514_v35, %v7897_v57  ;;  %v7885_v61 = vmul.f32 %v12974_v56, %v7872_v1  ;;  %v7708_v34 = vpop.f32.mrf.mxu0 }
 0x45e   : > { %v7852_v4 = vpop.f32.mrf.mxu1  ;;  %v7723_v43 = vadd.f32 %v7708_v34, %v7555_v28 }
 0x45f   : > { %v7916_v19 = vmax.f32 %v7910_v39, 0.0  ;;  %v7898_v14 = vadd.f32 %v12985_v62, %v7885_v61  ;;  %v10335_v6 = vpop.f32.mrf.mxu0 }
 0x460   : > { %v10367_v54 = vpop.f32.mrf.mxu1 }
 0x461   : > { %8520 = vst.msk [vmem:[%s11056_s25 + $0x60] sm:$0xff] %vm6394_vm9, %v7916_v19  ;;  %v7911_v33 = vadd.f32 %v8515_v21, %v7898_v14  ;;  %v7713_v30 = vpop.f32.mrf.mxu0 }
 0x462   : > { %v7856_v60 = vpop.f32.mrf.mxu1 }
 0x463   : > { %v7917_v25 = vmax.f32 %v7911_v33, 0.0  ;;  %v7873_v50 = vadd.f32 %v7856_v60, %v7722_v58  ;;  %v10338_v45 = vpop.f32.mrf.mxu0 }
 0x464   : > { %v10370_v36 = vpop.f32.mrf.mxu1 }
 0x465   : > { %8521 = vst.msk [vmem:[%s11056_s25 + $0x68] sm:$0xff] %vm6394_vm9, %v7917_v25  ;;  %v7886_v38 = vmul.f32 %v12974_v56, %v7873_v50  ;;  %v7715_v47 = vpop.f32.mrf.mxu0 }
 0x466   : > { %v7859_v55 = vpop.f32.mrf.mxu1 }
 0x467   : > { %v7899_v40 = vadd.f32 %v12985_v62, %v7886_v38  ;;  %v7874_v15 = vadd.f32 %v7859_v55, %v7723_v43  ;;  %v10339_v18 = vpop.f32.mrf.mxu0 }
 0x468   : > { %v10371_v41 = vpop.f32.mrf.mxu1 }
 0x469   : > { %v7912_v42 = vadd.f32 %v8516_v24, %v7899_v40  ;;  %v7887_v37 = vmul.f32 %v12974_v56, %v7874_v15 }
 0x46a   : > { %v7864_v10 = vpop.f32.mrf.mxu1 }
 0x46b   : > { %v7918_v11 = vmax.f32 %v7912_v42, 0.0  ;;  %v7900_v26 = vadd.f32 %v12985_v62, %v7887_v37 }
 0x46c   : > { %v10374_v8 = vpop.f32.mrf.mxu1 }
 0x46d   : > { %8522 = vst.msk [vmem:[%s11056_s25 + $0x70] sm:$0xff] %vm6394_vm9, %v7918_v11  ;;  %v7913_v20 = vadd.f32 %v8517_v23, %v7900_v26 }
 0x46e   : > { %v7866_v53 = vpop.f32.mrf.mxu1 }
 0x46f   : > { %v7919_v63 = vmax.f32 %v7913_v20, 0.0 }
 0x470   : > { %v10375_v46 = vpop.f32.mrf.mxu1 }
 0x471   : > { %8523 = vst.msk [vmem:[%s11056_s25 + $0x78] sm:$0xff] %vm6394_vm9, %v7919_v63 }
 0x472 PF: > { %s20_s9 = sadd.s32 1, %s10909_s9   ;;  %s13232_s27 = smov %s10901_s29 }
 0x473   : > { %p17_p0 = scmp.ge.s32.totalorder %s20_s9, 6   ;;  %s13233_s28 = smov %s10905_s30 }
 0x474   : > { %s13234_s29 = smov %s13237_s11  ;;  %s13235_s30 = smov %s13241_s12 }
 0x475   :  { %19 = sbr.rel (!%p17_p0) target bundleno = 4 (0x4), region = 123 }
 0x47a   :  { %7959 = vsyncpa [#allocation4], 1 }
 0x47b   :  { %7961 = vsyncpa [#allocation4 + $0x1], 1 }
 0x47c   :  { %7962 = vsyncpa [#allocation6], 1 }

</bundles_post_ra>
